<compile_context>
chip_gen: v7x
topology: tpu7x:2x2x1
jax: 0.10.0
libtpu: 0.0.40
codegen_flags: <defaults>
</compile_context>

<pallas_src>
import functools

import jax
import jax.numpy as jnp
import numpy as np
from jax.experimental import pallas as pl
from jax.experimental.pallas import tpu as pltpu


REC_CHUNK_TARGET = 32                  # recurrence timesteps per sequential grid step
PROJ_CHUNK_TARGET = 128                # projection timesteps per parallel grid step
PROJ_VMEM_BUDGET = 24 * 1024 * 1024    # rough budget for kernel-1 double-buffered blocks


def _round_up(x, m):
    return ((x + m - 1) // m) * m


def _pick_chunks(t_r, batch, two_f, g4):
    """Choose (proj_chunk, n_proj, rec_chunk, n_rec, t_pad)."""
    # recurrence chunk: multiple of 8 so the flattened (chunk*B) row block is
    # sublane aligned for any B.
    rec = min(REC_CHUNK_TARGET, _round_up(t_r, 8))
    n_rec = -(-t_r // rec)
    t_pad = n_rec * rec

    # projection chunk: largest multiple of `rec` that divides t_pad, fits the
    # VMEM budget (double-buffered ins + outs), and is <= PROJ_CHUNK_TARGET.
    def vmem_est(c1):
        ins = 2 * c1 * batch * two_f * 4
        outs = 2 * c1 * batch * g4 * 4
        return 2 * (ins + outs)          # x2: double buffering

    k_best = 1
    for k in range(n_rec, 0, -1):
        c1 = k * rec
        if n_rec % k == 0 and c1 <= PROJ_CHUNK_TARGET and vmem_est(c1) <= PROJ_VMEM_BUDGET:
            k_best = k
            break
    return k_best * rec, n_rec // k_best, rec, n_rec, t_pad


# ---------------------------------------------------------------------------
# Kernel 1: fused frontend + hoisted dual-direction input projection
# ---------------------------------------------------------------------------
def _fuse_project_kernel(v_ref, m_ref, wa_ref, wb_ref,
                         wih_f_ref, wih_b_ref, bias_f_ref, bias_b_ref,
                         gf_ref, gb_ref):
    # v/m:        (chunk*B, 2F) f32, rows ordered row = t*B + b (time-major)
    # wa/wb:      (1, 2F)       f32 fusion weights
    # wih_{f,b}:  (2F, G4)      bf16 input->gate weights (gate cols padded to G4)
    # bias_{f,b}: (1, G4)       f32  (b_ih + b_hh)
    # gf/gb:      (chunk*B, G4) f32 gate pre-activation streams
    fused = jnp.maximum(v_ref[...] * wa_ref[...] + m_ref[...] * wb_ref[...], 0.0)
    fused_bf = fused.astype(jnp.bfloat16)
    gf_ref[...] = jnp.dot(fused_bf, wih_f_ref[...],
                          preferred_element_type=jnp.float32) + bias_f_ref[...]
    gb_ref[...] = jnp.dot(fused_bf, wih_b_ref[...],
                          preferred_element_type=jnp.float32) + bias_b_ref[...]


# ---------------------------------------------------------------------------
# Kernel 2: interleaved bidirectional LSTM recurrence + fc1 head
# ---------------------------------------------------------------------------
def _bilstm_fc_kernel(gf_ref, gb_ref, whh_f_ref, whh_b_ref,
                      wfc_f_ref, wfc_b_ref, bfc_ref, out_ref,
                      hf_sc, cf_sc, hb_sc, cb_sc, *,
                      batch, chunk, hidden, seq_len, t_pad):
    ci = pl.program_id(0)

    @pl.when(ci == 0)
    def _init():
        hf_sc[...] = jnp.zeros_like(hf_sc)
        cf_sc[...] = jnp.zeros_like(cf_sc)
        hb_sc[...] = jnp.zeros_like(hb_sc)
        cb_sc[...] = jnp.zeros_like(cb_sc)

    whh_f = whh_f_ref[...]               # (H, G4) bf16, loaded once per chunk
    whh_b = whh_b_ref[...]
    h_f, c_f = hf_sc[...], cf_sc[...]
    h_b, c_b = hb_sc[...], cb_sc[...]
    needs_mask = (t_pad != seq_len)      # static python bool
    H = hidden

    def lstm_gates(g, c_prev):
        i_g = jax.nn.sigmoid(g[:, 0 * H:1 * H])     # PyTorch gate order i,f,g,o
        f_g = jax.nn.sigmoid(g[:, 1 * H:2 * H])
        g_g = jnp.tanh(g[:, 2 * H:3 * H])
        o_g = jax.nn.sigmoid(g[:, 3 * H:4 * H])
        c_new = f_g * c_prev + i_g * g_g
        h_new = o_g * jnp.tanh(c_new)
        return h_new, c_new

    # Statically unrolled chunk: two independent recurrence chains interleaved.
    # Forward reads row j of its chunk; backward reads row (chunk-1-j) of the
    # reverse-order chunk (its index_map already walks chunks back-to-front),
    # i.e. global time t_pad-1-s -- all indices static.
    for j in range(chunk):
        jb = chunk - 1 - j
        g_f = gf_ref[j * batch:(j + 1) * batch, :] + jnp.dot(
            h_f.astype(jnp.bfloat16), whh_f, preferred_element_type=jnp.float32)
        g_b = gb_ref[jb * batch:(jb + 1) * batch, :] + jnp.dot(
            h_b.astype(jnp.bfloat16), whh_b, preferred_element_type=jnp.float32)
        hf_new, cf_new = lstm_gates(g_f, c_f)
        hb_new, cb_new = lstm_gates(g_b, c_b)
        if needs_mask:                   # ragged tail: masked steps keep state
            s = ci * chunk + j
            vf = s < seq_len
            vb = s >= (t_pad - seq_len)
            hf_new = jnp.where(vf, hf_new, h_f)
            cf_new = jnp.where(vf, cf_new, c_f)
            hb_new = jnp.where(vb, hb_new, h_b)
            cb_new = jnp.where(vb, cb_new, c_b)
        h_f, c_f = hf_new, cf_new
        h_b, c_b = hb_new, cb_new

    hf_sc[...] = h_f
    cf_sc[...] = c_f
    hb_sc[...] = h_b
    cb_sc[...] = c_b

    @pl.when(ci == pl.num_programs(0) - 1)
    def _head():
        # fc1 head folded into the last chunk: concat(h_f,h_b) @ W_fc + b
        out_ref[...] = (jnp.dot(h_f, wfc_f_ref[...], preferred_element_type=jnp.float32)
                        + jnp.dot(h_b, wfc_b_ref[...], preferred_element_type=jnp.float32)
                        + bfc_ref[...])


# ---------------------------------------------------------------------------
# Full mmWavoice forward
# ---------------------------------------------------------------------------
@functools.partial(jax.jit, static_argnames=("is_training",))
def mmwavoice_forward(voice, mmwave, batch_label, params, is_training=True):
    # batch_label is unused in the PyTorch forward; kept for interface parity.
    del batch_label, is_training
    B, T, F = voice.shape
    assert T % 2 == 0, "time dimension must be even for the x2 time reduction"
    T_r = T // 2
    twoF = 2 * F
    H = params["whh_f"].shape[0]
    C = params["wfc"].shape[1]
    G4 = _round_up(4 * H, 128)           # total gate width padded to full lanes

    chunk1, nc1, chunk2, nc2, t_pad = _pick_chunks(T_r, B, twoF, G4)

    # ---- weight preprocessing (tiny, one XLA pass over the weights) --------
    def pad_last(w):
        pad = G4 - w.shape[-1]
        return jnp.pad(w, [(0, 0)] * (w.ndim - 1) + [(0, pad)]) if pad else w

    wih_f = pad_last(params["wih_f"]).astype(jnp.bfloat16)    # (2F, G4)
    wih_b = pad_last(params["wih_b"]).astype(jnp.bfloat16)
    bias_f = pad_last(params["b_f"])                           # (1, G4)
    bias_b = pad_last(params["b_b"])
    whh_f = pad_last(params["whh_f"]).astype(jnp.bfloat16)    # (H, G4)
    whh_b = pad_last(params["whh_b"]).astype(jnp.bfloat16)
    wfc_f = params["wfc"][:H]                                  # (H, C)
    wfc_b = params["wfc"][H:]                                  # (H, C)
    bfc = params["bfc"]                                        # (1, C)
    wa2 = jnp.concatenate([params["wa"].reshape(1, F)] * 2, axis=-1)   # (1, 2F)
    wb2 = jnp.concatenate([params["wb"].reshape(1, F)] * 2, axis=-1)

    # ---- time reduction (free reshape) + time-major flatten (tiny transpose) ---
    v_tm = jnp.transpose(voice.reshape(B, T_r, twoF), (1, 0, 2))    # (T_r, B, 2F)
    m_tm = jnp.transpose(mmwave.reshape(B, T_r, twoF), (1, 0, 2))
    if t_pad != T_r:
        v_tm = jnp.pad(v_tm, ((0, t_pad - T_r), (0, 0), (0, 0)))
        m_tm = jnp.pad(m_tm, ((0, t_pad - T_r), (0, 0), (0, 0)))
    v_flat = v_tm.reshape(t_pad * B, twoF)     # row = t*B + b, sublane-dense
    m_flat = m_tm.reshape(t_pad * B, twoF)

    # ---- kernel 1: fusion + hoisted dual-direction input projection --------
    gates_f, gates_b = pl.pallas_call(
        _fuse_project_kernel,
        out_shape=(jax.ShapeDtypeStruct((t_pad * B, G4), jnp.float32),
                   jax.ShapeDtypeStruct((t_pad * B, G4), jnp.float32)),
        grid=(nc1,),
        in_specs=[
            pl.BlockSpec((chunk1 * B, twoF), lambda c: (c, 0)),
            pl.BlockSpec((chunk1 * B, twoF), lambda c: (c, 0)),
            pl.BlockSpec((1, twoF), lambda c: (0, 0)),
            pl.BlockSpec((1, twoF), lambda c: (0, 0)),
            pl.BlockSpec((twoF, G4), lambda c: (0, 0)),
            pl.BlockSpec((twoF, G4), lambda c: (0, 0)),
            pl.BlockSpec((1, G4), lambda c: (0, 0)),
            pl.BlockSpec((1, G4), lambda c: (0, 0)),
        ],
        out_specs=(pl.BlockSpec((chunk1 * B, G4), lambda c: (c, 0)),
                   pl.BlockSpec((chunk1 * B, G4), lambda c: (c, 0))),
        compiler_params=pltpu.CompilerParams(dimension_semantics=("parallel",)),
    )(v_flat, m_flat, wa2, wb2, wih_f, wih_b, bias_f, bias_b)

    # ---- kernel 2: interleaved bidirectional recurrence + fc1 head ---------
    # Forward gates streamed front-to-back, backward gates back-to-front (each
    # stream is read from HBM exactly once); output block is resident across
    # the grid and written only on the last chunk.
    out = pl.pallas_call(
        functools.partial(_bilstm_fc_kernel, batch=B, chunk=chunk2, hidden=H,
                          seq_len=T_r, t_pad=t_pad),
        out_shape=jax.ShapeDtypeStruct((B, C), jnp.float32),
        grid=(nc2,),
        in_specs=[
            pl.BlockSpec((chunk2 * B, G4), lambda c: (c, 0)),
            pl.BlockSpec((chunk2 * B, G4), lambda c: (nc2 - 1 - c, 0)),
            pl.BlockSpec((H, G4), lambda c: (0, 0)),
            pl.BlockSpec((H, G4), lambda c: (0, 0)),
            pl.BlockSpec((H, C), lambda c: (0, 0)),
            pl.BlockSpec((H, C), lambda c: (0, 0)),
            pl.BlockSpec((1, C), lambda c: (0, 0)),
        ],
        out_specs=pl.BlockSpec((B, C), lambda c: (0, 0)),
        scratch_shapes=[pltpu.VMEM((B, H), jnp.float32) for _ in range(4)],
        compiler_params=pltpu.CompilerParams(dimension_semantics=("arbitrary",)),
    )(gates_f, gates_b, whh_f, whh_b, wfc_f, wfc_b, bfc)
    return out


# ---------------------------------------------------------------------------
# Pure-JAX reference (same math; mxu_dtype=bf16 mirrors the kernel's MXU casts)
# ---------------------------------------------------------------------------
def reference_forward(voice, mmwave, params, mxu_dtype=jnp.float32):
    def mm(a, b):
        return jnp.dot(a.astype(mxu_dtype), b.astype(mxu_dtype),
                       preferred_element_type=jnp.float32)

    feat = jnp.maximum(voice * params["wa"] + mmwave * params["wb"], 0.0)
    B, T, F = feat.shape
    x = feat.reshape(B, T // 2, 2 * F)
    x_tm = jnp.transpose(x, (1, 0, 2))            # (T_r, B, 2F)
    H = params["whh_f"].shape[0]

    def run(seq, wih, whh, b):
        gin = mm(seq.reshape(-1, seq.shape[-1]), wih)
        gin = gin.reshape(seq.shape[0], B, 4 * H) + b

        def step(carry, gt):
            h, c = carry
            g = gt + mm(h, whh)
            i = jax.nn.sigmoid(g[:, :H])
            f = jax.nn.sigmoid(g[:, H:2 * H])
            gg = jnp.tanh(g[:, 2 * H:3 * H])
            o = jax.nn.sigmoid(g[:, 3 * H:])
            c = f * c + i * gg
            h = o * jnp.tanh(c)
            return (h, c), None

        init = (jnp.zeros((B, H), jnp.float32), jnp.zeros((B, H), jnp.float32))
        (h, _), _ = jax.lax.scan(step, init, gin)
        return h

    h_f = run(x_tm, params["wih_f"], params["whh_f"], params["b_f"])
    h_b = run(x_tm[::-1], params["wih_b"], params["whh_b"], params["b_b"])
    out = jnp.concatenate([h_f, h_b], axis=-1) @ params["wfc"] + params["bfc"]
    return out


# ---------------------------------------------------------------------------
def make_params(key, F, H, C):
    ks = jax.random.split(key, 10)
    s = 0.08
    return {
        # fusion stand-in
        "wa": jax.random.normal(ks[0], (1, 1, F), jnp.float32) * s + 1.0,
        "wb": jax.random.normal(ks[1], (1, 1, F), jnp.float32) * s + 1.0,
        # forward LSTM (gate order i, f, g, o; bias = b_ih + b_hh)
        "wih_f": jax.random.normal(ks[2], (2 * F, 4 * H), jnp.float32) * s,
        "whh_f": jax.random.normal(ks[3], (H, 4 * H), jnp.float32) * s,
        "b_f": jax.random.normal(ks[4], (1, 4 * H), jnp.float32) * s,
        # backward LSTM
        "wih_b": jax.random.normal(ks[5], (2 * F, 4 * H), jnp.float32) * s,
        "whh_b": jax.random.normal(ks[6], (H, 4 * H), jnp.float32) * s,
        "b_b": jax.random.normal(ks[7], (1, 4 * H), jnp.float32) * s,
        # fc1
        "wfc": jax.random.normal(ks[8], (2 * H, C), jnp.float32) * s,
        "bfc": jax.random.normal(ks[9], (1, C), jnp.float32) * s,
    }


if __name__ == "__main__":
    B, T, F = 2, 32, 16         # batch, timesteps (even), feature dim
    H, C = 32, 4                # LSTM hidden dim, num_classes

    key = jax.random.PRNGKey(0)
    k_v, k_m, k_l, k_p = jax.random.split(key, 4)
    voice = jax.random.normal(k_v, (B, T, F), jnp.float32)
    mmwave = jax.random.normal(k_m, (B, T, F), jnp.float32)
    batch_label = jax.random.randint(k_l, (B,), 0, C)
    params = make_params(k_p, F, H, C)

    out = jax.block_until_ready(mmwavoice_forward(voice, mmwave, batch_label, params))
    assert out.shape == (B, C) and out.dtype == jnp.float32

    # tight check against a reference mirroring the bf16 MXU casts,
    # loose check against the full-f32 reference.
    ref_bf16 = jax.block_until_ready(reference_forward(voice, mmwave, params, jnp.bfloat16))
    ref_f32 = jax.block_until_ready(reference_forward(voice, mmwave, params, jnp.float32))
    np.testing.assert_allclose(np.asarray(out), np.asarray(ref_bf16), rtol=1e-2, atol=1e-2)
    np.testing.assert_allclose(np.asarray(out), np.asarray(ref_f32), rtol=5e-2, atol=2e-2)
    print("KERNEL_OK")
</pallas_src>

<mosaic_0001>
module attributes {stable_mosaic.version = 11 : i64} {
  func.func @_fuse_project_kernel(%arg0: i32, %arg1: memref<32x32xf32, #tpu.memory_space<vmem>>, %arg2: memref<32x32xf32, #tpu.memory_space<vmem>>, %arg3: memref<1x32xf32, #tpu.memory_space<vmem>>, %arg4: memref<1x32xf32, #tpu.memory_space<vmem>>, %arg5: memref<32x128xbf16, #tpu.memory_space<vmem>>, %arg6: memref<32x128xbf16, #tpu.memory_space<vmem>>, %arg7: memref<1x128xf32, #tpu.memory_space<vmem>>, %arg8: memref<1x128xf32, #tpu.memory_space<vmem>>, %arg9: memref<32x128xf32, #tpu.memory_space<vmem>>, %arg10: memref<32x128xf32, #tpu.memory_space<vmem>>) attributes {dimension_semantics = [#tpu.dimension_semantics<parallel>], iteration_bounds = array<i64: 1>, scalar_prefetch = 0 : i64, scratch_operands = 0 : i64, tpu.core_type = #tpu.core_type<tc>, window_params = [{transform_indices = @transform_0, window_bounds = array<i64: 32, 32>}, {transform_indices = @transform_1, window_bounds = array<i64: 32, 32>}, {pipeline_mode = #tpu.pipeline_mode<synchronous>, transform_indices = @transform_2, window_bounds = array<i64: 1, 32>}, {pipeline_mode = #tpu.pipeline_mode<synchronous>, transform_indices = @transform_3, window_bounds = array<i64: 1, 32>}, {pipeline_mode = #tpu.pipeline_mode<synchronous>, transform_indices = @transform_4, window_bounds = array<i64: 32, 128>}, {pipeline_mode = #tpu.pipeline_mode<synchronous>, transform_indices = @transform_5, window_bounds = array<i64: 32, 128>}, {pipeline_mode = #tpu.pipeline_mode<synchronous>, transform_indices = @transform_6, window_bounds = array<i64: 1, 128>}, {pipeline_mode = #tpu.pipeline_mode<synchronous>, transform_indices = @transform_7, window_bounds = array<i64: 1, 128>}, {transform_indices = @transform_8, window_bounds = array<i64: 32, 128>}, {transform_indices = @transform_9, window_bounds = array<i64: 32, 128>}]} {
    %c0 = arith.constant 0 : index
    %c0_0 = arith.constant 0 : index
    %0 = vector.load %arg1[%c0, %c0_0] : memref<32x32xf32, #tpu.memory_space<vmem>>, vector<32x32xf32>
    %c0_1 = arith.constant 0 : index
    %c0_2 = arith.constant 0 : index
    %1 = vector.load %arg3[%c0_1, %c0_2] : memref<1x32xf32, #tpu.memory_space<vmem>>, vector<1x32xf32>
    %2 = vector.broadcast %1 : vector<1x32xf32> to vector<32x32xf32>
    %3 = arith.mulf %0, %2 : vector<32x32xf32>
    %c0_3 = arith.constant 0 : index
    %c0_4 = arith.constant 0 : index
    %4 = vector.load %arg2[%c0_3, %c0_4] : memref<32x32xf32, #tpu.memory_space<vmem>>, vector<32x32xf32>
    %c0_5 = arith.constant 0 : index
    %c0_6 = arith.constant 0 : index
    %5 = vector.load %arg4[%c0_5, %c0_6] : memref<1x32xf32, #tpu.memory_space<vmem>>, vector<1x32xf32>
    %6 = vector.broadcast %5 : vector<1x32xf32> to vector<32x32xf32>
    %7 = arith.mulf %4, %6 : vector<32x32xf32>
    %8 = arith.addf %3, %7 : vector<32x32xf32>
    %cst = arith.constant 0.000000e+00 : f32
    %9 = vector.broadcast %cst : f32 to vector<32x32xf32>
    %10 = arith.maximumf %8, %9 : vector<32x32xf32>
    %11 = arith.truncf %10 : vector<32x32xf32> to vector<32x32xbf16>
    %c0_7 = arith.constant 0 : index
    %c0_8 = arith.constant 0 : index
    %12 = vector.load %arg5[%c0_7, %c0_8] : memref<32x128xbf16, #tpu.memory_space<vmem>>, vector<32x128xbf16>
    %cst_9 = arith.constant dense<0.000000e+00> : vector<32x128xf32>
    %13 = tpu.matmul %11, %12, %cst_9 {dimension_numbers = #tpu.dot_dimension_numbers<[1], [0], [0], [1], [0, 0, 1, 1], [], []>} : vector<32x32xbf16>, vector<32x128xbf16>, vector<32x128xf32> -> vector<32x128xf32>
    %c0_10 = arith.constant 0 : index
    %c0_11 = arith.constant 0 : index
    %14 = vector.load %arg7[%c0_10, %c0_11] : memref<1x128xf32, #tpu.memory_space<vmem>>, vector<1x128xf32>
    %15 = vector.broadcast %14 : vector<1x128xf32> to vector<32x128xf32>
    %16 = arith.addf %13, %15 : vector<32x128xf32>
    %c0_12 = arith.constant 0 : index
    %c0_13 = arith.constant 0 : index
    %17 = vector.load %arg9[%c0_12, %c0_13] : memref<32x128xf32, #tpu.memory_space<vmem>>, vector<32x128xf32>
    tpu.vector_store %arg9[%c0_12, %c0_13], %16 {strides = array<i32>} : memref<32x128xf32, #tpu.memory_space<vmem>>, vector<32x128xf32>,
    %c0_14 = arith.constant 0 : index
    %c0_15 = arith.constant 0 : index
    %18 = vector.load %arg6[%c0_14, %c0_15] : memref<32x128xbf16, #tpu.memory_space<vmem>>, vector<32x128xbf16>
    %cst_16 = arith.constant dense<0.000000e+00> : vector<32x128xf32>
    %19 = tpu.matmul %11, %18, %cst_16 {dimension_numbers = #tpu.dot_dimension_numbers<[1], [0], [0], [1], [0, 0, 1, 1], [], []>} : vector<32x32xbf16>, vector<32x128xbf16>, vector<32x128xf32> -> vector<32x128xf32>
    %c0_17 = arith.constant 0 : index
    %c0_18 = arith.constant 0 : index
    %20 = vector.load %arg8[%c0_17, %c0_18] : memref<1x128xf32, #tpu.memory_space<vmem>>, vector<1x128xf32>
    %21 = vector.broadcast %20 : vector<1x128xf32> to vector<32x128xf32>
    %22 = arith.addf %19, %21 : vector<32x128xf32>
    %c0_19 = arith.constant 0 : index
    %c0_20 = arith.constant 0 : index
    %23 = vector.load %arg10[%c0_19, %c0_20] : memref<32x128xf32, #tpu.memory_space<vmem>>, vector<32x128xf32>
    tpu.vector_store %arg10[%c0_19, %c0_20], %22 {strides = array<i32>} : memref<32x128xf32, #tpu.memory_space<vmem>>, vector<32x128xf32>,
    return
  }
  func.func @transform_0(%arg0: i32) -> (i32, i32) {
    %c0_i32 = arith.constant 0 : i32
    %c0_i32_0 = arith.constant 0 : i32
    return %arg0, %c0_i32 : i32, i32
  }
  func.func @transform_1(%arg0: i32) -> (i32, i32) {
    %c0_i32 = arith.constant 0 : i32
    %c0_i32_0 = arith.constant 0 : i32
    return %arg0, %c0_i32 : i32, i32
  }
  func.func @transform_2(%arg0: i32) -> (i32, i32) {
    %c0_i32 = arith.constant 0 : i32
    %c0_i32_0 = arith.constant 0 : i32
    %c0_i32_1 = arith.constant 0 : i32
    return %c0_i32, %c0_i32_0 : i32, i32
  }
  func.func @transform_3(%arg0: i32) -> (i32, i32) {
    %c0_i32 = arith.constant 0 : i32
    %c0_i32_0 = arith.constant 0 : i32
    %c0_i32_1 = arith.constant 0 : i32
    return %c0_i32, %c0_i32_0 : i32, i32
  }
  func.func @transform_4(%arg0: i32) -> (i32, i32) {
    %c0_i32 = arith.constant 0 : i32
    %c0_i32_0 = arith.constant 0 : i32
    %c0_i32_1 = arith.constant 0 : i32
    return %c0_i32, %c0_i32_0 : i32, i32
  }
  func.func @transform_5(%arg0: i32) -> (i32, i32) {
    %c0_i32 = arith.constant 0 : i32
    %c0_i32_0 = arith.constant 0 : i32
    %c0_i32_1 = arith.constant 0 : i32
    return %c0_i32, %c0_i32_0 : i32, i32
  }
  func.func @transform_6(%arg0: i32) -> (i32, i32) {
    %c0_i32 = arith.constant 0 : i32
    %c0_i32_0 = arith.constant 0 : i32
    %c0_i32_1 = arith.constant 0 : i32
    return %c0_i32, %c0_i32_0 : i32, i32
  }
  func.func @transform_7(%arg0: i32) -> (i32, i32) {
    %c0_i32 = arith.constant 0 : i32
    %c0_i32_0 = arith.constant 0 : i32
    %c0_i32_1 = arith.constant 0 : i32
    return %c0_i32, %c0_i32_0 : i32, i32
  }
  func.func @transform_8(%arg0: i32) -> (i32, i32) {
    %c0_i32 = arith.constant 0 : i32
    %c0_i32_0 = arith.constant 0 : i32
    return %arg0, %c0_i32 : i32, i32
  }
  func.func @transform_9(%arg0: i32) -> (i32, i32) {
    %c0_i32 = arith.constant 0 : i32
    %c0_i32_0 = arith.constant 0 : i32
    return %arg0, %c0_i32 : i32, i32
  }
}

module attributes {stable_mosaic.version = 11 : i64} {
  func.func @_bilstm_fc_kernel(%arg0: i32, %arg1: memref<32x128xf32, #tpu.memory_space<vmem>>, %arg2: memref<32x128xf32, #tpu.memory_space<vmem>>, %arg3: memref<32x128xbf16, #tpu.memory_space<vmem>>, %arg4: memref<32x128xbf16, #tpu.memory_space<vmem>>, %arg5: memref<32x4xf32, #tpu.memory_space<vmem>>, %arg6: memref<32x4xf32, #tpu.memory_space<vmem>>, %arg7: memref<1x4xf32, #tpu.memory_space<vmem>>, %arg8: memref<2x4xf32, #tpu.memory_space<vmem>>, %arg9: memref<2x32xf32, #tpu.memory_space<vmem>>, %arg10: memref<2x32xf32, #tpu.memory_space<vmem>>, %arg11: memref<2x32xf32, #tpu.memory_space<vmem>>, %arg12: memref<2x32xf32, #tpu.memory_space<vmem>>) attributes {dimension_semantics = [#tpu.dimension_semantics<arbitrary>], iteration_bounds = array<i64: 1>, scalar_prefetch = 0 : i64, scratch_operands = 4 : i64, tpu.core_type = #tpu.core_type<tc>, window_params = [{transform_indices = @transform_0, window_bounds = array<i64: 32, 128>}, {transform_indices = @transform_1, window_bounds = array<i64: 32, 128>}, {pipeline_mode = #tpu.pipeline_mode<synchronous>, transform_indices = @transform_2, window_bounds = array<i64: 32, 128>}, {pipeline_mode = #tpu.pipeline_mode<synchronous>, transform_indices = @transform_3, window_bounds = array<i64: 32, 128>}, {pipeline_mode = #tpu.pipeline_mode<synchronous>, transform_indices = @transform_4, window_bounds = array<i64: 32, 4>}, {pipeline_mode = #tpu.pipeline_mode<synchronous>, transform_indices = @transform_5, window_bounds = array<i64: 32, 4>}, {pipeline_mode = #tpu.pipeline_mode<synchronous>, transform_indices = @transform_6, window_bounds = array<i64: 1, 4>}, {pipeline_mode = #tpu.pipeline_mode<synchronous>, transform_indices = @transform_7, window_bounds = array<i64: 2, 4>}]} {
    %c0_i32 = arith.constant 0 : i32
    %0 = arith.cmpi eq, %arg0, %c0_i32 : i32
    %1 = arith.extui %0 : i1 to i32
    %c0_i32_0 = arith.constant 0 : i32
    %2 = arith.cmpi ne, %1, %c0_i32_0 : i32
    scf.if %2 {
      %cst_198 = arith.constant 0.000000e+00 : f32
      %944 = vector.broadcast %cst_198 : f32 to vector<2x32xf32>
      %c0_199 = arith.constant 0 : index
      %c0_200 = arith.constant 0 : index
      %945 = vector.load %arg9[%c0_199, %c0_200] : memref<2x32xf32, #tpu.memory_space<vmem>>, vector<2x32xf32>
      tpu.vector_store %arg9[%c0_199, %c0_200], %944 {strides = array<i32>} : memref<2x32xf32, #tpu.memory_space<vmem>>, vector<2x32xf32>,
      %cst_201 = arith.constant 0.000000e+00 : f32
      %946 = vector.broadcast %cst_201 : f32 to vector<2x32xf32>
      %c0_202 = arith.constant 0 : index
      %c0_203 = arith.constant 0 : index
      %947 = vector.load %arg10[%c0_202, %c0_203] : memref<2x32xf32, #tpu.memory_space<vmem>>, vector<2x32xf32>
      tpu.vector_store %arg10[%c0_202, %c0_203], %946 {strides = array<i32>} : memref<2x32xf32, #tpu.memory_space<vmem>>, vector<2x32xf32>,
      %cst_204 = arith.constant 0.000000e+00 : f32
      %948 = vector.broadcast %cst_204 : f32 to vector<2x32xf32>
      %c0_205 = arith.constant 0 : index
      %c0_206 = arith.constant 0 : index
      %949 = vector.load %arg11[%c0_205, %c0_206] : memref<2x32xf32, #tpu.memory_space<vmem>>, vector<2x32xf32>
      tpu.vector_store %arg11[%c0_205, %c0_206], %948 {strides = array<i32>} : memref<2x32xf32, #tpu.memory_space<vmem>>, vector<2x32xf32>,
      %cst_207 = arith.constant 0.000000e+00 : f32
      %950 = vector.broadcast %cst_207 : f32 to vector<2x32xf32>
      %c0_208 = arith.constant 0 : index
      %c0_209 = arith.constant 0 : index
      %951 = vector.load %arg12[%c0_208, %c0_209] : memref<2x32xf32, #tpu.memory_space<vmem>>, vector<2x32xf32>
      tpu.vector_store %arg12[%c0_208, %c0_209], %950 {strides = array<i32>} : memref<2x32xf32, #tpu.memory_space<vmem>>, vector<2x32xf32>,
    } else {
    }
    %c0 = arith.constant 0 : index
    %c0_1 = arith.constant 0 : index
    %3 = vector.load %arg3[%c0, %c0_1] : memref<32x128xbf16, #tpu.memory_space<vmem>>, vector<32x128xbf16>
    %c0_2 = arith.constant 0 : index
    %c0_3 = arith.constant 0 : index
    %4 = vector.load %arg4[%c0_2, %c0_3] : memref<32x128xbf16, #tpu.memory_space<vmem>>, vector<32x128xbf16>
    %c0_4 = arith.constant 0 : index
    %c0_5 = arith.constant 0 : index
    %5 = vector.load %arg9[%c0_4, %c0_5] : memref<2x32xf32, #tpu.memory_space<vmem>>, vector<2x32xf32>
    %c0_6 = arith.constant 0 : index
    %c0_7 = arith.constant 0 : index
    %6 = vector.load %arg10[%c0_6, %c0_7] : memref<2x32xf32, #tpu.memory_space<vmem>>, vector<2x32xf32>
    %c0_8 = arith.constant 0 : index
    %c0_9 = arith.constant 0 : index
    %7 = vector.load %arg11[%c0_8, %c0_9] : memref<2x32xf32, #tpu.memory_space<vmem>>, vector<2x32xf32>
    %c0_10 = arith.constant 0 : index
    %c0_11 = arith.constant 0 : index
    %8 = vector.load %arg12[%c0_10, %c0_11] : memref<2x32xf32, #tpu.memory_space<vmem>>, vector<2x32xf32>
    %c0_12 = arith.constant 0 : index
    %c0_13 = arith.constant 0 : index
    %9 = vector.load %arg1[%c0_12, %c0_13] : memref<32x128xf32, #tpu.memory_space<vmem>>, vector<2x128xf32>
    %10 = arith.truncf %5 : vector<2x32xf32> to vector<2x32xbf16>
    %cst = arith.constant dense<0.000000e+00> : vector<2x128xf32>
    %11 = tpu.matmul %10, %3, %cst {dimension_numbers = #tpu.dot_dimension_numbers<[1], [0], [0], [1], [0, 0, 1, 1], [], []>} : vector<2x32xbf16>, vector<32x128xbf16>, vector<2x128xf32> -> vector<2x128xf32>
    %12 = arith.addf %9, %11 : vector<2x128xf32>
    %c30 = arith.constant 30 : index
    %c0_14 = arith.constant 0 : index
    %13 = vector.load %arg2[%c30, %c0_14] : memref<32x128xf32, #tpu.memory_space<vmem>>, vector<2x128xf32>
    %14 = arith.truncf %7 : vector<2x32xf32> to vector<2x32xbf16>
    %cst_15 = arith.constant dense<0.000000e+00> : vector<2x128xf32>
    %15 = tpu.matmul %14, %4, %cst_15 {dimension_numbers = #tpu.dot_dimension_numbers<[1], [0], [0], [1], [0, 0, 1, 1], [], []>} : vector<2x32xbf16>, vector<32x128xbf16>, vector<2x128xf32> -> vector<2x128xf32>
    %16 = arith.addf %13, %15 : vector<2x128xf32>
    %17 = vector.extract_strided_slice %12 {offsets = [0, 0], sizes = [2, 32], strides = [1, 1]} : vector<2x128xf32> to vector<2x32xf32>
    %18 = arith.negf %17 : vector<2x32xf32>
    %19 = math.exp %18 : vector<2x32xf32>
    %cst_16 = arith.constant 1.000000e+00 : f32
    %20 = vector.broadcast %cst_16 : f32 to vector<2x32xf32>
    %21 = arith.addf %20, %19 : vector<2x32xf32>
    %22 = arith.divf %20, %21 : vector<2x32xf32>
    %23 = vector.extract_strided_slice %12 {offsets = [0, 32], sizes = [2, 32], strides = [1, 1]} : vector<2x128xf32> to vector<2x32xf32>
    %24 = arith.negf %23 : vector<2x32xf32>
    %25 = math.exp %24 : vector<2x32xf32>
    %cst_17 = arith.constant 1.000000e+00 : f32
    %26 = vector.broadcast %cst_17 : f32 to vector<2x32xf32>
    %27 = arith.addf %26, %25 : vector<2x32xf32>
    %28 = arith.divf %26, %27 : vector<2x32xf32>
    %29 = vector.extract_strided_slice %12 {offsets = [0, 64], sizes = [2, 32], strides = [1, 1]} : vector<2x128xf32> to vector<2x32xf32>
    %30 = math.tanh %29 : vector<2x32xf32>
    %31 = vector.extract_strided_slice %12 {offsets = [0, 96], sizes = [2, 32], strides = [1, 1]} : vector<2x128xf32> to vector<2x32xf32>
    %32 = arith.negf %31 : vector<2x32xf32>
    %33 = math.exp %32 : vector<2x32xf32>
    %cst_18 = arith.constant 1.000000e+00 : f32
    %34 = vector.broadcast %cst_18 : f32 to vector<2x32xf32>
    %35 = arith.addf %34, %33 : vector<2x32xf32>
    %36 = arith.divf %34, %35 : vector<2x32xf32>
    %37 = arith.mulf %28, %6 : vector<2x32xf32>
    %38 = arith.mulf %22, %30 : vector<2x32xf32>
    %39 = arith.addf %37, %38 : vector<2x32xf32>
    %40 = math.tanh %39 : vector<2x32xf32>
    %41 = arith.mulf %36, %40 : vector<2x32xf32>
    %42 = vector.extract_strided_slice %16 {offsets = [0, 0], sizes = [2, 32], strides = [1, 1]} : vector<2x128xf32> to vector<2x32xf32>
    %43 = arith.negf %42 : vector<2x32xf32>
    %44 = math.exp %43 : vector<2x32xf32>
    %cst_19 = arith.constant 1.000000e+00 : f32
    %45 = vector.broadcast %cst_19 : f32 to vector<2x32xf32>
    %46 = arith.addf %45, %44 : vector<2x32xf32>
    %47 = arith.divf %45, %46 : vector<2x32xf32>
    %48 = vector.extract_strided_slice %16 {offsets = [0, 32], sizes = [2, 32], strides = [1, 1]} : vector<2x128xf32> to vector<2x32xf32>
    %49 = arith.negf %48 : vector<2x32xf32>
    %50 = math.exp %49 : vector<2x32xf32>
    %cst_20 = arith.constant 1.000000e+00 : f32
    %51 = vector.broadcast %cst_20 : f32 to vector<2x32xf32>
    %52 = arith.addf %51, %50 : vector<2x32xf32>
    %53 = arith.divf %51, %52 : vector<2x32xf32>
    %54 = vector.extract_strided_slice %16 {offsets = [0, 64], sizes = [2, 32], strides = [1, 1]} : vector<2x128xf32> to vector<2x32xf32>
    %55 = math.tanh %54 : vector<2x32xf32>
    %56 = vector.extract_strided_slice %16 {offsets = [0, 96], sizes = [2, 32], strides = [1, 1]} : vector<2x128xf32> to vector<2x32xf32>
    %57 = arith.negf %56 : vector<2x32xf32>
    %58 = math.exp %57 : vector<2x32xf32>
    %cst_21 = arith.constant 1.000000e+00 : f32
    %59 = vector.broadcast %cst_21 : f32 to vector<2x32xf32>
    %60 = arith.addf %59, %58 : vector<2x32xf32>
    %61 = arith.divf %59, %60 : vector<2x32xf32>
    %62 = arith.mulf %53, %8 : vector<2x32xf32>
    %63 = arith.mulf %47, %55 : vector<2x32xf32>
    %64 = arith.addf %62, %63 : vector<2x32xf32>
    %65 = math.tanh %64 : vector<2x32xf32>
    %66 = arith.mulf %61, %65 : vector<2x32xf32>
    %c2 = arith.constant 2 : index
    %c0_22 = arith.constant 0 : index
    %67 = vector.load %arg1[%c2, %c0_22] : memref<32x128xf32, #tpu.memory_space<vmem>>, vector<2x128xf32>
    %68 = arith.truncf %41 : vector<2x32xf32> to vector<2x32xbf16>
    %cst_23 = arith.constant dense<0.000000e+00> : vector<2x128xf32>
    %69 = tpu.matmul %68, %3, %cst_23 {dimension_numbers = #tpu.dot_dimension_numbers<[1], [0], [0], [1], [0, 0, 1, 1], [], []>} : vector<2x32xbf16>, vector<32x128xbf16>, vector<2x128xf32> -> vector<2x128xf32>
    %70 = arith.addf %67, %69 : vector<2x128xf32>
    %c28 = arith.constant 28 : index
    %c0_24 = arith.constant 0 : index
    %71 = vector.load %arg2[%c28, %c0_24] : memref<32x128xf32, #tpu.memory_space<vmem>>, vector<2x128xf32>
    %72 = arith.truncf %66 : vector<2x32xf32> to vector<2x32xbf16>
    %cst_25 = arith.constant dense<0.000000e+00> : vector<2x128xf32>
    %73 = tpu.matmul %72, %4, %cst_25 {dimension_numbers = #tpu.dot_dimension_numbers<[1], [0], [0], [1], [0, 0, 1, 1], [], []>} : vector<2x32xbf16>, vector<32x128xbf16>, vector<2x128xf32> -> vector<2x128xf32>
    %74 = arith.addf %71, %73 : vector<2x128xf32>
    %75 = vector.extract_strided_slice %70 {offsets = [0, 0], sizes = [2, 32], strides = [1, 1]} : vector<2x128xf32> to vector<2x32xf32>
    %76 = arith.negf %75 : vector<2x32xf32>
    %77 = math.exp %76 : vector<2x32xf32>
    %cst_26 = arith.constant 1.000000e+00 : f32
    %78 = vector.broadcast %cst_26 : f32 to vector<2x32xf32>
    %79 = arith.addf %78, %77 : vector<2x32xf32>
    %80 = arith.divf %78, %79 : vector<2x32xf32>
    %81 = vector.extract_strided_slice %70 {offsets = [0, 32], sizes = [2, 32], strides = [1, 1]} : vector<2x128xf32> to vector<2x32xf32>
    %82 = arith.negf %81 : vector<2x32xf32>
    %83 = math.exp %82 : vector<2x32xf32>
    %cst_27 = arith.constant 1.000000e+00 : f32
    %84 = vector.broadcast %cst_27 : f32 to vector<2x32xf32>
    %85 = arith.addf %84, %83 : vector<2x32xf32>
    %86 = arith.divf %84, %85 : vector<2x32xf32>
    %87 = vector.extract_strided_slice %70 {offsets = [0, 64], sizes = [2, 32], strides = [1, 1]} : vector<2x128xf32> to vector<2x32xf32>
    %88 = math.tanh %87 : vector<2x32xf32>
    %89 = vector.extract_strided_slice %70 {offsets = [0, 96], sizes = [2, 32], strides = [1, 1]} : vector<2x128xf32> to vector<2x32xf32>
    %90 = arith.negf %89 : vector<2x32xf32>
    %91 = math.exp %90 : vector<2x32xf32>
    %cst_28 = arith.constant 1.000000e+00 : f32
    %92 = vector.broadcast %cst_28 : f32 to vector<2x32xf32>
    %93 = arith.addf %92, %91 : vector<2x32xf32>
    %94 = arith.divf %92, %93 : vector<2x32xf32>
    %95 = arith.mulf %86, %39 : vector<2x32xf32>
    %96 = arith.mulf %80, %88 : vector<2x32xf32>
    %97 = arith.addf %95, %96 : vector<2x32xf32>
    %98 = math.tanh %97 : vector<2x32xf32>
    %99 = arith.mulf %94, %98 : vector<2x32xf32>
    %100 = vector.extract_strided_slice %74 {offsets = [0, 0], sizes = [2, 32], strides = [1, 1]} : vector<2x128xf32> to vector<2x32xf32>
    %101 = arith.negf %100 : vector<2x32xf32>
    %102 = math.exp %101 : vector<2x32xf32>
    %cst_29 = arith.constant 1.000000e+00 : f32
    %103 = vector.broadcast %cst_29 : f32 to vector<2x32xf32>
    %104 = arith.addf %103, %102 : vector<2x32xf32>
    %105 = arith.divf %103, %104 : vector<2x32xf32>
    %106 = vector.extract_strided_slice %74 {offsets = [0, 32], sizes = [2, 32], strides = [1, 1]} : vector<2x128xf32> to vector<2x32xf32>
    %107 = arith.negf %106 : vector<2x32xf32>
    %108 = math.exp %107 : vector<2x32xf32>
    %cst_30 = arith.constant 1.000000e+00 : f32
    %109 = vector.broadcast %cst_30 : f32 to vector<2x32xf32>
    %110 = arith.addf %109, %108 : vector<2x32xf32>
    %111 = arith.divf %109, %110 : vector<2x32xf32>
    %112 = vector.extract_strided_slice %74 {offsets = [0, 64], sizes = [2, 32], strides = [1, 1]} : vector<2x128xf32> to vector<2x32xf32>
    %113 = math.tanh %112 : vector<2x32xf32>
    %114 = vector.extract_strided_slice %74 {offsets = [0, 96], sizes = [2, 32], strides = [1, 1]} : vector<2x128xf32> to vector<2x32xf32>
    %115 = arith.negf %114 : vector<2x32xf32>
    %116 = math.exp %115 : vector<2x32xf32>
    %cst_31 = arith.constant 1.000000e+00 : f32
    %117 = vector.broadcast %cst_31 : f32 to vector<2x32xf32>
    %118 = arith.addf %117, %116 : vector<2x32xf32>
    %119 = arith.divf %117, %118 : vector<2x32xf32>
    %120 = arith.mulf %111, %64 : vector<2x32xf32>
    %121 = arith.mulf %105, %113 : vector<2x32xf32>
    %122 = arith.addf %120, %121 : vector<2x32xf32>
    %123 = math.tanh %122 : vector<2x32xf32>
    %124 = arith.mulf %119, %123 : vector<2x32xf32>
    %c4 = arith.constant 4 : index
    %c0_32 = arith.constant 0 : index
    %125 = vector.load %arg1[%c4, %c0_32] : memref<32x128xf32, #tpu.memory_space<vmem>>, vector<2x128xf32>
    %126 = arith.truncf %99 : vector<2x32xf32> to vector<2x32xbf16>
    %cst_33 = arith.constant dense<0.000000e+00> : vector<2x128xf32>
    %127 = tpu.matmul %126, %3, %cst_33 {dimension_numbers = #tpu.dot_dimension_numbers<[1], [0], [0], [1], [0, 0, 1, 1], [], []>} : vector<2x32xbf16>, vector<32x128xbf16>, vector<2x128xf32> -> vector<2x128xf32>
    %128 = arith.addf %125, %127 : vector<2x128xf32>
    %c26 = arith.constant 26 : index
    %c0_34 = arith.constant 0 : index
    %129 = vector.load %arg2[%c26, %c0_34] : memref<32x128xf32, #tpu.memory_space<vmem>>, vector<2x128xf32>
    %130 = arith.truncf %124 : vector<2x32xf32> to vector<2x32xbf16>
    %cst_35 = arith.constant dense<0.000000e+00> : vector<2x128xf32>
    %131 = tpu.matmul %130, %4, %cst_35 {dimension_numbers = #tpu.dot_dimension_numbers<[1], [0], [0], [1], [0, 0, 1, 1], [], []>} : vector<2x32xbf16>, vector<32x128xbf16>, vector<2x128xf32> -> vector<2x128xf32>
    %132 = arith.addf %129, %131 : vector<2x128xf32>
    %133 = vector.extract_strided_slice %128 {offsets = [0, 0], sizes = [2, 32], strides = [1, 1]} : vector<2x128xf32> to vector<2x32xf32>
    %134 = arith.negf %133 : vector<2x32xf32>
    %135 = math.exp %134 : vector<2x32xf32>
    %cst_36 = arith.constant 1.000000e+00 : f32
    %136 = vector.broadcast %cst_36 : f32 to vector<2x32xf32>
    %137 = arith.addf %136, %135 : vector<2x32xf32>
    %138 = arith.divf %136, %137 : vector<2x32xf32>
    %139 = vector.extract_strided_slice %128 {offsets = [0, 32], sizes = [2, 32], strides = [1, 1]} : vector<2x128xf32> to vector<2x32xf32>
    %140 = arith.negf %139 : vector<2x32xf32>
    %141 = math.exp %140 : vector<2x32xf32>
    %cst_37 = arith.constant 1.000000e+00 : f32
    %142 = vector.broadcast %cst_37 : f32 to vector<2x32xf32>
    %143 = arith.addf %142, %141 : vector<2x32xf32>
    %144 = arith.divf %142, %143 : vector<2x32xf32>
    %145 = vector.extract_strided_slice %128 {offsets = [0, 64], sizes = [2, 32], strides = [1, 1]} : vector<2x128xf32> to vector<2x32xf32>
    %146 = math.tanh %145 : vector<2x32xf32>
    %147 = vector.extract_strided_slice %128 {offsets = [0, 96], sizes = [2, 32], strides = [1, 1]} : vector<2x128xf32> to vector<2x32xf32>
    %148 = arith.negf %147 : vector<2x32xf32>
    %149 = math.exp %148 : vector<2x32xf32>
    %cst_38 = arith.constant 1.000000e+00 : f32
    %150 = vector.broadcast %cst_38 : f32 to vector<2x32xf32>
    %151 = arith.addf %150, %149 : vector<2x32xf32>
    %152 = arith.divf %150, %151 : vector<2x32xf32>
    %153 = arith.mulf %144, %97 : vector<2x32xf32>
    %154 = arith.mulf %138, %146 : vector<2x32xf32>
    %155 = arith.addf %153, %154 : vector<2x32xf32>
    %156 = math.tanh %155 : vector<2x32xf32>
    %157 = arith.mulf %152, %156 : vector<2x32xf32>
    %158 = vector.extract_strided_slice %132 {offsets = [0, 0], sizes = [2, 32], strides = [1, 1]} : vector<2x128xf32> to vector<2x32xf32>
    %159 = arith.negf %158 : vector<2x32xf32>
    %160 = math.exp %159 : vector<2x32xf32>
    %cst_39 = arith.constant 1.000000e+00 : f32
    %161 = vector.broadcast %cst_39 : f32 to vector<2x32xf32>
    %162 = arith.addf %161, %160 : vector<2x32xf32>
    %163 = arith.divf %161, %162 : vector<2x32xf32>
    %164 = vector.extract_strided_slice %132 {offsets = [0, 32], sizes = [2, 32], strides = [1, 1]} : vector<2x128xf32> to vector<2x32xf32>
    %165 = arith.negf %164 : vector<2x32xf32>
    %166 = math.exp %165 : vector<2x32xf32>
    %cst_40 = arith.constant 1.000000e+00 : f32
    %167 = vector.broadcast %cst_40 : f32 to vector<2x32xf32>
    %168 = arith.addf %167, %166 : vector<2x32xf32>
    %169 = arith.divf %167, %168 : vector<2x32xf32>
    %170 = vector.extract_strided_slice %132 {offsets = [0, 64], sizes = [2, 32], strides = [1, 1]} : vector<2x128xf32> to vector<2x32xf32>
    %171 = math.tanh %170 : vector<2x32xf32>
    %172 = vector.extract_strided_slice %132 {offsets = [0, 96], sizes = [2, 32], strides = [1, 1]} : vector<2x128xf32> to vector<2x32xf32>
    %173 = arith.negf %172 : vector<2x32xf32>
    %174 = math.exp %173 : vector<2x32xf32>
    %cst_41 = arith.constant 1.000000e+00 : f32
    %175 = vector.broadcast %cst_41 : f32 to vector<2x32xf32>
    %176 = arith.addf %175, %174 : vector<2x32xf32>
    %177 = arith.divf %175, %176 : vector<2x32xf32>
    %178 = arith.mulf %169, %122 : vector<2x32xf32>
    %179 = arith.mulf %163, %171 : vector<2x32xf32>
    %180 = arith.addf %178, %179 : vector<2x32xf32>
    %181 = math.tanh %180 : vector<2x32xf32>
    %182 = arith.mulf %177, %181 : vector<2x32xf32>
    %c6 = arith.constant 6 : index
    %c0_42 = arith.constant 0 : index
    %183 = vector.load %arg1[%c6, %c0_42] : memref<32x128xf32, #tpu.memory_space<vmem>>, vector<2x128xf32>
    %184 = arith.truncf %157 : vector<2x32xf32> to vector<2x32xbf16>
    %cst_43 = arith.constant dense<0.000000e+00> : vector<2x128xf32>
    %185 = tpu.matmul %184, %3, %cst_43 {dimension_numbers = #tpu.dot_dimension_numbers<[1], [0], [0], [1], [0, 0, 1, 1], [], []>} : vector<2x32xbf16>, vector<32x128xbf16>, vector<2x128xf32> -> vector<2x128xf32>
    %186 = arith.addf %183, %185 : vector<2x128xf32>
    %c24 = arith.constant 24 : index
    %c0_44 = arith.constant 0 : index
    %187 = vector.load %arg2[%c24, %c0_44] : memref<32x128xf32, #tpu.memory_space<vmem>>, vector<2x128xf32>
    %188 = arith.truncf %182 : vector<2x32xf32> to vector<2x32xbf16>
    %cst_45 = arith.constant dense<0.000000e+00> : vector<2x128xf32>
    %189 = tpu.matmul %188, %4, %cst_45 {dimension_numbers = #tpu.dot_dimension_numbers<[1], [0], [0], [1], [0, 0, 1, 1], [], []>} : vector<2x32xbf16>, vector<32x128xbf16>, vector<2x128xf32> -> vector<2x128xf32>
    %190 = arith.addf %187, %189 : vector<2x128xf32>
    %191 = vector.extract_strided_slice %186 {offsets = [0, 0], sizes = [2, 32], strides = [1, 1]} : vector<2x128xf32> to vector<2x32xf32>
    %192 = arith.negf %191 : vector<2x32xf32>
    %193 = math.exp %192 : vector<2x32xf32>
    %cst_46 = arith.constant 1.000000e+00 : f32
    %194 = vector.broadcast %cst_46 : f32 to vector<2x32xf32>
    %195 = arith.addf %194, %193 : vector<2x32xf32>
    %196 = arith.divf %194, %195 : vector<2x32xf32>
    %197 = vector.extract_strided_slice %186 {offsets = [0, 32], sizes = [2, 32], strides = [1, 1]} : vector<2x128xf32> to vector<2x32xf32>
    %198 = arith.negf %197 : vector<2x32xf32>
    %199 = math.exp %198 : vector<2x32xf32>
    %cst_47 = arith.constant 1.000000e+00 : f32
    %200 = vector.broadcast %cst_47 : f32 to vector<2x32xf32>
    %201 = arith.addf %200, %199 : vector<2x32xf32>
    %202 = arith.divf %200, %201 : vector<2x32xf32>
    %203 = vector.extract_strided_slice %186 {offsets = [0, 64], sizes = [2, 32], strides = [1, 1]} : vector<2x128xf32> to vector<2x32xf32>
    %204 = math.tanh %203 : vector<2x32xf32>
    %205 = vector.extract_strided_slice %186 {offsets = [0, 96], sizes = [2, 32], strides = [1, 1]} : vector<2x128xf32> to vector<2x32xf32>
    %206 = arith.negf %205 : vector<2x32xf32>
    %207 = math.exp %206 : vector<2x32xf32>
    %cst_48 = arith.constant 1.000000e+00 : f32
    %208 = vector.broadcast %cst_48 : f32 to vector<2x32xf32>
    %209 = arith.addf %208, %207 : vector<2x32xf32>
    %210 = arith.divf %208, %209 : vector<2x32xf32>
    %211 = arith.mulf %202, %155 : vector<2x32xf32>
    %212 = arith.mulf %196, %204 : vector<2x32xf32>
    %213 = arith.addf %211, %212 : vector<2x32xf32>
    %214 = math.tanh %213 : vector<2x32xf32>
    %215 = arith.mulf %210, %214 : vector<2x32xf32>
    %216 = vector.extract_strided_slice %190 {offsets = [0, 0], sizes = [2, 32], strides = [1, 1]} : vector<2x128xf32> to vector<2x32xf32>
    %217 = arith.negf %216 : vector<2x32xf32>
    %218 = math.exp %217 : vector<2x32xf32>
    %cst_49 = arith.constant 1.000000e+00 : f32
    %219 = vector.broadcast %cst_49 : f32 to vector<2x32xf32>
    %220 = arith.addf %219, %218 : vector<2x32xf32>
    %221 = arith.divf %219, %220 : vector<2x32xf32>
    %222 = vector.extract_strided_slice %190 {offsets = [0, 32], sizes = [2, 32], strides = [1, 1]} : vector<2x128xf32> to vector<2x32xf32>
    %223 = arith.negf %222 : vector<2x32xf32>
    %224 = math.exp %223 : vector<2x32xf32>
    %cst_50 = arith.constant 1.000000e+00 : f32
    %225 = vector.broadcast %cst_50 : f32 to vector<2x32xf32>
    %226 = arith.addf %225, %224 : vector<2x32xf32>
    %227 = arith.divf %225, %226 : vector<2x32xf32>
    %228 = vector.extract_strided_slice %190 {offsets = [0, 64], sizes = [2, 32], strides = [1, 1]} : vector<2x128xf32> to vector<2x32xf32>
    %229 = math.tanh %228 : vector<2x32xf32>
    %230 = vector.extract_strided_slice %190 {offsets = [0, 96], sizes = [2, 32], strides = [1, 1]} : vector<2x128xf32> to vector<2x32xf32>
    %231 = arith.negf %230 : vector<2x32xf32>
    %232 = math.exp %231 : vector<2x32xf32>
    %cst_51 = arith.constant 1.000000e+00 : f32
    %233 = vector.broadcast %cst_51 : f32 to vector<2x32xf32>
    %234 = arith.addf %233, %232 : vector<2x32xf32>
    %235 = arith.divf %233, %234 : vector<2x32xf32>
    %236 = arith.mulf %227, %180 : vector<2x32xf32>
    %237 = arith.mulf %221, %229 : vector<2x32xf32>
    %238 = arith.addf %236, %237 : vector<2x32xf32>
    %239 = math.tanh %238 : vector<2x32xf32>
    %240 = arith.mulf %235, %239 : vector<2x32xf32>
    %c8 = arith.constant 8 : index
    %c0_52 = arith.constant 0 : index
    %241 = vector.load %arg1[%c8, %c0_52] : memref<32x128xf32, #tpu.memory_space<vmem>>, vector<2x128xf32>
    %242 = arith.truncf %215 : vector<2x32xf32> to vector<2x32xbf16>
    %cst_53 = arith.constant dense<0.000000e+00> : vector<2x128xf32>
    %243 = tpu.matmul %242, %3, %cst_53 {dimension_numbers = #tpu.dot_dimension_numbers<[1], [0], [0], [1], [0, 0, 1, 1], [], []>} : vector<2x32xbf16>, vector<32x128xbf16>, vector<2x128xf32> -> vector<2x128xf32>
    %244 = arith.addf %241, %243 : vector<2x128xf32>
    %c22 = arith.constant 22 : index
    %c0_54 = arith.constant 0 : index
    %245 = vector.load %arg2[%c22, %c0_54] : memref<32x128xf32, #tpu.memory_space<vmem>>, vector<2x128xf32>
    %246 = arith.truncf %240 : vector<2x32xf32> to vector<2x32xbf16>
    %cst_55 = arith.constant dense<0.000000e+00> : vector<2x128xf32>
    %247 = tpu.matmul %246, %4, %cst_55 {dimension_numbers = #tpu.dot_dimension_numbers<[1], [0], [0], [1], [0, 0, 1, 1], [], []>} : vector<2x32xbf16>, vector<32x128xbf16>, vector<2x128xf32> -> vector<2x128xf32>
    %248 = arith.addf %245, %247 : vector<2x128xf32>
    %249 = vector.extract_strided_slice %244 {offsets = [0, 0], sizes = [2, 32], strides = [1, 1]} : vector<2x128xf32> to vector<2x32xf32>
    %250 = arith.negf %249 : vector<2x32xf32>
    %251 = math.exp %250 : vector<2x32xf32>
    %cst_56 = arith.constant 1.000000e+00 : f32
    %252 = vector.broadcast %cst_56 : f32 to vector<2x32xf32>
    %253 = arith.addf %252, %251 : vector<2x32xf32>
    %254 = arith.divf %252, %253 : vector<2x32xf32>
    %255 = vector.extract_strided_slice %244 {offsets = [0, 32], sizes = [2, 32], strides = [1, 1]} : vector<2x128xf32> to vector<2x32xf32>
    %256 = arith.negf %255 : vector<2x32xf32>
    %257 = math.exp %256 : vector<2x32xf32>
    %cst_57 = arith.constant 1.000000e+00 : f32
    %258 = vector.broadcast %cst_57 : f32 to vector<2x32xf32>
    %259 = arith.addf %258, %257 : vector<2x32xf32>
    %260 = arith.divf %258, %259 : vector<2x32xf32>
    %261 = vector.extract_strided_slice %244 {offsets = [0, 64], sizes = [2, 32], strides = [1, 1]} : vector<2x128xf32> to vector<2x32xf32>
    %262 = math.tanh %261 : vector<2x32xf32>
    %263 = vector.extract_strided_slice %244 {offsets = [0, 96], sizes = [2, 32], strides = [1, 1]} : vector<2x128xf32> to vector<2x32xf32>
    %264 = arith.negf %263 : vector<2x32xf32>
    %265 = math.exp %264 : vector<2x32xf32>
    %cst_58 = arith.constant 1.000000e+00 : f32
    %266 = vector.broadcast %cst_58 : f32 to vector<2x32xf32>
    %267 = arith.addf %266, %265 : vector<2x32xf32>
    %268 = arith.divf %266, %267 : vector<2x32xf32>
    %269 = arith.mulf %260, %213 : vector<2x32xf32>
    %270 = arith.mulf %254, %262 : vector<2x32xf32>
    %271 = arith.addf %269, %270 : vector<2x32xf32>
    %272 = math.tanh %271 : vector<2x32xf32>
    %273 = arith.mulf %268, %272 : vector<2x32xf32>
    %274 = vector.extract_strided_slice %248 {offsets = [0, 0], sizes = [2, 32], strides = [1, 1]} : vector<2x128xf32> to vector<2x32xf32>
    %275 = arith.negf %274 : vector<2x32xf32>
    %276 = math.exp %275 : vector<2x32xf32>
    %cst_59 = arith.constant 1.000000e+00 : f32
    %277 = vector.broadcast %cst_59 : f32 to vector<2x32xf32>
    %278 = arith.addf %277, %276 : vector<2x32xf32>
    %279 = arith.divf %277, %278 : vector<2x32xf32>
    %280 = vector.extract_strided_slice %248 {offsets = [0, 32], sizes = [2, 32], strides = [1, 1]} : vector<2x128xf32> to vector<2x32xf32>
    %281 = arith.negf %280 : vector<2x32xf32>
    %282 = math.exp %281 : vector<2x32xf32>
    %cst_60 = arith.constant 1.000000e+00 : f32
    %283 = vector.broadcast %cst_60 : f32 to vector<2x32xf32>
    %284 = arith.addf %283, %282 : vector<2x32xf32>
    %285 = arith.divf %283, %284 : vector<2x32xf32>
    %286 = vector.extract_strided_slice %248 {offsets = [0, 64], sizes = [2, 32], strides = [1, 1]} : vector<2x128xf32> to vector<2x32xf32>
    %287 = math.tanh %286 : vector<2x32xf32>
    %288 = vector.extract_strided_slice %248 {offsets = [0, 96], sizes = [2, 32], strides = [1, 1]} : vector<2x128xf32> to vector<2x32xf32>
    %289 = arith.negf %288 : vector<2x32xf32>
    %290 = math.exp %289 : vector<2x32xf32>
    %cst_61 = arith.constant 1.000000e+00 : f32
    %291 = vector.broadcast %cst_61 : f32 to vector<2x32xf32>
    %292 = arith.addf %291, %290 : vector<2x32xf32>
    %293 = arith.divf %291, %292 : vector<2x32xf32>
    %294 = arith.mulf %285, %238 : vector<2x32xf32>
    %295 = arith.mulf %279, %287 : vector<2x32xf32>
    %296 = arith.addf %294, %295 : vector<2x32xf32>
    %297 = math.tanh %296 : vector<2x32xf32>
    %298 = arith.mulf %293, %297 : vector<2x32xf32>
    %c10 = arith.constant 10 : index
    %c0_62 = arith.constant 0 : index
    %299 = vector.load %arg1[%c10, %c0_62] : memref<32x128xf32, #tpu.memory_space<vmem>>, vector<2x128xf32>
    %300 = arith.truncf %273 : vector<2x32xf32> to vector<2x32xbf16>
    %cst_63 = arith.constant dense<0.000000e+00> : vector<2x128xf32>
    %301 = tpu.matmul %300, %3, %cst_63 {dimension_numbers = #tpu.dot_dimension_numbers<[1], [0], [0], [1], [0, 0, 1, 1], [], []>} : vector<2x32xbf16>, vector<32x128xbf16>, vector<2x128xf32> -> vector<2x128xf32>
    %302 = arith.addf %299, %301 : vector<2x128xf32>
    %c20 = arith.constant 20 : index
    %c0_64 = arith.constant 0 : index
    %303 = vector.load %arg2[%c20, %c0_64] : memref<32x128xf32, #tpu.memory_space<vmem>>, vector<2x128xf32>
    %304 = arith.truncf %298 : vector<2x32xf32> to vector<2x32xbf16>
    %cst_65 = arith.constant dense<0.000000e+00> : vector<2x128xf32>
    %305 = tpu.matmul %304, %4, %cst_65 {dimension_numbers = #tpu.dot_dimension_numbers<[1], [0], [0], [1], [0, 0, 1, 1], [], []>} : vector<2x32xbf16>, vector<32x128xbf16>, vector<2x128xf32> -> vector<2x128xf32>
    %306 = arith.addf %303, %305 : vector<2x128xf32>
    %307 = vector.extract_strided_slice %302 {offsets = [0, 0], sizes = [2, 32], strides = [1, 1]} : vector<2x128xf32> to vector<2x32xf32>
    %308 = arith.negf %307 : vector<2x32xf32>
    %309 = math.exp %308 : vector<2x32xf32>
    %cst_66 = arith.constant 1.000000e+00 : f32
    %310 = vector.broadcast %cst_66 : f32 to vector<2x32xf32>
    %311 = arith.addf %310, %309 : vector<2x32xf32>
    %312 = arith.divf %310, %311 : vector<2x32xf32>
    %313 = vector.extract_strided_slice %302 {offsets = [0, 32], sizes = [2, 32], strides = [1, 1]} : vector<2x128xf32> to vector<2x32xf32>
    %314 = arith.negf %313 : vector<2x32xf32>
    %315 = math.exp %314 : vector<2x32xf32>
    %cst_67 = arith.constant 1.000000e+00 : f32
    %316 = vector.broadcast %cst_67 : f32 to vector<2x32xf32>
    %317 = arith.addf %316, %315 : vector<2x32xf32>
    %318 = arith.divf %316, %317 : vector<2x32xf32>
    %319 = vector.extract_strided_slice %302 {offsets = [0, 64], sizes = [2, 32], strides = [1, 1]} : vector<2x128xf32> to vector<2x32xf32>
    %320 = math.tanh %319 : vector<2x32xf32>
    %321 = vector.extract_strided_slice %302 {offsets = [0, 96], sizes = [2, 32], strides = [1, 1]} : vector<2x128xf32> to vector<2x32xf32>
    %322 = arith.negf %321 : vector<2x32xf32>
    %323 = math.exp %322 : vector<2x32xf32>
    %cst_68 = arith.constant 1.000000e+00 : f32
    %324 = vector.broadcast %cst_68 : f32 to vector<2x32xf32>
    %325 = arith.addf %324, %323 : vector<2x32xf32>
    %326 = arith.divf %324, %325 : vector<2x32xf32>
    %327 = arith.mulf %318, %271 : vector<2x32xf32>
    %328 = arith.mulf %312, %320 : vector<2x32xf32>
    %329 = arith.addf %327, %328 : vector<2x32xf32>
    %330 = math.tanh %329 : vector<2x32xf32>
    %331 = arith.mulf %326, %330 : vector<2x32xf32>
    %332 = vector.extract_strided_slice %306 {offsets = [0, 0], sizes = [2, 32], strides = [1, 1]} : vector<2x128xf32> to vector<2x32xf32>
    %333 = arith.negf %332 : vector<2x32xf32>
    %334 = math.exp %333 : vector<2x32xf32>
    %cst_69 = arith.constant 1.000000e+00 : f32
    %335 = vector.broadcast %cst_69 : f32 to vector<2x32xf32>
    %336 = arith.addf %335, %334 : vector<2x32xf32>
    %337 = arith.divf %335, %336 : vector<2x32xf32>
    %338 = vector.extract_strided_slice %306 {offsets = [0, 32], sizes = [2, 32], strides = [1, 1]} : vector<2x128xf32> to vector<2x32xf32>
    %339 = arith.negf %338 : vector<2x32xf32>
    %340 = math.exp %339 : vector<2x32xf32>
    %cst_70 = arith.constant 1.000000e+00 : f32
    %341 = vector.broadcast %cst_70 : f32 to vector<2x32xf32>
    %342 = arith.addf %341, %340 : vector<2x32xf32>
    %343 = arith.divf %341, %342 : vector<2x32xf32>
    %344 = vector.extract_strided_slice %306 {offsets = [0, 64], sizes = [2, 32], strides = [1, 1]} : vector<2x128xf32> to vector<2x32xf32>
    %345 = math.tanh %344 : vector<2x32xf32>
    %346 = vector.extract_strided_slice %306 {offsets = [0, 96], sizes = [2, 32], strides = [1, 1]} : vector<2x128xf32> to vector<2x32xf32>
    %347 = arith.negf %346 : vector<2x32xf32>
    %348 = math.exp %347 : vector<2x32xf32>
    %cst_71 = arith.constant 1.000000e+00 : f32
    %349 = vector.broadcast %cst_71 : f32 to vector<2x32xf32>
    %350 = arith.addf %349, %348 : vector<2x32xf32>
    %351 = arith.divf %349, %350 : vector<2x32xf32>
    %352 = arith.mulf %343, %296 : vector<2x32xf32>
    %353 = arith.mulf %337, %345 : vector<2x32xf32>
    %354 = arith.addf %352, %353 : vector<2x32xf32>
    %355 = math.tanh %354 : vector<2x32xf32>
    %356 = arith.mulf %351, %355 : vector<2x32xf32>
    %c12 = arith.constant 12 : index
    %c0_72 = arith.constant 0 : index
    %357 = vector.load %arg1[%c12, %c0_72] : memref<32x128xf32, #tpu.memory_space<vmem>>, vector<2x128xf32>
    %358 = arith.truncf %331 : vector<2x32xf32> to vector<2x32xbf16>
    %cst_73 = arith.constant dense<0.000000e+00> : vector<2x128xf32>
    %359 = tpu.matmul %358, %3, %cst_73 {dimension_numbers = #tpu.dot_dimension_numbers<[1], [0], [0], [1], [0, 0, 1, 1], [], []>} : vector<2x32xbf16>, vector<32x128xbf16>, vector<2x128xf32> -> vector<2x128xf32>
    %360 = arith.addf %357, %359 : vector<2x128xf32>
    %c18 = arith.constant 18 : index
    %c0_74 = arith.constant 0 : index
    %361 = vector.load %arg2[%c18, %c0_74] : memref<32x128xf32, #tpu.memory_space<vmem>>, vector<2x128xf32>
    %362 = arith.truncf %356 : vector<2x32xf32> to vector<2x32xbf16>
    %cst_75 = arith.constant dense<0.000000e+00> : vector<2x128xf32>
    %363 = tpu.matmul %362, %4, %cst_75 {dimension_numbers = #tpu.dot_dimension_numbers<[1], [0], [0], [1], [0, 0, 1, 1], [], []>} : vector<2x32xbf16>, vector<32x128xbf16>, vector<2x128xf32> -> vector<2x128xf32>
    %364 = arith.addf %361, %363 : vector<2x128xf32>
    %365 = vector.extract_strided_slice %360 {offsets = [0, 0], sizes = [2, 32], strides = [1, 1]} : vector<2x128xf32> to vector<2x32xf32>
    %366 = arith.negf %365 : vector<2x32xf32>
    %367 = math.exp %366 : vector<2x32xf32>
    %cst_76 = arith.constant 1.000000e+00 : f32
    %368 = vector.broadcast %cst_76 : f32 to vector<2x32xf32>
    %369 = arith.addf %368, %367 : vector<2x32xf32>
    %370 = arith.divf %368, %369 : vector<2x32xf32>
    %371 = vector.extract_strided_slice %360 {offsets = [0, 32], sizes = [2, 32], strides = [1, 1]} : vector<2x128xf32> to vector<2x32xf32>
    %372 = arith.negf %371 : vector<2x32xf32>
    %373 = math.exp %372 : vector<2x32xf32>
    %cst_77 = arith.constant 1.000000e+00 : f32
    %374 = vector.broadcast %cst_77 : f32 to vector<2x32xf32>
    %375 = arith.addf %374, %373 : vector<2x32xf32>
    %376 = arith.divf %374, %375 : vector<2x32xf32>
    %377 = vector.extract_strided_slice %360 {offsets = [0, 64], sizes = [2, 32], strides = [1, 1]} : vector<2x128xf32> to vector<2x32xf32>
    %378 = math.tanh %377 : vector<2x32xf32>
    %379 = vector.extract_strided_slice %360 {offsets = [0, 96], sizes = [2, 32], strides = [1, 1]} : vector<2x128xf32> to vector<2x32xf32>
    %380 = arith.negf %379 : vector<2x32xf32>
    %381 = math.exp %380 : vector<2x32xf32>
    %cst_78 = arith.constant 1.000000e+00 : f32
    %382 = vector.broadcast %cst_78 : f32 to vector<2x32xf32>
    %383 = arith.addf %382, %381 : vector<2x32xf32>
    %384 = arith.divf %382, %383 : vector<2x32xf32>
    %385 = arith.mulf %376, %329 : vector<2x32xf32>
    %386 = arith.mulf %370, %378 : vector<2x32xf32>
    %387 = arith.addf %385, %386 : vector<2x32xf32>
    %388 = math.tanh %387 : vector<2x32xf32>
    %389 = arith.mulf %384, %388 : vector<2x32xf32>
    %390 = vector.extract_strided_slice %364 {offsets = [0, 0], sizes = [2, 32], strides = [1, 1]} : vector<2x128xf32> to vector<2x32xf32>
    %391 = arith.negf %390 : vector<2x32xf32>
    %392 = math.exp %391 : vector<2x32xf32>
    %cst_79 = arith.constant 1.000000e+00 : f32
    %393 = vector.broadcast %cst_79 : f32 to vector<2x32xf32>
    %394 = arith.addf %393, %392 : vector<2x32xf32>
    %395 = arith.divf %393, %394 : vector<2x32xf32>
    %396 = vector.extract_strided_slice %364 {offsets = [0, 32], sizes = [2, 32], strides = [1, 1]} : vector<2x128xf32> to vector<2x32xf32>
    %397 = arith.negf %396 : vector<2x32xf32>
    %398 = math.exp %397 : vector<2x32xf32>
    %cst_80 = arith.constant 1.000000e+00 : f32
    %399 = vector.broadcast %cst_80 : f32 to vector<2x32xf32>
    %400 = arith.addf %399, %398 : vector<2x32xf32>
    %401 = arith.divf %399, %400 : vector<2x32xf32>
    %402 = vector.extract_strided_slice %364 {offsets = [0, 64], sizes = [2, 32], strides = [1, 1]} : vector<2x128xf32> to vector<2x32xf32>
    %403 = math.tanh %402 : vector<2x32xf32>
    %404 = vector.extract_strided_slice %364 {offsets = [0, 96], sizes = [2, 32], strides = [1, 1]} : vector<2x128xf32> to vector<2x32xf32>
    %405 = arith.negf %404 : vector<2x32xf32>
    %406 = math.exp %405 : vector<2x32xf32>
    %cst_81 = arith.constant 1.000000e+00 : f32
    %407 = vector.broadcast %cst_81 : f32 to vector<2x32xf32>
    %408 = arith.addf %407, %406 : vector<2x32xf32>
    %409 = arith.divf %407, %408 : vector<2x32xf32>
    %410 = arith.mulf %401, %354 : vector<2x32xf32>
    %411 = arith.mulf %395, %403 : vector<2x32xf32>
    %412 = arith.addf %410, %411 : vector<2x32xf32>
    %413 = math.tanh %412 : vector<2x32xf32>
    %414 = arith.mulf %409, %413 : vector<2x32xf32>
    %c14 = arith.constant 14 : index
    %c0_82 = arith.constant 0 : index
    %415 = vector.load %arg1[%c14, %c0_82] : memref<32x128xf32, #tpu.memory_space<vmem>>, vector<2x128xf32>
    %416 = arith.truncf %389 : vector<2x32xf32> to vector<2x32xbf16>
    %cst_83 = arith.constant dense<0.000000e+00> : vector<2x128xf32>
    %417 = tpu.matmul %416, %3, %cst_83 {dimension_numbers = #tpu.dot_dimension_numbers<[1], [0], [0], [1], [0, 0, 1, 1], [], []>} : vector<2x32xbf16>, vector<32x128xbf16>, vector<2x128xf32> -> vector<2x128xf32>
    %418 = arith.addf %415, %417 : vector<2x128xf32>
    %c16 = arith.constant 16 : index
    %c0_84 = arith.constant 0 : index
    %419 = vector.load %arg2[%c16, %c0_84] : memref<32x128xf32, #tpu.memory_space<vmem>>, vector<2x128xf32>
    %420 = arith.truncf %414 : vector<2x32xf32> to vector<2x32xbf16>
    %cst_85 = arith.constant dense<0.000000e+00> : vector<2x128xf32>
    %421 = tpu.matmul %420, %4, %cst_85 {dimension_numbers = #tpu.dot_dimension_numbers<[1], [0], [0], [1], [0, 0, 1, 1], [], []>} : vector<2x32xbf16>, vector<32x128xbf16>, vector<2x128xf32> -> vector<2x128xf32>
    %422 = arith.addf %419, %421 : vector<2x128xf32>
    %423 = vector.extract_strided_slice %418 {offsets = [0, 0], sizes = [2, 32], strides = [1, 1]} : vector<2x128xf32> to vector<2x32xf32>
    %424 = arith.negf %423 : vector<2x32xf32>
    %425 = math.exp %424 : vector<2x32xf32>
    %cst_86 = arith.constant 1.000000e+00 : f32
    %426 = vector.broadcast %cst_86 : f32 to vector<2x32xf32>
    %427 = arith.addf %426, %425 : vector<2x32xf32>
    %428 = arith.divf %426, %427 : vector<2x32xf32>
    %429 = vector.extract_strided_slice %418 {offsets = [0, 32], sizes = [2, 32], strides = [1, 1]} : vector<2x128xf32> to vector<2x32xf32>
    %430 = arith.negf %429 : vector<2x32xf32>
    %431 = math.exp %430 : vector<2x32xf32>
    %cst_87 = arith.constant 1.000000e+00 : f32
    %432 = vector.broadcast %cst_87 : f32 to vector<2x32xf32>
    %433 = arith.addf %432, %431 : vector<2x32xf32>
    %434 = arith.divf %432, %433 : vector<2x32xf32>
    %435 = vector.extract_strided_slice %418 {offsets = [0, 64], sizes = [2, 32], strides = [1, 1]} : vector<2x128xf32> to vector<2x32xf32>
    %436 = math.tanh %435 : vector<2x32xf32>
    %437 = vector.extract_strided_slice %418 {offsets = [0, 96], sizes = [2, 32], strides = [1, 1]} : vector<2x128xf32> to vector<2x32xf32>
    %438 = arith.negf %437 : vector<2x32xf32>
    %439 = math.exp %438 : vector<2x32xf32>
    %cst_88 = arith.constant 1.000000e+00 : f32
    %440 = vector.broadcast %cst_88 : f32 to vector<2x32xf32>
    %441 = arith.addf %440, %439 : vector<2x32xf32>
    %442 = arith.divf %440, %441 : vector<2x32xf32>
    %443 = arith.mulf %434, %387 : vector<2x32xf32>
    %444 = arith.mulf %428, %436 : vector<2x32xf32>
    %445 = arith.addf %443, %444 : vector<2x32xf32>
    %446 = math.tanh %445 : vector<2x32xf32>
    %447 = arith.mulf %442, %446 : vector<2x32xf32>
    %448 = vector.extract_strided_slice %422 {offsets = [0, 0], sizes = [2, 32], strides = [1, 1]} : vector<2x128xf32> to vector<2x32xf32>
    %449 = arith.negf %448 : vector<2x32xf32>
    %450 = math.exp %449 : vector<2x32xf32>
    %cst_89 = arith.constant 1.000000e+00 : f32
    %451 = vector.broadcast %cst_89 : f32 to vector<2x32xf32>
    %452 = arith.addf %451, %450 : vector<2x32xf32>
    %453 = arith.divf %451, %452 : vector<2x32xf32>
    %454 = vector.extract_strided_slice %422 {offsets = [0, 32], sizes = [2, 32], strides = [1, 1]} : vector<2x128xf32> to vector<2x32xf32>
    %455 = arith.negf %454 : vector<2x32xf32>
    %456 = math.exp %455 : vector<2x32xf32>
    %cst_90 = arith.constant 1.000000e+00 : f32
    %457 = vector.broadcast %cst_90 : f32 to vector<2x32xf32>
    %458 = arith.addf %457, %456 : vector<2x32xf32>
    %459 = arith.divf %457, %458 : vector<2x32xf32>
    %460 = vector.extract_strided_slice %422 {offsets = [0, 64], sizes = [2, 32], strides = [1, 1]} : vector<2x128xf32> to vector<2x32xf32>
    %461 = math.tanh %460 : vector<2x32xf32>
    %462 = vector.extract_strided_slice %422 {offsets = [0, 96], sizes = [2, 32], strides = [1, 1]} : vector<2x128xf32> to vector<2x32xf32>
    %463 = arith.negf %462 : vector<2x32xf32>
    %464 = math.exp %463 : vector<2x32xf32>
    %cst_91 = arith.constant 1.000000e+00 : f32
    %465 = vector.broadcast %cst_91 : f32 to vector<2x32xf32>
    %466 = arith.addf %465, %464 : vector<2x32xf32>
    %467 = arith.divf %465, %466 : vector<2x32xf32>
    %468 = arith.mulf %459, %412 : vector<2x32xf32>
    %469 = arith.mulf %453, %461 : vector<2x32xf32>
    %470 = arith.addf %468, %469 : vector<2x32xf32>
    %471 = math.tanh %470 : vector<2x32xf32>
    %472 = arith.mulf %467, %471 : vector<2x32xf32>
    %c16_92 = arith.constant 16 : index
    %c0_93 = arith.constant 0 : index
    %473 = vector.load %arg1[%c16_92, %c0_93] : memref<32x128xf32, #tpu.memory_space<vmem>>, vector<2x128xf32>
    %474 = arith.truncf %447 : vector<2x32xf32> to vector<2x32xbf16>
    %cst_94 = arith.constant dense<0.000000e+00> : vector<2x128xf32>
    %475 = tpu.matmul %474, %3, %cst_94 {dimension_numbers = #tpu.dot_dimension_numbers<[1], [0], [0], [1], [0, 0, 1, 1], [], []>} : vector<2x32xbf16>, vector<32x128xbf16>, vector<2x128xf32> -> vector<2x128xf32>
    %476 = arith.addf %473, %475 : vector<2x128xf32>
    %c14_95 = arith.constant 14 : index
    %c0_96 = arith.constant 0 : index
    %477 = vector.load %arg2[%c14_95, %c0_96] : memref<32x128xf32, #tpu.memory_space<vmem>>, vector<2x128xf32>
    %478 = arith.truncf %472 : vector<2x32xf32> to vector<2x32xbf16>
    %cst_97 = arith.constant dense<0.000000e+00> : vector<2x128xf32>
    %479 = tpu.matmul %478, %4, %cst_97 {dimension_numbers = #tpu.dot_dimension_numbers<[1], [0], [0], [1], [0, 0, 1, 1], [], []>} : vector<2x32xbf16>, vector<32x128xbf16>, vector<2x128xf32> -> vector<2x128xf32>
    %480 = arith.addf %477, %479 : vector<2x128xf32>
    %481 = vector.extract_strided_slice %476 {offsets = [0, 0], sizes = [2, 32], strides = [1, 1]} : vector<2x128xf32> to vector<2x32xf32>
    %482 = arith.negf %481 : vector<2x32xf32>
    %483 = math.exp %482 : vector<2x32xf32>
    %cst_98 = arith.constant 1.000000e+00 : f32
    %484 = vector.broadcast %cst_98 : f32 to vector<2x32xf32>
    %485 = arith.addf %484, %483 : vector<2x32xf32>
    %486 = arith.divf %484, %485 : vector<2x32xf32>
    %487 = vector.extract_strided_slice %476 {offsets = [0, 32], sizes = [2, 32], strides = [1, 1]} : vector<2x128xf32> to vector<2x32xf32>
    %488 = arith.negf %487 : vector<2x32xf32>
    %489 = math.exp %488 : vector<2x32xf32>
    %cst_99 = arith.constant 1.000000e+00 : f32
    %490 = vector.broadcast %cst_99 : f32 to vector<2x32xf32>
    %491 = arith.addf %490, %489 : vector<2x32xf32>
    %492 = arith.divf %490, %491 : vector<2x32xf32>
    %493 = vector.extract_strided_slice %476 {offsets = [0, 64], sizes = [2, 32], strides = [1, 1]} : vector<2x128xf32> to vector<2x32xf32>
    %494 = math.tanh %493 : vector<2x32xf32>
    %495 = vector.extract_strided_slice %476 {offsets = [0, 96], sizes = [2, 32], strides = [1, 1]} : vector<2x128xf32> to vector<2x32xf32>
    %496 = arith.negf %495 : vector<2x32xf32>
    %497 = math.exp %496 : vector<2x32xf32>
    %cst_100 = arith.constant 1.000000e+00 : f32
    %498 = vector.broadcast %cst_100 : f32 to vector<2x32xf32>
    %499 = arith.addf %498, %497 : vector<2x32xf32>
    %500 = arith.divf %498, %499 : vector<2x32xf32>
    %501 = arith.mulf %492, %445 : vector<2x32xf32>
    %502 = arith.mulf %486, %494 : vector<2x32xf32>
    %503 = arith.addf %501, %502 : vector<2x32xf32>
    %504 = math.tanh %503 : vector<2x32xf32>
    %505 = arith.mulf %500, %504 : vector<2x32xf32>
    %506 = vector.extract_strided_slice %480 {offsets = [0, 0], sizes = [2, 32], strides = [1, 1]} : vector<2x128xf32> to vector<2x32xf32>
    %507 = arith.negf %506 : vector<2x32xf32>
    %508 = math.exp %507 : vector<2x32xf32>
    %cst_101 = arith.constant 1.000000e+00 : f32
    %509 = vector.broadcast %cst_101 : f32 to vector<2x32xf32>
    %510 = arith.addf %509, %508 : vector<2x32xf32>
    %511 = arith.divf %509, %510 : vector<2x32xf32>
    %512 = vector.extract_strided_slice %480 {offsets = [0, 32], sizes = [2, 32], strides = [1, 1]} : vector<2x128xf32> to vector<2x32xf32>
    %513 = arith.negf %512 : vector<2x32xf32>
    %514 = math.exp %513 : vector<2x32xf32>
    %cst_102 = arith.constant 1.000000e+00 : f32
    %515 = vector.broadcast %cst_102 : f32 to vector<2x32xf32>
    %516 = arith.addf %515, %514 : vector<2x32xf32>
    %517 = arith.divf %515, %516 : vector<2x32xf32>
    %518 = vector.extract_strided_slice %480 {offsets = [0, 64], sizes = [2, 32], strides = [1, 1]} : vector<2x128xf32> to vector<2x32xf32>
    %519 = math.tanh %518 : vector<2x32xf32>
    %520 = vector.extract_strided_slice %480 {offsets = [0, 96], sizes = [2, 32], strides = [1, 1]} : vector<2x128xf32> to vector<2x32xf32>
    %521 = arith.negf %520 : vector<2x32xf32>
    %522 = math.exp %521 : vector<2x32xf32>
    %cst_103 = arith.constant 1.000000e+00 : f32
    %523 = vector.broadcast %cst_103 : f32 to vector<2x32xf32>
    %524 = arith.addf %523, %522 : vector<2x32xf32>
    %525 = arith.divf %523, %524 : vector<2x32xf32>
    %526 = arith.mulf %517, %470 : vector<2x32xf32>
    %527 = arith.mulf %511, %519 : vector<2x32xf32>
    %528 = arith.addf %526, %527 : vector<2x32xf32>
    %529 = math.tanh %528 : vector<2x32xf32>
    %530 = arith.mulf %525, %529 : vector<2x32xf32>
    %c18_104 = arith.constant 18 : index
    %c0_105 = arith.constant 0 : index
    %531 = vector.load %arg1[%c18_104, %c0_105] : memref<32x128xf32, #tpu.memory_space<vmem>>, vector<2x128xf32>
    %532 = arith.truncf %505 : vector<2x32xf32> to vector<2x32xbf16>
    %cst_106 = arith.constant dense<0.000000e+00> : vector<2x128xf32>
    %533 = tpu.matmul %532, %3, %cst_106 {dimension_numbers = #tpu.dot_dimension_numbers<[1], [0], [0], [1], [0, 0, 1, 1], [], []>} : vector<2x32xbf16>, vector<32x128xbf16>, vector<2x128xf32> -> vector<2x128xf32>
    %534 = arith.addf %531, %533 : vector<2x128xf32>
    %c12_107 = arith.constant 12 : index
    %c0_108 = arith.constant 0 : index
    %535 = vector.load %arg2[%c12_107, %c0_108] : memref<32x128xf32, #tpu.memory_space<vmem>>, vector<2x128xf32>
    %536 = arith.truncf %530 : vector<2x32xf32> to vector<2x32xbf16>
    %cst_109 = arith.constant dense<0.000000e+00> : vector<2x128xf32>
    %537 = tpu.matmul %536, %4, %cst_109 {dimension_numbers = #tpu.dot_dimension_numbers<[1], [0], [0], [1], [0, 0, 1, 1], [], []>} : vector<2x32xbf16>, vector<32x128xbf16>, vector<2x128xf32> -> vector<2x128xf32>
    %538 = arith.addf %535, %537 : vector<2x128xf32>
    %539 = vector.extract_strided_slice %534 {offsets = [0, 0], sizes = [2, 32], strides = [1, 1]} : vector<2x128xf32> to vector<2x32xf32>
    %540 = arith.negf %539 : vector<2x32xf32>
    %541 = math.exp %540 : vector<2x32xf32>
    %cst_110 = arith.constant 1.000000e+00 : f32
    %542 = vector.broadcast %cst_110 : f32 to vector<2x32xf32>
    %543 = arith.addf %542, %541 : vector<2x32xf32>
    %544 = arith.divf %542, %543 : vector<2x32xf32>
    %545 = vector.extract_strided_slice %534 {offsets = [0, 32], sizes = [2, 32], strides = [1, 1]} : vector<2x128xf32> to vector<2x32xf32>
    %546 = arith.negf %545 : vector<2x32xf32>
    %547 = math.exp %546 : vector<2x32xf32>
    %cst_111 = arith.constant 1.000000e+00 : f32
    %548 = vector.broadcast %cst_111 : f32 to vector<2x32xf32>
    %549 = arith.addf %548, %547 : vector<2x32xf32>
    %550 = arith.divf %548, %549 : vector<2x32xf32>
    %551 = vector.extract_strided_slice %534 {offsets = [0, 64], sizes = [2, 32], strides = [1, 1]} : vector<2x128xf32> to vector<2x32xf32>
    %552 = math.tanh %551 : vector<2x32xf32>
    %553 = vector.extract_strided_slice %534 {offsets = [0, 96], sizes = [2, 32], strides = [1, 1]} : vector<2x128xf32> to vector<2x32xf32>
    %554 = arith.negf %553 : vector<2x32xf32>
    %555 = math.exp %554 : vector<2x32xf32>
    %cst_112 = arith.constant 1.000000e+00 : f32
    %556 = vector.broadcast %cst_112 : f32 to vector<2x32xf32>
    %557 = arith.addf %556, %555 : vector<2x32xf32>
    %558 = arith.divf %556, %557 : vector<2x32xf32>
    %559 = arith.mulf %550, %503 : vector<2x32xf32>
    %560 = arith.mulf %544, %552 : vector<2x32xf32>
    %561 = arith.addf %559, %560 : vector<2x32xf32>
    %562 = math.tanh %561 : vector<2x32xf32>
    %563 = arith.mulf %558, %562 : vector<2x32xf32>
    %564 = vector.extract_strided_slice %538 {offsets = [0, 0], sizes = [2, 32], strides = [1, 1]} : vector<2x128xf32> to vector<2x32xf32>
    %565 = arith.negf %564 : vector<2x32xf32>
    %566 = math.exp %565 : vector<2x32xf32>
    %cst_113 = arith.constant 1.000000e+00 : f32
    %567 = vector.broadcast %cst_113 : f32 to vector<2x32xf32>
    %568 = arith.addf %567, %566 : vector<2x32xf32>
    %569 = arith.divf %567, %568 : vector<2x32xf32>
    %570 = vector.extract_strided_slice %538 {offsets = [0, 32], sizes = [2, 32], strides = [1, 1]} : vector<2x128xf32> to vector<2x32xf32>
    %571 = arith.negf %570 : vector<2x32xf32>
    %572 = math.exp %571 : vector<2x32xf32>
    %cst_114 = arith.constant 1.000000e+00 : f32
    %573 = vector.broadcast %cst_114 : f32 to vector<2x32xf32>
    %574 = arith.addf %573, %572 : vector<2x32xf32>
    %575 = arith.divf %573, %574 : vector<2x32xf32>
    %576 = vector.extract_strided_slice %538 {offsets = [0, 64], sizes = [2, 32], strides = [1, 1]} : vector<2x128xf32> to vector<2x32xf32>
    %577 = math.tanh %576 : vector<2x32xf32>
    %578 = vector.extract_strided_slice %538 {offsets = [0, 96], sizes = [2, 32], strides = [1, 1]} : vector<2x128xf32> to vector<2x32xf32>
    %579 = arith.negf %578 : vector<2x32xf32>
    %580 = math.exp %579 : vector<2x32xf32>
    %cst_115 = arith.constant 1.000000e+00 : f32
    %581 = vector.broadcast %cst_115 : f32 to vector<2x32xf32>
    %582 = arith.addf %581, %580 : vector<2x32xf32>
    %583 = arith.divf %581, %582 : vector<2x32xf32>
    %584 = arith.mulf %575, %528 : vector<2x32xf32>
    %585 = arith.mulf %569, %577 : vector<2x32xf32>
    %586 = arith.addf %584, %585 : vector<2x32xf32>
    %587 = math.tanh %586 : vector<2x32xf32>
    %588 = arith.mulf %583, %587 : vector<2x32xf32>
    %c20_116 = arith.constant 20 : index
    %c0_117 = arith.constant 0 : index
    %589 = vector.load %arg1[%c20_116, %c0_117] : memref<32x128xf32, #tpu.memory_space<vmem>>, vector<2x128xf32>
    %590 = arith.truncf %563 : vector<2x32xf32> to vector<2x32xbf16>
    %cst_118 = arith.constant dense<0.000000e+00> : vector<2x128xf32>
    %591 = tpu.matmul %590, %3, %cst_118 {dimension_numbers = #tpu.dot_dimension_numbers<[1], [0], [0], [1], [0, 0, 1, 1], [], []>} : vector<2x32xbf16>, vector<32x128xbf16>, vector<2x128xf32> -> vector<2x128xf32>
    %592 = arith.addf %589, %591 : vector<2x128xf32>
    %c10_119 = arith.constant 10 : index
    %c0_120 = arith.constant 0 : index
    %593 = vector.load %arg2[%c10_119, %c0_120] : memref<32x128xf32, #tpu.memory_space<vmem>>, vector<2x128xf32>
    %594 = arith.truncf %588 : vector<2x32xf32> to vector<2x32xbf16>
    %cst_121 = arith.constant dense<0.000000e+00> : vector<2x128xf32>
    %595 = tpu.matmul %594, %4, %cst_121 {dimension_numbers = #tpu.dot_dimension_numbers<[1], [0], [0], [1], [0, 0, 1, 1], [], []>} : vector<2x32xbf16>, vector<32x128xbf16>, vector<2x128xf32> -> vector<2x128xf32>
    %596 = arith.addf %593, %595 : vector<2x128xf32>
    %597 = vector.extract_strided_slice %592 {offsets = [0, 0], sizes = [2, 32], strides = [1, 1]} : vector<2x128xf32> to vector<2x32xf32>
    %598 = arith.negf %597 : vector<2x32xf32>
    %599 = math.exp %598 : vector<2x32xf32>
    %cst_122 = arith.constant 1.000000e+00 : f32
    %600 = vector.broadcast %cst_122 : f32 to vector<2x32xf32>
    %601 = arith.addf %600, %599 : vector<2x32xf32>
    %602 = arith.divf %600, %601 : vector<2x32xf32>
    %603 = vector.extract_strided_slice %592 {offsets = [0, 32], sizes = [2, 32], strides = [1, 1]} : vector<2x128xf32> to vector<2x32xf32>
    %604 = arith.negf %603 : vector<2x32xf32>
    %605 = math.exp %604 : vector<2x32xf32>
    %cst_123 = arith.constant 1.000000e+00 : f32
    %606 = vector.broadcast %cst_123 : f32 to vector<2x32xf32>
    %607 = arith.addf %606, %605 : vector<2x32xf32>
    %608 = arith.divf %606, %607 : vector<2x32xf32>
    %609 = vector.extract_strided_slice %592 {offsets = [0, 64], sizes = [2, 32], strides = [1, 1]} : vector<2x128xf32> to vector<2x32xf32>
    %610 = math.tanh %609 : vector<2x32xf32>
    %611 = vector.extract_strided_slice %592 {offsets = [0, 96], sizes = [2, 32], strides = [1, 1]} : vector<2x128xf32> to vector<2x32xf32>
    %612 = arith.negf %611 : vector<2x32xf32>
    %613 = math.exp %612 : vector<2x32xf32>
    %cst_124 = arith.constant 1.000000e+00 : f32
    %614 = vector.broadcast %cst_124 : f32 to vector<2x32xf32>
    %615 = arith.addf %614, %613 : vector<2x32xf32>
    %616 = arith.divf %614, %615 : vector<2x32xf32>
    %617 = arith.mulf %608, %561 : vector<2x32xf32>
    %618 = arith.mulf %602, %610 : vector<2x32xf32>
    %619 = arith.addf %617, %618 : vector<2x32xf32>
    %620 = math.tanh %619 : vector<2x32xf32>
    %621 = arith.mulf %616, %620 : vector<2x32xf32>
    %622 = vector.extract_strided_slice %596 {offsets = [0, 0], sizes = [2, 32], strides = [1, 1]} : vector<2x128xf32> to vector<2x32xf32>
    %623 = arith.negf %622 : vector<2x32xf32>
    %624 = math.exp %623 : vector<2x32xf32>
    %cst_125 = arith.constant 1.000000e+00 : f32
    %625 = vector.broadcast %cst_125 : f32 to vector<2x32xf32>
    %626 = arith.addf %625, %624 : vector<2x32xf32>
    %627 = arith.divf %625, %626 : vector<2x32xf32>
    %628 = vector.extract_strided_slice %596 {offsets = [0, 32], sizes = [2, 32], strides = [1, 1]} : vector<2x128xf32> to vector<2x32xf32>
    %629 = arith.negf %628 : vector<2x32xf32>
    %630 = math.exp %629 : vector<2x32xf32>
    %cst_126 = arith.constant 1.000000e+00 : f32
    %631 = vector.broadcast %cst_126 : f32 to vector<2x32xf32>
    %632 = arith.addf %631, %630 : vector<2x32xf32>
    %633 = arith.divf %631, %632 : vector<2x32xf32>
    %634 = vector.extract_strided_slice %596 {offsets = [0, 64], sizes = [2, 32], strides = [1, 1]} : vector<2x128xf32> to vector<2x32xf32>
    %635 = math.tanh %634 : vector<2x32xf32>
    %636 = vector.extract_strided_slice %596 {offsets = [0, 96], sizes = [2, 32], strides = [1, 1]} : vector<2x128xf32> to vector<2x32xf32>
    %637 = arith.negf %636 : vector<2x32xf32>
    %638 = math.exp %637 : vector<2x32xf32>
    %cst_127 = arith.constant 1.000000e+00 : f32
    %639 = vector.broadcast %cst_127 : f32 to vector<2x32xf32>
    %640 = arith.addf %639, %638 : vector<2x32xf32>
    %641 = arith.divf %639, %640 : vector<2x32xf32>
    %642 = arith.mulf %633, %586 : vector<2x32xf32>
    %643 = arith.mulf %627, %635 : vector<2x32xf32>
    %644 = arith.addf %642, %643 : vector<2x32xf32>
    %645 = math.tanh %644 : vector<2x32xf32>
    %646 = arith.mulf %641, %645 : vector<2x32xf32>
    %c22_128 = arith.constant 22 : index
    %c0_129 = arith.constant 0 : index
    %647 = vector.load %arg1[%c22_128, %c0_129] : memref<32x128xf32, #tpu.memory_space<vmem>>, vector<2x128xf32>
    %648 = arith.truncf %621 : vector<2x32xf32> to vector<2x32xbf16>
    %cst_130 = arith.constant dense<0.000000e+00> : vector<2x128xf32>
    %649 = tpu.matmul %648, %3, %cst_130 {dimension_numbers = #tpu.dot_dimension_numbers<[1], [0], [0], [1], [0, 0, 1, 1], [], []>} : vector<2x32xbf16>, vector<32x128xbf16>, vector<2x128xf32> -> vector<2x128xf32>
    %650 = arith.addf %647, %649 : vector<2x128xf32>
    %c8_131 = arith.constant 8 : index
    %c0_132 = arith.constant 0 : index
    %651 = vector.load %arg2[%c8_131, %c0_132] : memref<32x128xf32, #tpu.memory_space<vmem>>, vector<2x128xf32>
    %652 = arith.truncf %646 : vector<2x32xf32> to vector<2x32xbf16>
    %cst_133 = arith.constant dense<0.000000e+00> : vector<2x128xf32>
    %653 = tpu.matmul %652, %4, %cst_133 {dimension_numbers = #tpu.dot_dimension_numbers<[1], [0], [0], [1], [0, 0, 1, 1], [], []>} : vector<2x32xbf16>, vector<32x128xbf16>, vector<2x128xf32> -> vector<2x128xf32>
    %654 = arith.addf %651, %653 : vector<2x128xf32>
    %655 = vector.extract_strided_slice %650 {offsets = [0, 0], sizes = [2, 32], strides = [1, 1]} : vector<2x128xf32> to vector<2x32xf32>
    %656 = arith.negf %655 : vector<2x32xf32>
    %657 = math.exp %656 : vector<2x32xf32>
    %cst_134 = arith.constant 1.000000e+00 : f32
    %658 = vector.broadcast %cst_134 : f32 to vector<2x32xf32>
    %659 = arith.addf %658, %657 : vector<2x32xf32>
    %660 = arith.divf %658, %659 : vector<2x32xf32>
    %661 = vector.extract_strided_slice %650 {offsets = [0, 32], sizes = [2, 32], strides = [1, 1]} : vector<2x128xf32> to vector<2x32xf32>
    %662 = arith.negf %661 : vector<2x32xf32>
    %663 = math.exp %662 : vector<2x32xf32>
    %cst_135 = arith.constant 1.000000e+00 : f32
    %664 = vector.broadcast %cst_135 : f32 to vector<2x32xf32>
    %665 = arith.addf %664, %663 : vector<2x32xf32>
    %666 = arith.divf %664, %665 : vector<2x32xf32>
    %667 = vector.extract_strided_slice %650 {offsets = [0, 64], sizes = [2, 32], strides = [1, 1]} : vector<2x128xf32> to vector<2x32xf32>
    %668 = math.tanh %667 : vector<2x32xf32>
    %669 = vector.extract_strided_slice %650 {offsets = [0, 96], sizes = [2, 32], strides = [1, 1]} : vector<2x128xf32> to vector<2x32xf32>
    %670 = arith.negf %669 : vector<2x32xf32>
    %671 = math.exp %670 : vector<2x32xf32>
    %cst_136 = arith.constant 1.000000e+00 : f32
    %672 = vector.broadcast %cst_136 : f32 to vector<2x32xf32>
    %673 = arith.addf %672, %671 : vector<2x32xf32>
    %674 = arith.divf %672, %673 : vector<2x32xf32>
    %675 = arith.mulf %666, %619 : vector<2x32xf32>
    %676 = arith.mulf %660, %668 : vector<2x32xf32>
    %677 = arith.addf %675, %676 : vector<2x32xf32>
    %678 = math.tanh %677 : vector<2x32xf32>
    %679 = arith.mulf %674, %678 : vector<2x32xf32>
    %680 = vector.extract_strided_slice %654 {offsets = [0, 0], sizes = [2, 32], strides = [1, 1]} : vector<2x128xf32> to vector<2x32xf32>
    %681 = arith.negf %680 : vector<2x32xf32>
    %682 = math.exp %681 : vector<2x32xf32>
    %cst_137 = arith.constant 1.000000e+00 : f32
    %683 = vector.broadcast %cst_137 : f32 to vector<2x32xf32>
    %684 = arith.addf %683, %682 : vector<2x32xf32>
    %685 = arith.divf %683, %684 : vector<2x32xf32>
    %686 = vector.extract_strided_slice %654 {offsets = [0, 32], sizes = [2, 32], strides = [1, 1]} : vector<2x128xf32> to vector<2x32xf32>
    %687 = arith.negf %686 : vector<2x32xf32>
    %688 = math.exp %687 : vector<2x32xf32>
    %cst_138 = arith.constant 1.000000e+00 : f32
    %689 = vector.broadcast %cst_138 : f32 to vector<2x32xf32>
    %690 = arith.addf %689, %688 : vector<2x32xf32>
    %691 = arith.divf %689, %690 : vector<2x32xf32>
    %692 = vector.extract_strided_slice %654 {offsets = [0, 64], sizes = [2, 32], strides = [1, 1]} : vector<2x128xf32> to vector<2x32xf32>
    %693 = math.tanh %692 : vector<2x32xf32>
    %694 = vector.extract_strided_slice %654 {offsets = [0, 96], sizes = [2, 32], strides = [1, 1]} : vector<2x128xf32> to vector<2x32xf32>
    %695 = arith.negf %694 : vector<2x32xf32>
    %696 = math.exp %695 : vector<2x32xf32>
    %cst_139 = arith.constant 1.000000e+00 : f32
    %697 = vector.broadcast %cst_139 : f32 to vector<2x32xf32>
    %698 = arith.addf %697, %696 : vector<2x32xf32>
    %699 = arith.divf %697, %698 : vector<2x32xf32>
    %700 = arith.mulf %691, %644 : vector<2x32xf32>
    %701 = arith.mulf %685, %693 : vector<2x32xf32>
    %702 = arith.addf %700, %701 : vector<2x32xf32>
    %703 = math.tanh %702 : vector<2x32xf32>
    %704 = arith.mulf %699, %703 : vector<2x32xf32>
    %c24_140 = arith.constant 24 : index
    %c0_141 = arith.constant 0 : index
    %705 = vector.load %arg1[%c24_140, %c0_141] : memref<32x128xf32, #tpu.memory_space<vmem>>, vector<2x128xf32>
    %706 = arith.truncf %679 : vector<2x32xf32> to vector<2x32xbf16>
    %cst_142 = arith.constant dense<0.000000e+00> : vector<2x128xf32>
    %707 = tpu.matmul %706, %3, %cst_142 {dimension_numbers = #tpu.dot_dimension_numbers<[1], [0], [0], [1], [0, 0, 1, 1], [], []>} : vector<2x32xbf16>, vector<32x128xbf16>, vector<2x128xf32> -> vector<2x128xf32>
    %708 = arith.addf %705, %707 : vector<2x128xf32>
    %c6_143 = arith.constant 6 : index
    %c0_144 = arith.constant 0 : index
    %709 = vector.load %arg2[%c6_143, %c0_144] : memref<32x128xf32, #tpu.memory_space<vmem>>, vector<2x128xf32>
    %710 = arith.truncf %704 : vector<2x32xf32> to vector<2x32xbf16>
    %cst_145 = arith.constant dense<0.000000e+00> : vector<2x128xf32>
    %711 = tpu.matmul %710, %4, %cst_145 {dimension_numbers = #tpu.dot_dimension_numbers<[1], [0], [0], [1], [0, 0, 1, 1], [], []>} : vector<2x32xbf16>, vector<32x128xbf16>, vector<2x128xf32> -> vector<2x128xf32>
    %712 = arith.addf %709, %711 : vector<2x128xf32>
    %713 = vector.extract_strided_slice %708 {offsets = [0, 0], sizes = [2, 32], strides = [1, 1]} : vector<2x128xf32> to vector<2x32xf32>
    %714 = arith.negf %713 : vector<2x32xf32>
    %715 = math.exp %714 : vector<2x32xf32>
    %cst_146 = arith.constant 1.000000e+00 : f32
    %716 = vector.broadcast %cst_146 : f32 to vector<2x32xf32>
    %717 = arith.addf %716, %715 : vector<2x32xf32>
    %718 = arith.divf %716, %717 : vector<2x32xf32>
    %719 = vector.extract_strided_slice %708 {offsets = [0, 32], sizes = [2, 32], strides = [1, 1]} : vector<2x128xf32> to vector<2x32xf32>
    %720 = arith.negf %719 : vector<2x32xf32>
    %721 = math.exp %720 : vector<2x32xf32>
    %cst_147 = arith.constant 1.000000e+00 : f32
    %722 = vector.broadcast %cst_147 : f32 to vector<2x32xf32>
    %723 = arith.addf %722, %721 : vector<2x32xf32>
    %724 = arith.divf %722, %723 : vector<2x32xf32>
    %725 = vector.extract_strided_slice %708 {offsets = [0, 64], sizes = [2, 32], strides = [1, 1]} : vector<2x128xf32> to vector<2x32xf32>
    %726 = math.tanh %725 : vector<2x32xf32>
    %727 = vector.extract_strided_slice %708 {offsets = [0, 96], sizes = [2, 32], strides = [1, 1]} : vector<2x128xf32> to vector<2x32xf32>
    %728 = arith.negf %727 : vector<2x32xf32>
    %729 = math.exp %728 : vector<2x32xf32>
    %cst_148 = arith.constant 1.000000e+00 : f32
    %730 = vector.broadcast %cst_148 : f32 to vector<2x32xf32>
    %731 = arith.addf %730, %729 : vector<2x32xf32>
    %732 = arith.divf %730, %731 : vector<2x32xf32>
    %733 = arith.mulf %724, %677 : vector<2x32xf32>
    %734 = arith.mulf %718, %726 : vector<2x32xf32>
    %735 = arith.addf %733, %734 : vector<2x32xf32>
    %736 = math.tanh %735 : vector<2x32xf32>
    %737 = arith.mulf %732, %736 : vector<2x32xf32>
    %738 = vector.extract_strided_slice %712 {offsets = [0, 0], sizes = [2, 32], strides = [1, 1]} : vector<2x128xf32> to vector<2x32xf32>
    %739 = arith.negf %738 : vector<2x32xf32>
    %740 = math.exp %739 : vector<2x32xf32>
    %cst_149 = arith.constant 1.000000e+00 : f32
    %741 = vector.broadcast %cst_149 : f32 to vector<2x32xf32>
    %742 = arith.addf %741, %740 : vector<2x32xf32>
    %743 = arith.divf %741, %742 : vector<2x32xf32>
    %744 = vector.extract_strided_slice %712 {offsets = [0, 32], sizes = [2, 32], strides = [1, 1]} : vector<2x128xf32> to vector<2x32xf32>
    %745 = arith.negf %744 : vector<2x32xf32>
    %746 = math.exp %745 : vector<2x32xf32>
    %cst_150 = arith.constant 1.000000e+00 : f32
    %747 = vector.broadcast %cst_150 : f32 to vector<2x32xf32>
    %748 = arith.addf %747, %746 : vector<2x32xf32>
    %749 = arith.divf %747, %748 : vector<2x32xf32>
    %750 = vector.extract_strided_slice %712 {offsets = [0, 64], sizes = [2, 32], strides = [1, 1]} : vector<2x128xf32> to vector<2x32xf32>
    %751 = math.tanh %750 : vector<2x32xf32>
    %752 = vector.extract_strided_slice %712 {offsets = [0, 96], sizes = [2, 32], strides = [1, 1]} : vector<2x128xf32> to vector<2x32xf32>
    %753 = arith.negf %752 : vector<2x32xf32>
    %754 = math.exp %753 : vector<2x32xf32>
    %cst_151 = arith.constant 1.000000e+00 : f32
    %755 = vector.broadcast %cst_151 : f32 to vector<2x32xf32>
    %756 = arith.addf %755, %754 : vector<2x32xf32>
    %757 = arith.divf %755, %756 : vector<2x32xf32>
    %758 = arith.mulf %749, %702 : vector<2x32xf32>
    %759 = arith.mulf %743, %751 : vector<2x32xf32>
    %760 = arith.addf %758, %759 : vector<2x32xf32>
    %761 = math.tanh %760 : vector<2x32xf32>
    %762 = arith.mulf %757, %761 : vector<2x32xf32>
    %c26_152 = arith.constant 26 : index
    %c0_153 = arith.constant 0 : index
    %763 = vector.load %arg1[%c26_152, %c0_153] : memref<32x128xf32, #tpu.memory_space<vmem>>, vector<2x128xf32>
    %764 = arith.truncf %737 : vector<2x32xf32> to vector<2x32xbf16>
    %cst_154 = arith.constant dense<0.000000e+00> : vector<2x128xf32>
    %765 = tpu.matmul %764, %3, %cst_154 {dimension_numbers = #tpu.dot_dimension_numbers<[1], [0], [0], [1], [0, 0, 1, 1], [], []>} : vector<2x32xbf16>, vector<32x128xbf16>, vector<2x128xf32> -> vector<2x128xf32>
    %766 = arith.addf %763, %765 : vector<2x128xf32>
    %c4_155 = arith.constant 4 : index
    %c0_156 = arith.constant 0 : index
    %767 = vector.load %arg2[%c4_155, %c0_156] : memref<32x128xf32, #tpu.memory_space<vmem>>, vector<2x128xf32>
    %768 = arith.truncf %762 : vector<2x32xf32> to vector<2x32xbf16>
    %cst_157 = arith.constant dense<0.000000e+00> : vector<2x128xf32>
    %769 = tpu.matmul %768, %4, %cst_157 {dimension_numbers = #tpu.dot_dimension_numbers<[1], [0], [0], [1], [0, 0, 1, 1], [], []>} : vector<2x32xbf16>, vector<32x128xbf16>, vector<2x128xf32> -> vector<2x128xf32>
    %770 = arith.addf %767, %769 : vector<2x128xf32>
    %771 = vector.extract_strided_slice %766 {offsets = [0, 0], sizes = [2, 32], strides = [1, 1]} : vector<2x128xf32> to vector<2x32xf32>
    %772 = arith.negf %771 : vector<2x32xf32>
    %773 = math.exp %772 : vector<2x32xf32>
    %cst_158 = arith.constant 1.000000e+00 : f32
    %774 = vector.broadcast %cst_158 : f32 to vector<2x32xf32>
    %775 = arith.addf %774, %773 : vector<2x32xf32>
    %776 = arith.divf %774, %775 : vector<2x32xf32>
    %777 = vector.extract_strided_slice %766 {offsets = [0, 32], sizes = [2, 32], strides = [1, 1]} : vector<2x128xf32> to vector<2x32xf32>
    %778 = arith.negf %777 : vector<2x32xf32>
    %779 = math.exp %778 : vector<2x32xf32>
    %cst_159 = arith.constant 1.000000e+00 : f32
    %780 = vector.broadcast %cst_159 : f32 to vector<2x32xf32>
    %781 = arith.addf %780, %779 : vector<2x32xf32>
    %782 = arith.divf %780, %781 : vector<2x32xf32>
    %783 = vector.extract_strided_slice %766 {offsets = [0, 64], sizes = [2, 32], strides = [1, 1]} : vector<2x128xf32> to vector<2x32xf32>
    %784 = math.tanh %783 : vector<2x32xf32>
    %785 = vector.extract_strided_slice %766 {offsets = [0, 96], sizes = [2, 32], strides = [1, 1]} : vector<2x128xf32> to vector<2x32xf32>
    %786 = arith.negf %785 : vector<2x32xf32>
    %787 = math.exp %786 : vector<2x32xf32>
    %cst_160 = arith.constant 1.000000e+00 : f32
    %788 = vector.broadcast %cst_160 : f32 to vector<2x32xf32>
    %789 = arith.addf %788, %787 : vector<2x32xf32>
    %790 = arith.divf %788, %789 : vector<2x32xf32>
    %791 = arith.mulf %782, %735 : vector<2x32xf32>
    %792 = arith.mulf %776, %784 : vector<2x32xf32>
    %793 = arith.addf %791, %792 : vector<2x32xf32>
    %794 = math.tanh %793 : vector<2x32xf32>
    %795 = arith.mulf %790, %794 : vector<2x32xf32>
    %796 = vector.extract_strided_slice %770 {offsets = [0, 0], sizes = [2, 32], strides = [1, 1]} : vector<2x128xf32> to vector<2x32xf32>
    %797 = arith.negf %796 : vector<2x32xf32>
    %798 = math.exp %797 : vector<2x32xf32>
    %cst_161 = arith.constant 1.000000e+00 : f32
    %799 = vector.broadcast %cst_161 : f32 to vector<2x32xf32>
    %800 = arith.addf %799, %798 : vector<2x32xf32>
    %801 = arith.divf %799, %800 : vector<2x32xf32>
    %802 = vector.extract_strided_slice %770 {offsets = [0, 32], sizes = [2, 32], strides = [1, 1]} : vector<2x128xf32> to vector<2x32xf32>
    %803 = arith.negf %802 : vector<2x32xf32>
    %804 = math.exp %803 : vector<2x32xf32>
    %cst_162 = arith.constant 1.000000e+00 : f32
    %805 = vector.broadcast %cst_162 : f32 to vector<2x32xf32>
    %806 = arith.addf %805, %804 : vector<2x32xf32>
    %807 = arith.divf %805, %806 : vector<2x32xf32>
    %808 = vector.extract_strided_slice %770 {offsets = [0, 64], sizes = [2, 32], strides = [1, 1]} : vector<2x128xf32> to vector<2x32xf32>
    %809 = math.tanh %808 : vector<2x32xf32>
    %810 = vector.extract_strided_slice %770 {offsets = [0, 96], sizes = [2, 32], strides = [1, 1]} : vector<2x128xf32> to vector<2x32xf32>
    %811 = arith.negf %810 : vector<2x32xf32>
    %812 = math.exp %811 : vector<2x32xf32>
    %cst_163 = arith.constant 1.000000e+00 : f32
    %813 = vector.broadcast %cst_163 : f32 to vector<2x32xf32>
    %814 = arith.addf %813, %812 : vector<2x32xf32>
    %815 = arith.divf %813, %814 : vector<2x32xf32>
    %816 = arith.mulf %807, %760 : vector<2x32xf32>
    %817 = arith.mulf %801, %809 : vector<2x32xf32>
    %818 = arith.addf %816, %817 : vector<2x32xf32>
    %819 = math.tanh %818 : vector<2x32xf32>
    %820 = arith.mulf %815, %819 : vector<2x32xf32>
    %c28_164 = arith.constant 28 : index
    %c0_165 = arith.constant 0 : index
    %821 = vector.load %arg1[%c28_164, %c0_165] : memref<32x128xf32, #tpu.memory_space<vmem>>, vector<2x128xf32>
    %822 = arith.truncf %795 : vector<2x32xf32> to vector<2x32xbf16>
    %cst_166 = arith.constant dense<0.000000e+00> : vector<2x128xf32>
    %823 = tpu.matmul %822, %3, %cst_166 {dimension_numbers = #tpu.dot_dimension_numbers<[1], [0], [0], [1], [0, 0, 1, 1], [], []>} : vector<2x32xbf16>, vector<32x128xbf16>, vector<2x128xf32> -> vector<2x128xf32>
    %824 = arith.addf %821, %823 : vector<2x128xf32>
    %c2_167 = arith.constant 2 : index
    %c0_168 = arith.constant 0 : index
    %825 = vector.load %arg2[%c2_167, %c0_168] : memref<32x128xf32, #tpu.memory_space<vmem>>, vector<2x128xf32>
    %826 = arith.truncf %820 : vector<2x32xf32> to vector<2x32xbf16>
    %cst_169 = arith.constant dense<0.000000e+00> : vector<2x128xf32>
    %827 = tpu.matmul %826, %4, %cst_169 {dimension_numbers = #tpu.dot_dimension_numbers<[1], [0], [0], [1], [0, 0, 1, 1], [], []>} : vector<2x32xbf16>, vector<32x128xbf16>, vector<2x128xf32> -> vector<2x128xf32>
    %828 = arith.addf %825, %827 : vector<2x128xf32>
    %829 = vector.extract_strided_slice %824 {offsets = [0, 0], sizes = [2, 32], strides = [1, 1]} : vector<2x128xf32> to vector<2x32xf32>
    %830 = arith.negf %829 : vector<2x32xf32>
    %831 = math.exp %830 : vector<2x32xf32>
    %cst_170 = arith.constant 1.000000e+00 : f32
    %832 = vector.broadcast %cst_170 : f32 to vector<2x32xf32>
    %833 = arith.addf %832, %831 : vector<2x32xf32>
    %834 = arith.divf %832, %833 : vector<2x32xf32>
    %835 = vector.extract_strided_slice %824 {offsets = [0, 32], sizes = [2, 32], strides = [1, 1]} : vector<2x128xf32> to vector<2x32xf32>
    %836 = arith.negf %835 : vector<2x32xf32>
    %837 = math.exp %836 : vector<2x32xf32>
    %cst_171 = arith.constant 1.000000e+00 : f32
    %838 = vector.broadcast %cst_171 : f32 to vector<2x32xf32>
    %839 = arith.addf %838, %837 : vector<2x32xf32>
    %840 = arith.divf %838, %839 : vector<2x32xf32>
    %841 = vector.extract_strided_slice %824 {offsets = [0, 64], sizes = [2, 32], strides = [1, 1]} : vector<2x128xf32> to vector<2x32xf32>
    %842 = math.tanh %841 : vector<2x32xf32>
    %843 = vector.extract_strided_slice %824 {offsets = [0, 96], sizes = [2, 32], strides = [1, 1]} : vector<2x128xf32> to vector<2x32xf32>
    %844 = arith.negf %843 : vector<2x32xf32>
    %845 = math.exp %844 : vector<2x32xf32>
    %cst_172 = arith.constant 1.000000e+00 : f32
    %846 = vector.broadcast %cst_172 : f32 to vector<2x32xf32>
    %847 = arith.addf %846, %845 : vector<2x32xf32>
    %848 = arith.divf %846, %847 : vector<2x32xf32>
    %849 = arith.mulf %840, %793 : vector<2x32xf32>
    %850 = arith.mulf %834, %842 : vector<2x32xf32>
    %851 = arith.addf %849, %850 : vector<2x32xf32>
    %852 = math.tanh %851 : vector<2x32xf32>
    %853 = arith.mulf %848, %852 : vector<2x32xf32>
    %854 = vector.extract_strided_slice %828 {offsets = [0, 0], sizes = [2, 32], strides = [1, 1]} : vector<2x128xf32> to vector<2x32xf32>
    %855 = arith.negf %854 : vector<2x32xf32>
    %856 = math.exp %855 : vector<2x32xf32>
    %cst_173 = arith.constant 1.000000e+00 : f32
    %857 = vector.broadcast %cst_173 : f32 to vector<2x32xf32>
    %858 = arith.addf %857, %856 : vector<2x32xf32>
    %859 = arith.divf %857, %858 : vector<2x32xf32>
    %860 = vector.extract_strided_slice %828 {offsets = [0, 32], sizes = [2, 32], strides = [1, 1]} : vector<2x128xf32> to vector<2x32xf32>
    %861 = arith.negf %860 : vector<2x32xf32>
    %862 = math.exp %861 : vector<2x32xf32>
    %cst_174 = arith.constant 1.000000e+00 : f32
    %863 = vector.broadcast %cst_174 : f32 to vector<2x32xf32>
    %864 = arith.addf %863, %862 : vector<2x32xf32>
    %865 = arith.divf %863, %864 : vector<2x32xf32>
    %866 = vector.extract_strided_slice %828 {offsets = [0, 64], sizes = [2, 32], strides = [1, 1]} : vector<2x128xf32> to vector<2x32xf32>
    %867 = math.tanh %866 : vector<2x32xf32>
    %868 = vector.extract_strided_slice %828 {offsets = [0, 96], sizes = [2, 32], strides = [1, 1]} : vector<2x128xf32> to vector<2x32xf32>
    %869 = arith.negf %868 : vector<2x32xf32>
    %870 = math.exp %869 : vector<2x32xf32>
    %cst_175 = arith.constant 1.000000e+00 : f32
    %871 = vector.broadcast %cst_175 : f32 to vector<2x32xf32>
    %872 = arith.addf %871, %870 : vector<2x32xf32>
    %873 = arith.divf %871, %872 : vector<2x32xf32>
    %874 = arith.mulf %865, %818 : vector<2x32xf32>
    %875 = arith.mulf %859, %867 : vector<2x32xf32>
    %876 = arith.addf %874, %875 : vector<2x32xf32>
    %877 = math.tanh %876 : vector<2x32xf32>
    %878 = arith.mulf %873, %877 : vector<2x32xf32>
    %c30_176 = arith.constant 30 : index
    %c0_177 = arith.constant 0 : index
    %879 = vector.load %arg1[%c30_176, %c0_177] : memref<32x128xf32, #tpu.memory_space<vmem>>, vector<2x128xf32>
    %880 = arith.truncf %853 : vector<2x32xf32> to vector<2x32xbf16>
    %cst_178 = arith.constant dense<0.000000e+00> : vector<2x128xf32>
    %881 = tpu.matmul %880, %3, %cst_178 {dimension_numbers = #tpu.dot_dimension_numbers<[1], [0], [0], [1], [0, 0, 1, 1], [], []>} : vector<2x32xbf16>, vector<32x128xbf16>, vector<2x128xf32> -> vector<2x128xf32>
    %882 = arith.addf %879, %881 : vector<2x128xf32>
    %c0_179 = arith.constant 0 : index
    %c0_180 = arith.constant 0 : index
    %883 = vector.load %arg2[%c0_179, %c0_180] : memref<32x128xf32, #tpu.memory_space<vmem>>, vector<2x128xf32>
    %884 = arith.truncf %878 : vector<2x32xf32> to vector<2x32xbf16>
    %cst_181 = arith.constant dense<0.000000e+00> : vector<2x128xf32>
    %885 = tpu.matmul %884, %4, %cst_181 {dimension_numbers = #tpu.dot_dimension_numbers<[1], [0], [0], [1], [0, 0, 1, 1], [], []>} : vector<2x32xbf16>, vector<32x128xbf16>, vector<2x128xf32> -> vector<2x128xf32>
    %886 = arith.addf %883, %885 : vector<2x128xf32>
    %887 = vector.extract_strided_slice %882 {offsets = [0, 0], sizes = [2, 32], strides = [1, 1]} : vector<2x128xf32> to vector<2x32xf32>
    %888 = arith.negf %887 : vector<2x32xf32>
    %889 = math.exp %888 : vector<2x32xf32>
    %cst_182 = arith.constant 1.000000e+00 : f32
    %890 = vector.broadcast %cst_182 : f32 to vector<2x32xf32>
    %891 = arith.addf %890, %889 : vector<2x32xf32>
    %892 = arith.divf %890, %891 : vector<2x32xf32>
    %893 = vector.extract_strided_slice %882 {offsets = [0, 32], sizes = [2, 32], strides = [1, 1]} : vector<2x128xf32> to vector<2x32xf32>
    %894 = arith.negf %893 : vector<2x32xf32>
    %895 = math.exp %894 : vector<2x32xf32>
    %cst_183 = arith.constant 1.000000e+00 : f32
    %896 = vector.broadcast %cst_183 : f32 to vector<2x32xf32>
    %897 = arith.addf %896, %895 : vector<2x32xf32>
    %898 = arith.divf %896, %897 : vector<2x32xf32>
    %899 = vector.extract_strided_slice %882 {offsets = [0, 64], sizes = [2, 32], strides = [1, 1]} : vector<2x128xf32> to vector<2x32xf32>
    %900 = math.tanh %899 : vector<2x32xf32>
    %901 = vector.extract_strided_slice %882 {offsets = [0, 96], sizes = [2, 32], strides = [1, 1]} : vector<2x128xf32> to vector<2x32xf32>
    %902 = arith.negf %901 : vector<2x32xf32>
    %903 = math.exp %902 : vector<2x32xf32>
    %cst_184 = arith.constant 1.000000e+00 : f32
    %904 = vector.broadcast %cst_184 : f32 to vector<2x32xf32>
    %905 = arith.addf %904, %903 : vector<2x32xf32>
    %906 = arith.divf %904, %905 : vector<2x32xf32>
    %907 = arith.mulf %898, %851 : vector<2x32xf32>
    %908 = arith.mulf %892, %900 : vector<2x32xf32>
    %909 = arith.addf %907, %908 : vector<2x32xf32>
    %910 = math.tanh %909 : vector<2x32xf32>
    %911 = arith.mulf %906, %910 : vector<2x32xf32>
    %912 = vector.extract_strided_slice %886 {offsets = [0, 0], sizes = [2, 32], strides = [1, 1]} : vector<2x128xf32> to vector<2x32xf32>
    %913 = arith.negf %912 : vector<2x32xf32>
    %914 = math.exp %913 : vector<2x32xf32>
    %cst_185 = arith.constant 1.000000e+00 : f32
    %915 = vector.broadcast %cst_185 : f32 to vector<2x32xf32>
    %916 = arith.addf %915, %914 : vector<2x32xf32>
    %917 = arith.divf %915, %916 : vector<2x32xf32>
    %918 = vector.extract_strided_slice %886 {offsets = [0, 32], sizes = [2, 32], strides = [1, 1]} : vector<2x128xf32> to vector<2x32xf32>
    %919 = arith.negf %918 : vector<2x32xf32>
    %920 = math.exp %919 : vector<2x32xf32>
    %cst_186 = arith.constant 1.000000e+00 : f32
    %921 = vector.broadcast %cst_186 : f32 to vector<2x32xf32>
    %922 = arith.addf %921, %920 : vector<2x32xf32>
    %923 = arith.divf %921, %922 : vector<2x32xf32>
    %924 = vector.extract_strided_slice %886 {offsets = [0, 64], sizes = [2, 32], strides = [1, 1]} : vector<2x128xf32> to vector<2x32xf32>
    %925 = math.tanh %924 : vector<2x32xf32>
    %926 = vector.extract_strided_slice %886 {offsets = [0, 96], sizes = [2, 32], strides = [1, 1]} : vector<2x128xf32> to vector<2x32xf32>
    %927 = arith.negf %926 : vector<2x32xf32>
    %928 = math.exp %927 : vector<2x32xf32>
    %cst_187 = arith.constant 1.000000e+00 : f32
    %929 = vector.broadcast %cst_187 : f32 to vector<2x32xf32>
    %930 = arith.addf %929, %928 : vector<2x32xf32>
    %931 = arith.divf %929, %930 : vector<2x32xf32>
    %932 = arith.mulf %923, %876 : vector<2x32xf32>
    %933 = arith.mulf %917, %925 : vector<2x32xf32>
    %934 = arith.addf %932, %933 : vector<2x32xf32>
    %935 = math.tanh %934 : vector<2x32xf32>
    %936 = arith.mulf %931, %935 : vector<2x32xf32>
    %c0_188 = arith.constant 0 : index
    %c0_189 = arith.constant 0 : index
    %937 = vector.load %arg9[%c0_188, %c0_189] : memref<2x32xf32, #tpu.memory_space<vmem>>, vector<2x32xf32>
    tpu.vector_store %arg9[%c0_188, %c0_189], %911 {strides = array<i32>} : memref<2x32xf32, #tpu.memory_space<vmem>>, vector<2x32xf32>,
    %c0_190 = arith.constant 0 : index
    %c0_191 = arith.constant 0 : index
    %938 = vector.load %arg10[%c0_190, %c0_191] : memref<2x32xf32, #tpu.memory_space<vmem>>, vector<2x32xf32>
    tpu.vector_store %arg10[%c0_190, %c0_191], %909 {strides = array<i32>} : memref<2x32xf32, #tpu.memory_space<vmem>>, vector<2x32xf32>,
    %c0_192 = arith.constant 0 : index
    %c0_193 = arith.constant 0 : index
    %939 = vector.load %arg11[%c0_192, %c0_193] : memref<2x32xf32, #tpu.memory_space<vmem>>, vector<2x32xf32>
    tpu.vector_store %arg11[%c0_192, %c0_193], %936 {strides = array<i32>} : memref<2x32xf32, #tpu.memory_space<vmem>>, vector<2x32xf32>,
    %c0_194 = arith.constant 0 : index
    %c0_195 = arith.constant 0 : index
    %940 = vector.load %arg12[%c0_194, %c0_195] : memref<2x32xf32, #tpu.memory_space<vmem>>, vector<2x32xf32>
    tpu.vector_store %arg12[%c0_194, %c0_195], %934 {strides = array<i32>} : memref<2x32xf32, #tpu.memory_space<vmem>>, vector<2x32xf32>,
    %c0_i32_196 = arith.constant 0 : i32
    %941 = arith.cmpi eq, %arg0, %c0_i32_196 : i32
    %942 = arith.extui %941 : i1 to i32
    %c0_i32_197 = arith.constant 0 : i32
    %943 = arith.cmpi ne, %942, %c0_i32_197 : i32
    scf.if %943 {
      %c0_198 = arith.constant 0 : index
      %c0_199 = arith.constant 0 : index
      %944 = vector.load %arg5[%c0_198, %c0_199] : memref<32x4xf32, #tpu.memory_space<vmem>>, vector<32x4xf32>
      %cst_200 = arith.constant dense<0.000000e+00> : vector<2x4xf32>
      %945 = tpu.matmul %911, %944, %cst_200 {dimension_numbers = #tpu.dot_dimension_numbers<[1], [0], [0], [1], [0, 0, 1, 1], [], []>} : vector<2x32xf32>, vector<32x4xf32>, vector<2x4xf32> -> vector<2x4xf32>
      %c0_201 = arith.constant 0 : index
      %c0_202 = arith.constant 0 : index
      %946 = vector.load %arg6[%c0_201, %c0_202] : memref<32x4xf32, #tpu.memory_space<vmem>>, vector<32x4xf32>
      %cst_203 = arith.constant dense<0.000000e+00> : vector<2x4xf32>
      %947 = tpu.matmul %936, %946, %cst_203 {dimension_numbers = #tpu.dot_dimension_numbers<[1], [0], [0], [1], [0, 0, 1, 1], [], []>} : vector<2x32xf32>, vector<32x4xf32>, vector<2x4xf32> -> vector<2x4xf32>
      %948 = arith.addf %945, %947 : vector<2x4xf32>
      %c0_204 = arith.constant 0 : index
      %c0_205 = arith.constant 0 : index
      %949 = vector.load %arg7[%c0_204, %c0_205] : memref<1x4xf32, #tpu.memory_space<vmem>>, vector<1x4xf32>
      %950 = vector.broadcast %949 : vector<1x4xf32> to vector<2x4xf32>
      %951 = arith.addf %948, %950 : vector<2x4xf32>
      %c0_206 = arith.constant 0 : index
      %c0_207 = arith.constant 0 : index
      %952 = vector.load %arg8[%c0_206, %c0_207] : memref<2x4xf32, #tpu.memory_space<vmem>>, vector<2x4xf32>
      tpu.vector_store %arg8[%c0_206, %c0_207], %951 {strides = array<i32>} : memref<2x4xf32, #tpu.memory_space<vmem>>, vector<2x4xf32>,
    } else {
    }
    return
  }
  func.func @transform_0(%arg0: i32) -> (i32, i32) {
    %c0_i32 = arith.constant 0 : i32
    %c0_i32_0 = arith.constant 0 : i32
    return %arg0, %c0_i32 : i32, i32
  }
  func.func @transform_1(%arg0: i32) -> (i32, i32) {
    %c0_i32 = arith.constant 0 : i32
    %0 = arith.subi %c0_i32, %arg0 : i32
    %c0_i32_0 = arith.constant 0 : i32
    %c0_i32_1 = arith.constant 0 : i32
    return %0, %c0_i32_0 : i32, i32
  }
  func.func @transform_2(%arg0: i32) -> (i32, i32) {
    %c0_i32 = arith.constant 0 : i32
    %c0_i32_0 = arith.constant 0 : i32
    %c0_i32_1 = arith.constant 0 : i32
    return %c0_i32, %c0_i32_0 : i32, i32
  }
  func.func @transform_3(%arg0: i32) -> (i32, i32) {
    %c0_i32 = arith.constant 0 : i32
    %c0_i32_0 = arith.constant 0 : i32
    %c0_i32_1 = arith.constant 0 : i32
    return %c0_i32, %c0_i32_0 : i32, i32
  }
  func.func @transform_4(%arg0: i32) -> (i32, i32) {
    %c0_i32 = arith.constant 0 : i32
    %c0_i32_0 = arith.constant 0 : i32
    %c0_i32_1 = arith.constant 0 : i32
    return %c0_i32, %c0_i32_0 : i32, i32
  }
  func.func @transform_5(%arg0: i32) -> (i32, i32) {
    %c0_i32 = arith.constant 0 : i32
    %c0_i32_0 = arith.constant 0 : i32
    %c0_i32_1 = arith.constant 0 : i32
    return %c0_i32, %c0_i32_0 : i32, i32
  }
  func.func @transform_6(%arg0: i32) -> (i32, i32) {
    %c0_i32 = arith.constant 0 : i32
    %c0_i32_0 = arith.constant 0 : i32
    %c0_i32_1 = arith.constant 0 : i32
    return %c0_i32, %c0_i32_0 : i32, i32
  }
  func.func @transform_7(%arg0: i32) -> (i32, i32) {
    %c0_i32 = arith.constant 0 : i32
    %c0_i32_0 = arith.constant 0 : i32
    %c0_i32_1 = arith.constant 0 : i32
    return %c0_i32, %c0_i32_0 : i32, i32
  }
}

</mosaic_0001>

<bundles_post_ra>
// kernel: mmwavoice_forward.2
= control target key start
LH: loop header
LB: loop body
LE: loop exit
PB: predicated region body
PF: predicated region fallthrough
CT: control target
= control target key end

     0   :  { %vm95_vm0 = vcmask 261120   ;;  %s401_s4 = inlined_call_operand.vmem [shape: bf16[32,128], index: 4, kind: input, shape index: {}]   ;;  %s402_s5 = inlined_call_operand.vmem [shape: bf16[32,128], index: 5, kind: input, shape index: {}]   ;;  %s403_s0 = inlined_call_operand.vmem [shape: f32[32,32], index: 0, kind: input, shape index: {}]   ;;  %s404_s2 = inlined_call_operand.vmem [shape: f32[1,32], index: 2, kind: input, shape index: {}]   ;;  %s405_s1 = inlined_call_operand.vmem [shape: f32[32,32], index: 1, kind: input, shape index: {}]   ;;  %s406_s3 = inlined_call_operand.vmem [shape: f32[1,32], index: 3, kind: input, shape index: {}]   ;;  %s407_s6 = inlined_call_operand.vmem [shape: f32[1,128], index: 6, kind: input, shape index: {}]   ;;  %s408_s7 = inlined_call_operand.vmem [shape: f32[1,128], index: 7, kind: input, shape index: {}]   ;;  %s409_s8 = inlined_call_operand.vmem [shape: f32[32,128], index: 8, kind: output, shape index: {0}]   ;;  %s410_s9 = inlined_call_operand.vmem [shape: f32[32,128], index: 9, kind: output, shape index: {1}]  }
   0x1   :  { %v275_v0 = vld [vmem:[%s401_s4] sm:$0xff]   ;;  %v277_v2 = vld [vmem:[%s401_s4 + $0x8] sm:$0xff]   ;;  %v34_v14 = vld [vmem:[%s403_s0 + $0x10] sm:$0xff] }
   0x2   :  { %v276_v1 = vld [vmem:[%s402_s5] sm:$0xff]   ;;  %259 = vmatprep.subr.bf16.mxu0 %v275_v0  ;;  %v278_v3 = vld [vmem:[%s402_s5 + $0x8] sm:$0xff]   ;;  %v35_v15 = vld [vmem:[%s403_s0 + $0x18] sm:$0xff] }
   0x3   :  { %267 = vmatprep.subr.bf16.mxu1 %v276_v1  ;;  %260 = vmatpush3.bf16.msra.mxu0 %v275_v0  ;;  %v32_v4 = vld [vmem:[%s403_s0] sm:$0xff]  ;;  %v33_v5 = vld [vmem:[%s403_s0 + $0x8] sm:$0xff]  ;;  %v49_v16 = vld [vmem:[%s405_s1 + $0x10] sm:$0xff] }
   0x4   :  { %268 = vmatpush3.bf16.msra.mxu1 %v276_v1  ;;  %261 = vmatprep.subr.bf16.mxu0 %v277_v2  ;;  %v239_v6 = vld [vmem:[%s404_s2] ss:$0 sm:$0xff]  ;;  %v48_v10 = vld [vmem:[%s405_s1 + $0x8] sm:$0xff]  ;;  %v50_v19 = vld [vmem:[%s405_s1 + $0x18] sm:$0xff] }
   0x5   :  { %269 = vmatprep.subr.bf16.mxu1 %v278_v3  ;;  %v43_v7 = vmul.f32 %v239_v6, %v32_v4  ;;  %v44_v8 = vmul.f32 %v239_v6, %v33_v5  ;;  %v47_v9 = vld [vmem:[%s405_s1] sm:$0xff]  ;;  %v45_v17 = vmul.f32 %v239_v6, %v34_v14  ;;  %v46_v18 = vmul.f32 %v239_v6, %v35_v15 }
   0x6   :  { %v240_v11 = vld [vmem:[%s406_s3] ss:$0 sm:$0xff] }
   0x7   :  { %v58_v12 = vmul.f32 %v240_v11, %v47_v9  ;;  %v59_v13 = vmul.f32 %v240_v11, %v48_v10  ;;  %262 = vmatpush3.bf16.msra.mxu0 %v277_v2  ;;  %v60_v20 = vmul.f32 %v240_v11, %v49_v16  ;;  %v61_v23 = vmul.f32 %v240_v11, %v50_v19  ;;  %v241_v32 = vld [vmem:[%s407_s6] ss:$0 sm:$0xff] }
   0x8   :  { %270 = vmatpush3.bf16.msra.mxu1 %v278_v3  ;;  %v246_v33 = vld [vmem:[%s408_s7] ss:$0 sm:$0xff] }
   0x9   :  { %v62_v21 = vadd.f32 %v58_v12, %v43_v7  ;;  %v63_v22 = vadd.f32 %v59_v13, %v44_v8  ;;  %v64_v24 = vadd.f32 %v60_v20, %v45_v17  ;;  %v65_v27 = vadd.f32 %v61_v23, %v46_v18 }
   0xb   :  { %v66_v25 = vmax.f32 %v62_v21, 0.0  ;;  %v67_v26 = vmax.f32 %v63_v22, 0.0  ;;  %v68_v28 = vmax.f32 %v64_v24, 0.0  ;;  %v69_v30 = vmax.f32 %v65_v27, 0.0 }
   0xd   :  { %v70_v29 = vpack.c.bf16 %v67_v26, %v66_v25  ;;  %v71_v31 = vpack.c.bf16 %v69_v30, %v68_v28 }
   0xf   :  { %263 = vmatprep.mubr.msk.bf16.mxu0 %vm95_vm0, %v70_v29  ;;  %271 = vmatprep.mubr.msk.bf16.mxu1 %vm95_vm0, %v70_v29 }
  0x10   :  { %264 = vmatmul.mubr.msk.bf16.vlgmr.msra.gmra.mrb[0].mxu0 %vm95_vm0, %v71_v31  ;;  %272 = vmatmul.mubr.msk.bf16.vlgmr.msra.gmra.mrb[0].mxu1 %vm95_vm0, %v71_v31 }
  0xe3   :  { %v265_v34 = vpop.f32.mrb[0].mxu0  ;;  %v273_v35 = vpop.f32.mrb[0].mxu1 }
  0xe4   :  { %v145_v36 = vadd.f32 %v265_v34, %v241_v32  ;;  %v221_v37 = vadd.f32 %v273_v35, %v246_v33  ;;  %v136_v38 = vpop.f32.mrb[1].mxu0  ;;  %v212_v39 = vpop.f32.mrb[1].mxu1 }
  0xe5   :  { %v137_v40 = vadd.f32 %v241_v32, %v136_v38  ;;  %v213_v41 = vadd.f32 %v246_v33, %v212_v39  ;;  %v266_v42 = vpop.f32.mrb[2].mxu0  ;;  %v274_v43 = vpop.f32.mrb[2].mxu1 }
  0xe6   :  { %153 = vst [vmem:[%s409_s8 + $0x10] sm:$0xff] %v145_v36  ;;  %229 = vst [vmem:[%s410_s9 + $0x10] sm:$0xff] %v221_v37  ;;  %v148_v44 = vadd.f32 %v266_v42, %v241_v32  ;;  %v224_v45 = vadd.f32 %v274_v43, %v246_v33  ;;  %v139_v46 = vpop.f32.mrb[3].mxu0  ;;  %v215_v47 = vpop.f32.mrb[3].mxu1 }
  0xe7   :  { %151 = vst [vmem:[%s409_s8] sm:$0xff] %v137_v40  ;;  %227 = vst [vmem:[%s410_s9] sm:$0xff] %v213_v41  ;;  %v140_v48 = vadd.f32 %v241_v32, %v139_v46  ;;  %v216_v49 = vadd.f32 %v246_v33, %v215_v47 }
  0xe8   :  { %154 = vst [vmem:[%s409_s8 + $0x18] sm:$0xff] %v148_v44  ;;  %230 = vst [vmem:[%s410_s9 + $0x18] sm:$0xff] %v224_v45 }
  0xe9   :  { %152 = vst [vmem:[%s409_s8 + $0x8] sm:$0xff] %v140_v48  ;;  %228 = vst [vmem:[%s410_s9 + $0x8] sm:$0xff] %v216_v49 }

// kernel: mmwavoice_forward.3
= control target key start
LH: loop header
LB: loop body
LE: loop exit
PB: predicated region body
PF: predicated region fallthrough
CT: control target
= control target key end

     0   :  { %v3402_v1 = vmov 0.0   ;;  %vm3403_vm0 = vmmov 0   ;;  %vm54_vm1 = vcmask 254976   ;;  %s4108_s0 = inlined_call_operand.vmem [shape: f32[32,128], index: 0, kind: input, shape index: {}]   ;;  %s4109_s1 = inlined_call_operand.vmem [shape: f32[32,128], index: 1, kind: input, shape index: {}]   ;;  %s4110_s2 = inlined_call_operand.vmem [shape: bf16[32,128], index: 2, kind: input, shape index: {}]   ;;  %s4111_s3 = inlined_call_operand.vmem [shape: bf16[32,128], index: 3, kind: input, shape index: {}]   ;;  %s4112_s4 = inlined_call_operand.vmem [shape: f32[32,4], index: 4, kind: input, shape index: {}]   ;;  %s4113_s5 = inlined_call_operand.vmem [shape: f32[32,4], index: 5, kind: input, shape index: {}]   ;;  %s4114_s6 = inlined_call_operand.vmem [shape: f32[1,4], index: 6, kind: input, shape index: {}]   ;;  %s4115_s7 = inlined_call_operand.hbm [shape: f32[2,4], index: 7, kind: output, shape index: {}]  }
   0x1   :  { %v3452_v0 = vld [vmem:[%s4110_s2] sm:$0xff]   ;;  %2817 = vmatprep.subr.bf16.mxu0 %v3402_v1  ;;  %2825 = vmatprep.subr.bf16.mxu1 %v3402_v1  ;;  %v3465_v3 = vld [vmem:[%s4110_s2 + $0x8] sm:$0xff]   ;;  %55 = vst.msk [vmem:[#allocation2] sm:$0x3] %vm54_vm1, %v3402_v1  ;;  %56 = vst.msk [vmem:[#allocation3] sm:$0x3] %vm54_vm1, %v3402_v1 }
   0x2   :  { %v3459_v2 = vld [vmem:[%s4111_s3] sm:$0xff]   ;;  %2818 = vmatpush3.bf16.msra.mxu0 %v3452_v0  ;;  %2821 = vmatprep.mubr.msk.bf16.mxu0 %vm3403_vm0, %v3402_v1  ;;  %v3474_v4 = vld [vmem:[%s4111_s3 + $0x8] sm:$0xff]   ;;  %57 = vst.msk [vmem:[#allocation4] sm:$0x3] %vm54_vm1, %v3402_v1  ;;  %58 = vst.msk [vmem:[#allocation5] sm:$0x3] %vm54_vm1, %v3402_v1 }
   0x3   :  { %2826 = vmatpush3.bf16.msra.mxu1 %v3459_v2  ;;  %2819 = vmatprep.subr.bf16.mxu0 %v3402_v1 }
   0x4   :  { %2827 = vmatprep.subr.bf16.mxu1 %v3402_v1  ;;  %2829 = vmatprep.mubr.msk.bf16.mxu1 %vm3403_vm0, %v3402_v1 }
   0x5   :  { %12 = vsyncpa [#allocation7], 0  ;;  %vm85_vm2 = vcmask 261120   ;;  %s3404_s9 = smov 32   ;;  %v71_v11 = vld [vmem:[%s4108_s0] sm:$0x3] }
   0x6   :  { %2820 = vmatpush3.bf16.msra.mxu0 %v3465_v3  ;;  %v130_v12 = vld [vmem:[%s4109_s1 + $0x1e] sm:$0x3]  ;;  %s3405_s14 = smov 64   ;;  %v244_v55 = vld [vmem:[%s4108_s0 + $0x2] sm:$0x3]  ;;  %vm2618_vm3 = vcmask 25600  }
   0x7   :  { %2828 = vmatpush3.bf16.msra.mxu1 %v3474_v4  ;;  %2833 = vmatprep.subr.bf16.mxu0 %v3402_v1  ;;  %v293_v60 = vld [vmem:[%s4109_s1 + $0x1c] sm:$0x3] }
   0x8   :  { %2841 = vmatprep.subr.bf16.mxu1 %v3402_v1  ;;  %v67_v5 = vld [vmem:[#allocation2] sm:$0x3]  ;;  %v68_v7 = vld [vmem:[#allocation3] sm:$0x3] }
   0x9   :  { %v69_v6 = vld [vmem:[#allocation4] sm:$0x3]  ;;  %v72_v8 = vpack.c.bf16 %v67_v5, %v67_v5  ;;  %196 = vrot.lane.b32.xlu1 %v68_v7, %s3404_s9  ;;  %v70_v10 = vld [vmem:[#allocation5] sm:$0x3] }
   0xa   :  { %v131_v9 = vpack.c.bf16 %v69_v6, %v69_v6 }
   0xb   :  { %2822 = vmatmul.mubr.msk.bf16.vlgmr.msra.gmra.mrb[0].mxu0 %vm85_vm2, %v72_v8 }
   0xc   :  { %2830 = vmatmul.mubr.msk.bf16.vlgmr.msra.gmra.mrb[0].mxu1 %vm85_vm2, %v131_v9  ;;  %2834 = vmatpush3.bf16.msra.mxu0 %v3452_v0 }
   0xd   :  { %2842 = vmatpush3.bf16.msra.mxu1 %v3459_v2  ;;  %224 = vrot.lane.b32.xlu1 %v70_v10, %s3404_s9 }
   0xe   :  { %2835 = vmatprep.subr.bf16.mxu0 %v3402_v1  ;;  %2837 = vmatprep.mubr.msk.bf16.mxu0 %vm3403_vm0, %v3402_v1 }
   0xf   :  { %2843 = vmatprep.subr.bf16.mxu1 %v3402_v1  ;;  %2845 = vmatprep.mubr.msk.bf16.mxu1 %vm3403_vm0, %v3402_v1 }
  0x10   :  { %2836 = vmatpush3.bf16.msra.mxu0 %v3465_v3 }
  0x11   :  { %2844 = vmatpush3.bf16.msra.mxu1 %v3474_v4  ;;  %2849 = vmatprep.subr.bf16.mxu0 %v3402_v1 }
  0x12   :  { %2857 = vmatprep.subr.bf16.mxu1 %v3402_v1 }
  0x7b   :  { %v197_v37 = vpop.permute.xlu1 %196 }
  0x7f   :  { %v225_v39 = vpop.permute.xlu1 %224 }
  0xde   :  { %v123_v13 = vpop.f32.mrb[0].mxu0 }
  0xdf   :  { %v181_v14 = vpop.f32.mrb[0].mxu1  ;;  %v129_v15 = vadd.f32 %v123_v13, %v71_v11  ;;  %v2823_v16 = vpop.f32.mrb[1].mxu0 }
  0xe0   :  { %v187_v17 = vadd.f32 %v181_v14, %v130_v12  ;;  %v2831_v18 = vpop.f32.mrb[1].mxu1  ;;  %v126_v19 = vpop.f32.mrb[2].mxu0 }
  0xe1   :  { %v184_v20 = vpop.f32.mrb[2].mxu1  ;;  %3118 = vtanh.f32 %v129_v15  ;;  %v2824_v21 = vpop.f32.mrb[3].mxu0  ;;  %v2646_v25 = vmul.f32 -1.442695, %v129_v15 }
  0xe2   :  { %v2832_v22 = vpop.f32.mrb[3].mxu1  ;;  %3120 = vtanh.f32 %v187_v17  ;;  %v2647_v26 = vmul.f32 -1.442695, %v187_v17 }
  0xe3   :  { %3122 = vpow2.f32 %v2646_v25 }
  0xe4   :  { %3124 = vpow2.f32 %v2647_v26 }
  0xeb   :  { %v3119_v23 = vpop.eup %3118 }
  0xec   :  { %201 = vrot.lane.b32.xlu0 %v3119_v23, %s3405_s14  ;;  %v3121_v24 = vpop.eup %3120 }
  0xed   :  { %v3123_v27 = vpop.eup %3122 }
  0xee   :  { %v191_v28 = vadd.f32 1.0, %v3123_v27  ;;  %v3125_v29 = vpop.eup %3124 }
  0xef   :  { %v219_v30 = vadd.f32 1.0, %v3125_v29 }
  0xf0   :  { %229 = vrot.lane.b32.xlu0 %v3121_v24, %s3405_s14  ;;  %3126 = vrcp.f32 %v191_v28 }
  0xf1   :  { %3128 = vrcp.f32 %v219_v30 }
  0xfa   :  { %v3127_v31 = vpop.eup %3126 }
  0xfb   :  { %v3129_v34 = vpop.eup %3128  ;;  %v199_v38 = vmul.f32 %v3127_v31, %v197_v37 }
  0xfc   :  { %v227_v42 = vmul.f32 %v3129_v34, %v225_v39 }
 0x15e   :  { %v202_v32 = vpop.permute.xlu0 %201 }
 0x15f   :  { %v204_v33 = vmul.f32 %v3127_v31, %v202_v32 }
 0x161   :  { %206 = vrot.lane.b32.xlu0 %v204_v33, %s3404_s9 }
 0x162   :  { %v230_v35 = vpop.permute.xlu0 %229 }
 0x163   :  { %v232_v36 = vmul.f32 %v3129_v34, %v230_v35 }
 0x165   :  { %234 = vrot.lane.b32.xlu1 %v232_v36, %s3404_s9 }
 0x1d3   :  { %v207_v40 = vpop.permute.xlu0 %206 }
 0x1d4   :  { %v3517_v41 = vadd.f32 %v207_v40, %v199_v38  ;;  %v390_v38 = vld [vmem:[%s4108_s0 + $0x4] sm:$0x3] }
 0x1d6   :  { %3130 = vtanh.f32 %v3517_v41 }
 0x1d7   :  { %v235_v43 = vpop.permute.xlu1 %234 }
 0x1d8   :  { %v3520_v44 = vadd.f32 %v235_v43, %v227_v42  ;;  %v439_v43 = vld [vmem:[%s4109_s1 + $0x1a] sm:$0x3] }
 0x1da   :  { %3132 = vtanh.f32 %v3520_v44 }
 0x1e0   :  { %v3131_v45 = vpop.eup %3130 }
 0x1e1   :  { %212 = vrot.lane.b32.xlu0 %v3131_v45, %s3405_s14 }
 0x1e4   :  { %v3133_v46 = vpop.eup %3132 }
 0x1e5   :  { %240 = vrot.lane.b32.xlu1 %v3133_v46, %s3405_s14 }
 0x253   :  { %v213_v47 = vpop.permute.xlu0 %212 }
 0x254   :  { %v215_v48 = vmul.f32 %v3127_v31, %v213_v47 }
 0x256   :  { %v245_v49 = vpack.c.bf16 %v215_v48, %v215_v48 }
 0x257   :  { %v241_v50 = vpop.permute.xlu1 %240 }
 0x258   :  { %v243_v51 = vmul.f32 %v3129_v34, %v241_v50  ;;  %247 = vrot.lane.b32.xlu0 %v245_v49, %s3404_s9 }
 0x25a   :  { %v294_v52 = vpack.c.bf16 %v243_v51, %v243_v51 }
 0x25c   :  { %296 = vrot.lane.b32.xlu1 %v294_v52, %s3404_s9 }
 0x2ca   :  { %v248_v53 = vpop.permute.xlu0 %247 }
 0x2cb   :  { %2838 = vmatmul.mubr.msk.bf16.vlgmr.msra.gmra.mrb[4].mxu0 %vm85_vm2, %v248_v53 }
 0x2cc   :  { %2850 = vmatpush3.bf16.msra.mxu0 %v3452_v0  ;;  %2853 = vmatprep.mubr.msk.bf16.mxu0 %vm3403_vm0, %v3402_v1 }
 0x2cd   :  { %2851 = vmatprep.subr.bf16.mxu0 %v3402_v1 }
 0x2ce   :  { %v297_v54 = vpop.permute.xlu1 %296 }
 0x2cf   :  { %2846 = vmatmul.mubr.msk.bf16.vlgmr.msra.gmra.mrb[4].mxu1 %vm85_vm2, %v297_v54 }
 0x2d0   :  { %2858 = vmatpush3.bf16.msra.mxu1 %v3459_v2  ;;  %2852 = vmatpush3.bf16.msra.mxu0 %v3465_v3 }
 0x2d1   :  { %2859 = vmatprep.subr.bf16.mxu1 %v3402_v1  ;;  %2861 = vmatprep.mubr.msk.bf16.mxu1 %vm3403_vm0, %v3402_v1 }
 0x2d2   :  { %2865 = vmatprep.subr.bf16.mxu0 %v3402_v1 }
 0x2d4   :  { %2860 = vmatpush3.bf16.msra.mxu1 %v3474_v4 }
 0x2d5   :  { %2873 = vmatprep.subr.bf16.mxu1 %v3402_v1 }
 0x39e   :  { %v286_v56 = vpop.f32.mrb[4].mxu0 }
 0x39f   :  { %v292_v57 = vadd.f32 %v286_v56, %v244_v55  ;;  %v2839_v58 = vpop.f32.mrb[5].mxu0 }
 0x3a0   :  { %v289_v59 = vpop.f32.mrb[6].mxu0 }
 0x3a1   :  { %3134 = vtanh.f32 %v292_v57  ;;  %v2840_v61 = vpop.f32.mrb[7].mxu0  ;;  %v2650_v10 = vmul.f32 -1.442695, %v292_v57 }
 0x3a2   :  { %v335_v62 = vpop.f32.mrb[4].mxu1 }
 0x3a3   :  { %v341_v63 = vadd.f32 %v335_v62, %v293_v60  ;;  %v2847_v5 = vpop.f32.mrb[5].mxu1 }
 0x3a4   :  { %v338_v6 = vpop.f32.mrb[6].mxu1 }
 0x3a5   :  { %3136 = vtanh.f32 %v341_v63  ;;  %v2848_v7 = vpop.f32.mrb[7].mxu1  ;;  %v2651_v11 = vmul.f32 -1.442695, %v341_v63 }
 0x3a6   :  { %3138 = vpow2.f32 %v2650_v10 }
 0x3a7   :  { %3140 = vpow2.f32 %v2651_v11 }
 0x3ab   :  { %v3135_v8 = vpop.eup %3134 }
 0x3ac   :  { %351 = vrot.lane.b32.xlu0 %v3135_v8, %s3405_s14 }
 0x3af   :  { %v3137_v9 = vpop.eup %3136 }
 0x3b0   :  { %375 = vrot.lane.b32.xlu1 %v3137_v9, %s3405_s14  ;;  %v3139_v12 = vpop.eup %3138 }
 0x3b1   :  { %v345_v13 = vadd.f32 1.0, %v3139_v12  ;;  %v3141_v14 = vpop.eup %3140 }
 0x3b2   :  { %v369_v15 = vadd.f32 1.0, %v3141_v14 }
 0x3b3   :  { %3142 = vrcp.f32 %v345_v13 }
 0x3b4   :  { %3144 = vrcp.f32 %v369_v15 }
 0x3bd   :  { %v3143_v16 = vpop.eup %3142 }
 0x3be   :  { %v3145_v19 = vpop.eup %3144  ;;  %v349_v22 = vmul.f32 %v3143_v16, %v3517_v41 }
 0x3bf   :  { %v373_v25 = vmul.f32 %v3145_v19, %v3520_v44 }
 0x41e   :  { %v352_v17 = vpop.permute.xlu0 %351 }
 0x41f   :  { %v354_v18 = vmul.f32 %v3143_v16, %v352_v17 }
 0x421   :  { %356 = vrot.lane.b32.xlu0 %v354_v18, %s3404_s9 }
 0x422   :  { %v376_v20 = vpop.permute.xlu1 %375 }
 0x423   :  { %v378_v21 = vmul.f32 %v3145_v19, %v376_v20 }
 0x425   :  { %380 = vrot.lane.b32.xlu1 %v378_v21, %s3404_s9  ;;  %v536_v21 = vld [vmem:[%s4108_s0 + $0x6] sm:$0x3] }
 0x493   :  { %v357_v23 = vpop.permute.xlu0 %356 }
 0x494   :  { %v3552_v24 = vadd.f32 %v357_v23, %v349_v22 }
 0x496   :  { %3146 = vtanh.f32 %v3552_v24 }
 0x497   :  { %v381_v26 = vpop.permute.xlu1 %380 }
 0x498   :  { %v3556_v27 = vadd.f32 %v381_v26, %v373_v25  ;;  %v585_v26 = vld [vmem:[%s4109_s1 + $0x18] sm:$0x3] }
 0x49a   :  { %3148 = vtanh.f32 %v3556_v27 }
 0x4a0   :  { %v3147_v28 = vpop.eup %3146 }
 0x4a1   :  { %362 = vrot.lane.b32.xlu0 %v3147_v28, %s3405_s14 }
 0x4a4   :  { %v3149_v29 = vpop.eup %3148 }
 0x4a5   :  { %386 = vrot.lane.b32.xlu1 %v3149_v29, %s3405_s14 }
 0x513   :  { %v363_v30 = vpop.permute.xlu0 %362 }
 0x514   :  { %v365_v31 = vmul.f32 %v3143_v16, %v363_v30 }
 0x516   :  { %v391_v32 = vpack.c.bf16 %v365_v31, %v365_v31 }
 0x517   :  { %v387_v33 = vpop.permute.xlu1 %386 }
 0x518   :  { %v389_v34 = vmul.f32 %v3145_v19, %v387_v33  ;;  %393 = vrot.lane.b32.xlu0 %v391_v32, %s3404_s9 }
 0x51a   :  { %v440_v35 = vpack.c.bf16 %v389_v34, %v389_v34 }
 0x51c   :  { %442 = vrot.lane.b32.xlu1 %v440_v35, %s3404_s9 }
 0x58a   :  { %v394_v36 = vpop.permute.xlu0 %393 }
 0x58b   :  { %2854 = vmatmul.mubr.msk.bf16.vlgmr.msra.gmra.mrb[8].mxu0 %vm85_vm2, %v394_v36 }
 0x58c   :  { %2866 = vmatpush3.bf16.msra.mxu0 %v3452_v0  ;;  %2869 = vmatprep.mubr.msk.bf16.mxu0 %vm3403_vm0, %v3402_v1 }
 0x58d   :  { %2867 = vmatprep.subr.bf16.mxu0 %v3402_v1 }
 0x58e   :  { %v443_v37 = vpop.permute.xlu1 %442 }
 0x58f   :  { %2862 = vmatmul.mubr.msk.bf16.vlgmr.msra.gmra.mrb[8].mxu1 %vm85_vm2, %v443_v37 }
 0x590   :  { %2874 = vmatpush3.bf16.msra.mxu1 %v3459_v2  ;;  %2868 = vmatpush3.bf16.msra.mxu0 %v3465_v3 }
 0x591   :  { %2875 = vmatprep.subr.bf16.mxu1 %v3402_v1  ;;  %2877 = vmatprep.mubr.msk.bf16.mxu1 %vm3403_vm0, %v3402_v1 }
 0x592   :  { %2881 = vmatprep.subr.bf16.mxu0 %v3402_v1 }
 0x594   :  { %2876 = vmatpush3.bf16.msra.mxu1 %v3474_v4 }
 0x595   :  { %2889 = vmatprep.subr.bf16.mxu1 %v3402_v1 }
 0x65e   :  { %v432_v39 = vpop.f32.mrb[8].mxu0 }
 0x65f   :  { %v438_v40 = vadd.f32 %v432_v39, %v390_v38  ;;  %v2855_v41 = vpop.f32.mrb[9].mxu0 }
 0x660   :  { %v435_v42 = vpop.f32.mrb[10].mxu0 }
 0x661   :  { %3150 = vtanh.f32 %v438_v40  ;;  %v2856_v44 = vpop.f32.mrb[11].mxu0  ;;  %v2654_v52 = vmul.f32 -1.442695, %v438_v40 }
 0x662   :  { %v481_v45 = vpop.f32.mrb[8].mxu1 }
 0x663   :  { %v487_v46 = vadd.f32 %v481_v45, %v439_v43  ;;  %v2863_v47 = vpop.f32.mrb[9].mxu1 }
 0x664   :  { %v484_v48 = vpop.f32.mrb[10].mxu1 }
 0x665   :  { %3152 = vtanh.f32 %v487_v46  ;;  %v2864_v49 = vpop.f32.mrb[11].mxu1  ;;  %v2655_v53 = vmul.f32 -1.442695, %v487_v46 }
 0x666   :  { %3154 = vpow2.f32 %v2654_v52 }
 0x667   :  { %3156 = vpow2.f32 %v2655_v53 }
 0x66b   :  { %v3151_v50 = vpop.eup %3150 }
 0x66c   :  { %497 = vrot.lane.b32.xlu0 %v3151_v50, %s3405_s14 }
 0x66f   :  { %v3153_v51 = vpop.eup %3152 }
 0x670   :  { %521 = vrot.lane.b32.xlu1 %v3153_v51, %s3405_s14  ;;  %v3155_v54 = vpop.eup %3154 }
 0x671   :  { %v491_v55 = vadd.f32 1.0, %v3155_v54  ;;  %v3157_v56 = vpop.eup %3156 }
 0x672   :  { %v515_v57 = vadd.f32 1.0, %v3157_v56 }
 0x673   :  { %3158 = vrcp.f32 %v491_v55 }
 0x674   :  { %3160 = vrcp.f32 %v515_v57 }
 0x67d   :  { %v3159_v58 = vpop.eup %3158 }
 0x67e   :  { %v3161_v61 = vpop.eup %3160  ;;  %v495_v5 = vmul.f32 %v3159_v58, %v3552_v24 }
 0x67f   :  { %v519_v8 = vmul.f32 %v3161_v61, %v3556_v27 }
 0x6de   :  { %v498_v59 = vpop.permute.xlu0 %497 }
 0x6df   :  { %v500_v60 = vmul.f32 %v3159_v58, %v498_v59 }
 0x6e1   :  { %502 = vrot.lane.b32.xlu0 %v500_v60, %s3404_s9 }
 0x6e2   :  { %v522_v62 = vpop.permute.xlu1 %521 }
 0x6e3   :  { %v524_v63 = vmul.f32 %v3161_v61, %v522_v62 }
 0x6e5   :  { %526 = vrot.lane.b32.xlu1 %v524_v63, %s3404_s9  ;;  %v682_v63 = vld [vmem:[%s4108_s0 + $0x8] sm:$0x3] }
 0x753   :  { %v503_v6 = vpop.permute.xlu0 %502 }
 0x754   :  { %v3588_v7 = vadd.f32 %v503_v6, %v495_v5 }
 0x756   :  { %3162 = vtanh.f32 %v3588_v7 }
 0x757   :  { %v527_v9 = vpop.permute.xlu1 %526 }
 0x758   :  { %v3592_v10 = vadd.f32 %v527_v9, %v519_v8  ;;  %v731_v9 = vld [vmem:[%s4109_s1 + $0x16] sm:$0x3] }
 0x75a   :  { %3164 = vtanh.f32 %v3592_v10 }
 0x760   :  { %v3163_v11 = vpop.eup %3162 }
 0x761   :  { %508 = vrot.lane.b32.xlu0 %v3163_v11, %s3405_s14 }
 0x764   :  { %v3165_v12 = vpop.eup %3164 }
 0x765   :  { %532 = vrot.lane.b32.xlu1 %v3165_v12, %s3405_s14 }
 0x7d3   :  { %v509_v13 = vpop.permute.xlu0 %508 }
 0x7d4   :  { %v511_v14 = vmul.f32 %v3159_v58, %v509_v13 }
 0x7d6   :  { %v537_v15 = vpack.c.bf16 %v511_v14, %v511_v14 }
 0x7d7   :  { %v533_v16 = vpop.permute.xlu1 %532 }
 0x7d8   :  { %v535_v17 = vmul.f32 %v3161_v61, %v533_v16  ;;  %539 = vrot.lane.b32.xlu0 %v537_v15, %s3404_s9 }
 0x7da   :  { %v586_v18 = vpack.c.bf16 %v535_v17, %v535_v17 }
 0x7dc   :  { %588 = vrot.lane.b32.xlu1 %v586_v18, %s3404_s9 }
 0x84a   :  { %v540_v19 = vpop.permute.xlu0 %539 }
 0x84b   :  { %2870 = vmatmul.mubr.msk.bf16.vlgmr.msra.gmra.mrb[12].mxu0 %vm85_vm2, %v540_v19 }
 0x84c   :  { %2882 = vmatpush3.bf16.msra.mxu0 %v3452_v0  ;;  %2885 = vmatprep.mubr.msk.bf16.mxu0 %vm3403_vm0, %v3402_v1 }
 0x84d   :  { %2883 = vmatprep.subr.bf16.mxu0 %v3402_v1 }
 0x84e   :  { %v589_v20 = vpop.permute.xlu1 %588 }
 0x84f   :  { %2878 = vmatmul.mubr.msk.bf16.vlgmr.msra.gmra.mrb[12].mxu1 %vm85_vm2, %v589_v20 }
 0x850   :  { %2890 = vmatpush3.bf16.msra.mxu1 %v3459_v2  ;;  %2884 = vmatpush3.bf16.msra.mxu0 %v3465_v3 }
 0x851   :  { %2891 = vmatprep.subr.bf16.mxu1 %v3402_v1  ;;  %2893 = vmatprep.mubr.msk.bf16.mxu1 %vm3403_vm0, %v3402_v1 }
 0x852   :  { %2897 = vmatprep.subr.bf16.mxu0 %v3402_v1 }
 0x854   :  { %2892 = vmatpush3.bf16.msra.mxu1 %v3474_v4 }
 0x855   :  { %2905 = vmatprep.subr.bf16.mxu1 %v3402_v1 }
 0x91e   :  { %v578_v22 = vpop.f32.mrb[12].mxu0 }
 0x91f   :  { %v584_v23 = vadd.f32 %v578_v22, %v536_v21  ;;  %v2871_v24 = vpop.f32.mrb[13].mxu0 }
 0x920   :  { %v581_v25 = vpop.f32.mrb[14].mxu0 }
 0x921   :  { %3166 = vtanh.f32 %v584_v23  ;;  %v2872_v27 = vpop.f32.mrb[15].mxu0  ;;  %v2658_v35 = vmul.f32 -1.442695, %v584_v23 }
 0x922   :  { %v627_v28 = vpop.f32.mrb[12].mxu1 }
 0x923   :  { %v633_v29 = vadd.f32 %v627_v28, %v585_v26  ;;  %v2879_v30 = vpop.f32.mrb[13].mxu1 }
 0x924   :  { %v630_v31 = vpop.f32.mrb[14].mxu1 }
 0x925   :  { %3168 = vtanh.f32 %v633_v29  ;;  %v2880_v32 = vpop.f32.mrb[15].mxu1  ;;  %v2659_v36 = vmul.f32 -1.442695, %v633_v29 }
 0x926   :  { %3170 = vpow2.f32 %v2658_v35 }
 0x927   :  { %3172 = vpow2.f32 %v2659_v36 }
 0x92b   :  { %v3167_v33 = vpop.eup %3166 }
 0x92c   :  { %643 = vrot.lane.b32.xlu0 %v3167_v33, %s3405_s14 }
 0x92f   :  { %v3169_v34 = vpop.eup %3168 }
 0x930   :  { %667 = vrot.lane.b32.xlu1 %v3169_v34, %s3405_s14  ;;  %v3171_v37 = vpop.eup %3170 }
 0x931   :  { %v637_v38 = vadd.f32 1.0, %v3171_v37  ;;  %v3173_v39 = vpop.eup %3172 }
 0x932   :  { %v661_v40 = vadd.f32 1.0, %v3173_v39 }
 0x933   :  { %3174 = vrcp.f32 %v637_v38 }
 0x934   :  { %3176 = vrcp.f32 %v661_v40 }
 0x93d   :  { %v3175_v41 = vpop.eup %3174 }
 0x93e   :  { %v3177_v44 = vpop.eup %3176  ;;  %v641_v47 = vmul.f32 %v3175_v41, %v3588_v7 }
 0x93f   :  { %v665_v50 = vmul.f32 %v3177_v44, %v3592_v10 }
 0x99e   :  { %v644_v42 = vpop.permute.xlu0 %643 }
 0x99f   :  { %v646_v43 = vmul.f32 %v3175_v41, %v644_v42 }
 0x9a1   :  { %648 = vrot.lane.b32.xlu0 %v646_v43, %s3404_s9 }
 0x9a2   :  { %v668_v45 = vpop.permute.xlu1 %667 }
 0x9a3   :  { %v670_v46 = vmul.f32 %v3177_v44, %v668_v45 }
 0x9a5   :  { %672 = vrot.lane.b32.xlu1 %v670_v46, %s3404_s9  ;;  %v828_v46 = vld [vmem:[%s4108_s0 + $0xa] sm:$0x3] }
 0xa13   :  { %v649_v48 = vpop.permute.xlu0 %648 }
 0xa14   :  { %v3624_v49 = vadd.f32 %v649_v48, %v641_v47 }
 0xa16   :  { %3178 = vtanh.f32 %v3624_v49 }
 0xa17   :  { %v673_v51 = vpop.permute.xlu1 %672 }
 0xa18   :  { %v3628_v52 = vadd.f32 %v673_v51, %v665_v50  ;;  %v877_v51 = vld [vmem:[%s4109_s1 + $0x14] sm:$0x3] }
 0xa1a   :  { %3180 = vtanh.f32 %v3628_v52 }
 0xa20   :  { %v3179_v53 = vpop.eup %3178 }
 0xa21   :  { %654 = vrot.lane.b32.xlu0 %v3179_v53, %s3405_s14 }
 0xa24   :  { %v3181_v54 = vpop.eup %3180 }
 0xa25   :  { %678 = vrot.lane.b32.xlu1 %v3181_v54, %s3405_s14 }
 0xa93   :  { %v655_v55 = vpop.permute.xlu0 %654 }
 0xa94   :  { %v657_v56 = vmul.f32 %v3175_v41, %v655_v55 }
 0xa96   :  { %v683_v57 = vpack.c.bf16 %v657_v56, %v657_v56 }
 0xa97   :  { %v679_v58 = vpop.permute.xlu1 %678 }
 0xa98   :  { %v681_v59 = vmul.f32 %v3177_v44, %v679_v58  ;;  %685 = vrot.lane.b32.xlu0 %v683_v57, %s3404_s9 }
 0xa9a   :  { %v732_v60 = vpack.c.bf16 %v681_v59, %v681_v59 }
 0xa9c   :  { %734 = vrot.lane.b32.xlu1 %v732_v60, %s3404_s9 }
 0xb0a   :  { %v686_v61 = vpop.permute.xlu0 %685 }
 0xb0b   :  { %2886 = vmatmul.mubr.msk.bf16.vlgmr.msra.gmra.mrb[16].mxu0 %vm85_vm2, %v686_v61 }
 0xb0c   :  { %2898 = vmatpush3.bf16.msra.mxu0 %v3452_v0  ;;  %2901 = vmatprep.mubr.msk.bf16.mxu0 %vm3403_vm0, %v3402_v1 }
 0xb0d   :  { %2899 = vmatprep.subr.bf16.mxu0 %v3402_v1 }
 0xb0e   :  { %v735_v62 = vpop.permute.xlu1 %734 }
 0xb0f   :  { %2894 = vmatmul.mubr.msk.bf16.vlgmr.msra.gmra.mrb[16].mxu1 %vm85_vm2, %v735_v62 }
 0xb10   :  { %2906 = vmatpush3.bf16.msra.mxu1 %v3459_v2  ;;  %2900 = vmatpush3.bf16.msra.mxu0 %v3465_v3 }
 0xb11   :  { %2907 = vmatprep.subr.bf16.mxu1 %v3402_v1  ;;  %2909 = vmatprep.mubr.msk.bf16.mxu1 %vm3403_vm0, %v3402_v1 }
 0xb12   :  { %2913 = vmatprep.subr.bf16.mxu0 %v3402_v1 }
 0xb14   :  { %2908 = vmatpush3.bf16.msra.mxu1 %v3474_v4 }
 0xb15   :  { %2921 = vmatprep.subr.bf16.mxu1 %v3402_v1 }
 0xbde   :  { %v724_v5 = vpop.f32.mrb[16].mxu0 }
 0xbdf   :  { %v730_v6 = vadd.f32 %v724_v5, %v682_v63  ;;  %v2887_v7 = vpop.f32.mrb[17].mxu0 }
 0xbe0   :  { %v727_v8 = vpop.f32.mrb[18].mxu0 }
 0xbe1   :  { %3182 = vtanh.f32 %v730_v6  ;;  %v2888_v10 = vpop.f32.mrb[19].mxu0  ;;  %v2662_v18 = vmul.f32 -1.442695, %v730_v6 }
 0xbe2   :  { %v773_v11 = vpop.f32.mrb[16].mxu1 }
 0xbe3   :  { %v779_v12 = vadd.f32 %v773_v11, %v731_v9  ;;  %v2895_v13 = vpop.f32.mrb[17].mxu1 }
 0xbe4   :  { %v776_v14 = vpop.f32.mrb[18].mxu1 }
 0xbe5   :  { %3184 = vtanh.f32 %v779_v12  ;;  %v2896_v15 = vpop.f32.mrb[19].mxu1  ;;  %v2663_v19 = vmul.f32 -1.442695, %v779_v12 }
 0xbe6   :  { %3186 = vpow2.f32 %v2662_v18 }
 0xbe7   :  { %3188 = vpow2.f32 %v2663_v19 }
 0xbeb   :  { %v3183_v16 = vpop.eup %3182 }
 0xbec   :  { %789 = vrot.lane.b32.xlu0 %v3183_v16, %s3405_s14 }
 0xbef   :  { %v3185_v17 = vpop.eup %3184 }
 0xbf0   :  { %813 = vrot.lane.b32.xlu1 %v3185_v17, %s3405_s14  ;;  %v3187_v20 = vpop.eup %3186 }
 0xbf1   :  { %v783_v21 = vadd.f32 1.0, %v3187_v20  ;;  %v3189_v22 = vpop.eup %3188 }
 0xbf2   :  { %v807_v23 = vadd.f32 1.0, %v3189_v22 }
 0xbf3   :  { %3190 = vrcp.f32 %v783_v21 }
 0xbf4   :  { %3192 = vrcp.f32 %v807_v23 }
 0xbfd   :  { %v3191_v24 = vpop.eup %3190 }
 0xbfe   :  { %v3193_v27 = vpop.eup %3192  ;;  %v787_v30 = vmul.f32 %v3191_v24, %v3624_v49 }
 0xbff   :  { %v811_v33 = vmul.f32 %v3193_v27, %v3628_v52 }
 0xc5e   :  { %v790_v25 = vpop.permute.xlu0 %789 }
 0xc5f   :  { %v792_v26 = vmul.f32 %v3191_v24, %v790_v25 }
 0xc61   :  { %794 = vrot.lane.b32.xlu0 %v792_v26, %s3404_s9 }
 0xc62   :  { %v814_v28 = vpop.permute.xlu1 %813 }
 0xc63   :  { %v816_v29 = vmul.f32 %v3193_v27, %v814_v28 }
 0xc65   :  { %818 = vrot.lane.b32.xlu1 %v816_v29, %s3404_s9 }
 0xcd3   :  { %v795_v31 = vpop.permute.xlu0 %794 }
 0xcd4   :  { %v3660_v32 = vadd.f32 %v795_v31, %v787_v30 }
 0xcd6   :  { %3194 = vtanh.f32 %v3660_v32 }
 0xcd7   :  { %v819_v34 = vpop.permute.xlu1 %818 }
 0xcd8   :  { %v3664_v35 = vadd.f32 %v819_v34, %v811_v33 }
 0xcda   :  { %3196 = vtanh.f32 %v3664_v35 }
 0xce0   :  { %v3195_v36 = vpop.eup %3194 }
 0xce1   :  { %800 = vrot.lane.b32.xlu0 %v3195_v36, %s3405_s14 }
 0xce4   :  { %v3197_v37 = vpop.eup %3196 }
 0xce5   :  { %824 = vrot.lane.b32.xlu1 %v3197_v37, %s3405_s14 }
 0xd53   :  { %v801_v38 = vpop.permute.xlu0 %800 }
 0xd54   :  { %v803_v39 = vmul.f32 %v3191_v24, %v801_v38 }
 0xd56   :  { %v829_v40 = vpack.c.bf16 %v803_v39, %v803_v39 }
 0xd57   :  { %v825_v41 = vpop.permute.xlu1 %824 }
 0xd58   :  { %v827_v42 = vmul.f32 %v3193_v27, %v825_v41  ;;  %831 = vrot.lane.b32.xlu0 %v829_v40, %s3404_s9 }
 0xd5a   :  { %v878_v43 = vpack.c.bf16 %v827_v42, %v827_v42 }
 0xd5c   :  { %880 = vrot.lane.b32.xlu1 %v878_v43, %s3404_s9 }
 0xdca   :  { %v832_v44 = vpop.permute.xlu0 %831 }
 0xdcb   :  { %2902 = vmatmul.mubr.msk.bf16.vlgmr.msra.gmra.mrb[20].mxu0 %vm85_vm2, %v832_v44 }
 0xdcc   :  { %2914 = vmatpush3.bf16.msra.mxu0 %v3452_v0  ;;  %2917 = vmatprep.mubr.msk.bf16.mxu0 %vm3403_vm0, %v3402_v1 }
 0xdcd   :  { %2915 = vmatprep.subr.bf16.mxu0 %v3402_v1 }
 0xdce   :  { %v881_v45 = vpop.permute.xlu1 %880 }
 0xdcf   :  { %2910 = vmatmul.mubr.msk.bf16.vlgmr.msra.gmra.mrb[20].mxu1 %vm85_vm2, %v881_v45 }
 0xdd0   :  { %2922 = vmatpush3.bf16.msra.mxu1 %v3459_v2  ;;  %2916 = vmatpush3.bf16.msra.mxu0 %v3465_v3 }
 0xdd1   :  { %2923 = vmatprep.subr.bf16.mxu1 %v3402_v1  ;;  %2925 = vmatprep.mubr.msk.bf16.mxu1 %vm3403_vm0, %v3402_v1 }
 0xdd2   :  { %2929 = vmatprep.subr.bf16.mxu0 %v3402_v1 }
 0xdd4   :  { %2924 = vmatpush3.bf16.msra.mxu1 %v3474_v4 }
 0xdd5   :  { %2937 = vmatprep.subr.bf16.mxu1 %v3402_v1 }
 0xe9e   :  { %v870_v47 = vpop.f32.mrb[20].mxu0 }
 0xe9f   :  { %v876_v48 = vadd.f32 %v870_v47, %v828_v46  ;;  %v2903_v49 = vpop.f32.mrb[21].mxu0 }
 0xea0   :  { %v873_v50 = vpop.f32.mrb[22].mxu0 }
 0xea1   :  { %3198 = vtanh.f32 %v876_v48  ;;  %v2904_v52 = vpop.f32.mrb[23].mxu0  ;;  %v2666_v60 = vmul.f32 -1.442695, %v876_v48 }
 0xea2   :  { %v919_v53 = vpop.f32.mrb[20].mxu1 }
 0xea3   :  { %v925_v54 = vadd.f32 %v919_v53, %v877_v51  ;;  %v2911_v55 = vpop.f32.mrb[21].mxu1 }
 0xea4   :  { %v922_v56 = vpop.f32.mrb[22].mxu1 }
 0xea5   :  { %3200 = vtanh.f32 %v925_v54  ;;  %v2912_v57 = vpop.f32.mrb[23].mxu1  ;;  %v2667_v61 = vmul.f32 -1.442695, %v925_v54 }
 0xea6   :  { %3202 = vpow2.f32 %v2666_v60 }
 0xea7   :  { %3204 = vpow2.f32 %v2667_v61 }
 0xeab   :  { %v3199_v58 = vpop.eup %3198 }
 0xeac   :  { %935 = vrot.lane.b32.xlu0 %v3199_v58, %s3405_s14 }
 0xeaf   :  { %v3201_v59 = vpop.eup %3200 }
 0xeb0   :  { %959 = vrot.lane.b32.xlu1 %v3201_v59, %s3405_s14  ;;  %v3203_v62 = vpop.eup %3202 }
 0xeb1   :  { %v929_v63 = vadd.f32 1.0, %v3203_v62  ;;  %v3205_v5 = vpop.eup %3204 }
 0xeb2   :  { %v953_v6 = vadd.f32 1.0, %v3205_v5 }
 0xeb3   :  { %3206 = vrcp.f32 %v929_v63 }
 0xeb4   :  { %3208 = vrcp.f32 %v953_v6 }
 0xebd   :  { %v3207_v7 = vpop.eup %3206 }
 0xebe   :  { %v3209_v10 = vpop.eup %3208  ;;  %v933_v13 = vmul.f32 %v3207_v7, %v3660_v32 }
 0xebf   :  { %v957_v16 = vmul.f32 %v3209_v10, %v3664_v35 }
 0xf1e   :  { %v936_v8 = vpop.permute.xlu0 %935 }
 0xf1f   :  { %v938_v9 = vmul.f32 %v3207_v7, %v936_v8 }
 0xf21   :  { %940 = vrot.lane.b32.xlu0 %v938_v9, %s3404_s9  ;;  %v3757_v9 = vld [vmem:[%s4111_s3] sm:$0xff]  }
 0xf22   :  { %v960_v11 = vpop.permute.xlu1 %959 }
 0xf23   :  { %v962_v12 = vmul.f32 %v3209_v10, %v960_v11  ;;  %v3773_v11 = vld [vmem:[%s4111_s3 + $0x8] sm:$0xff]  }
 0xf25   :  { %964 = vrot.lane.b32.xlu1 %v962_v12, %s3404_s9  ;;  %v1120_v12 = vld [vmem:[%s4108_s0 + $0xe] sm:$0x3] }
 0xf93   :  { %v941_v14 = vpop.permute.xlu0 %940 }
 0xf94   :  { %v3696_v15 = vadd.f32 %v941_v14, %v933_v13 }
 0xf96   :  { %3210 = vtanh.f32 %v3696_v15 }
 0xf97   :  { %v965_v17 = vpop.permute.xlu1 %964 }
 0xf98   :  { %v3700_v18 = vadd.f32 %v965_v17, %v957_v16  ;;  %v1169_v17 = vld [vmem:[%s4109_s1 + $0x10] sm:$0x3] }
 0xf9a   :  { %3212 = vtanh.f32 %v3700_v18 }
 0xfa0   :  { %v3211_v19 = vpop.eup %3210 }
 0xfa1   :  { %946 = vrot.lane.b32.xlu0 %v3211_v19, %s3405_s14 }
 0xfa4   :  { %v3213_v20 = vpop.eup %3212 }
 0xfa5   :  { %970 = vrot.lane.b32.xlu1 %v3213_v20, %s3405_s14 }
0x1013   :  { %v947_v21 = vpop.permute.xlu0 %946 }
0x1014   :  { %v949_v22 = vmul.f32 %v3207_v7, %v947_v21  ;;  %v3747_v7 = vld [vmem:[%s4110_s2] sm:$0xff]  }
0x1016   :  { %v975_v23 = vpack.c.bf16 %v949_v22, %v949_v22 }
0x1017   :  { %v971_v24 = vpop.permute.xlu1 %970 }
0x1018   :  { %v973_v25 = vmul.f32 %v3209_v10, %v971_v24  ;;  %977 = vrot.lane.b32.xlu0 %v975_v23, %s3404_s9  ;;  %v3763_v10 = vld [vmem:[%s4110_s2 + $0x8] sm:$0xff]  }
0x101a   :  { %v1024_v26 = vpack.c.bf16 %v973_v25, %v973_v25 }
0x101c   :  { %1026 = vrot.lane.b32.xlu1 %v1024_v26, %s3404_s9 }
0x108a   :  { %v978_v27 = vpop.permute.xlu0 %977 }
0x108b   :  { %2918 = vmatmul.mubr.msk.bf16.vlgmr.msra.gmra.mrb[24].mxu0 %vm85_vm2, %v978_v27 }
0x108c   :  { %2930 = vmatpush3.bf16.msra.mxu0 %v3452_v0  ;;  %2933 = vmatprep.mubr.msk.bf16.mxu0 %vm3403_vm0, %v3402_v1  ;;  %v974_v0 = vld [vmem:[%s4108_s0 + $0xc] sm:$0x3] }
0x108d   :  { %2931 = vmatprep.subr.bf16.mxu0 %v3402_v1 }
0x108e   :  { %v1027_v28 = vpop.permute.xlu1 %1026 }
0x108f   :  { %2926 = vmatmul.mubr.msk.bf16.vlgmr.msra.gmra.mrb[24].mxu1 %vm85_vm2, %v1027_v28 }
0x1090   :  { %2938 = vmatpush3.bf16.msra.mxu1 %v3459_v2  ;;  %2932 = vmatpush3.bf16.msra.mxu0 %v3465_v3  ;;  %v1023_v3 = vld [vmem:[%s4109_s1 + $0x12] sm:$0x3] }
0x1091   :  { %2939 = vmatprep.subr.bf16.mxu1 %v3402_v1  ;;  %2941 = vmatprep.mubr.msk.bf16.mxu1 %vm3403_vm0, %v3402_v1 }
0x1092   :  { %2945 = vmatprep.subr.bf16.mxu0 %v3402_v1 }
0x1094   :  { %2940 = vmatpush3.bf16.msra.mxu1 %v3474_v4 }
0x1095   :  { %2953 = vmatprep.subr.bf16.mxu1 %v3402_v1 }
0x115e   :  { %v1016_v29 = vpop.f32.mrb[24].mxu0 }
0x115f   :  { %v1022_v30 = vadd.f32 %v1016_v29, %v974_v0  ;;  %v2919_v2 = vpop.f32.mrb[25].mxu0 }
0x1160   :  { %v1019_v31 = vpop.f32.mrb[26].mxu0 }
0x1161   :  { %3214 = vtanh.f32 %v1022_v30  ;;  %v2920_v32 = vpop.f32.mrb[27].mxu0  ;;  %v2670_v39 = vmul.f32 -1.442695, %v1022_v30 }
0x1162   :  { %v1065_v33 = vpop.f32.mrb[24].mxu1 }
0x1163   :  { %v1071_v34 = vadd.f32 %v1065_v33, %v1023_v3  ;;  %v2927_v35 = vpop.f32.mrb[25].mxu1 }
0x1164   :  { %v1068_v4 = vpop.f32.mrb[26].mxu1 }
0x1165   :  { %3216 = vtanh.f32 %v1071_v34  ;;  %v2928_v36 = vpop.f32.mrb[27].mxu1  ;;  %v2671_v40 = vmul.f32 -1.442695, %v1071_v34 }
0x1166   :  { %3218 = vpow2.f32 %v2670_v39 }
0x1167   :  { %3220 = vpow2.f32 %v2671_v40 }
0x116b   :  { %v3215_v37 = vpop.eup %3214 }
0x116c   :  { %1081 = vrot.lane.b32.xlu0 %v3215_v37, %s3405_s14 }
0x116f   :  { %v3217_v38 = vpop.eup %3216 }
0x1170   :  { %1105 = vrot.lane.b32.xlu1 %v3217_v38, %s3405_s14  ;;  %v3219_v41 = vpop.eup %3218 }
0x1171   :  { %v1075_v42 = vadd.f32 1.0, %v3219_v41  ;;  %v3221_v43 = vpop.eup %3220 }
0x1172   :  { %v1099_v44 = vadd.f32 1.0, %v3221_v43 }
0x1173   :  { %3222 = vrcp.f32 %v1075_v42 }
0x1174   :  { %3224 = vrcp.f32 %v1099_v44 }
0x117d   :  { %v3223_v45 = vpop.eup %3222 }
0x117e   :  { %v3225_v48 = vpop.eup %3224  ;;  %v1079_v51 = vmul.f32 %v3223_v45, %v3696_v15 }
0x117f   :  { %v1103_v54 = vmul.f32 %v3225_v48, %v3700_v18 }
0x11de   :  { %v1082_v46 = vpop.permute.xlu0 %1081 }
0x11df   :  { %v1084_v47 = vmul.f32 %v3223_v45, %v1082_v46 }
0x11e1   :  { %1086 = vrot.lane.b32.xlu0 %v1084_v47, %s3404_s9 }
0x11e2   :  { %v1106_v49 = vpop.permute.xlu1 %1105 }
0x11e3   :  { %v1108_v50 = vmul.f32 %v3225_v48, %v1106_v49 }
0x11e5   :  { %1110 = vrot.lane.b32.xlu1 %v1108_v50, %s3404_s9  ;;  %v1266_v50 = vld [vmem:[%s4108_s0 + $0x10] sm:$0x3] }
0x1253   :  { %v1087_v52 = vpop.permute.xlu0 %1086 }
0x1254   :  { %v3732_v53 = vadd.f32 %v1087_v52, %v1079_v51 }
0x1256   :  { %3226 = vtanh.f32 %v3732_v53 }
0x1257   :  { %v1111_v55 = vpop.permute.xlu1 %1110 }
0x1258   :  { %v3736_v56 = vadd.f32 %v1111_v55, %v1103_v54  ;;  %v1315_v55 = vld [vmem:[%s4109_s1 + $0xe] sm:$0x3] }
0x125a   :  { %3228 = vtanh.f32 %v3736_v56 }
0x1260   :  { %v3227_v57 = vpop.eup %3226 }
0x1261   :  { %1092 = vrot.lane.b32.xlu0 %v3227_v57, %s3405_s14 }
0x1264   :  { %v3229_v58 = vpop.eup %3228 }
0x1265   :  { %1116 = vrot.lane.b32.xlu1 %v3229_v58, %s3405_s14 }
0x12d3   :  { %v1093_v59 = vpop.permute.xlu0 %1092 }
0x12d4   :  { %v1095_v60 = vmul.f32 %v3223_v45, %v1093_v59 }
0x12d6   :  { %v1121_v61 = vpack.c.bf16 %v1095_v60, %v1095_v60 }
0x12d7   :  { %v1117_v62 = vpop.permute.xlu1 %1116 }
0x12d8   :  { %v1119_v63 = vmul.f32 %v3225_v48, %v1117_v62  ;;  %1123 = vrot.lane.b32.xlu0 %v1121_v61, %s3404_s9 }
0x12da   :  { %v1170_v5 = vpack.c.bf16 %v1119_v63, %v1119_v63 }
0x12dc   :  { %1172 = vrot.lane.b32.xlu1 %v1170_v5, %s3404_s9 }
0x134a   :  { %v1124_v6 = vpop.permute.xlu0 %1123 }
0x134b   :  { %2934 = vmatmul.mubr.msk.bf16.vlgmr.msra.gmra.mrb[28].mxu0 %vm85_vm2, %v1124_v6 }
0x134c   :  { %2946 = vmatpush3.bf16.msra.mxu0 %v3747_v7  ;;  %2949 = vmatprep.mubr.msk.bf16.mxu0 %vm3403_vm0, %v3402_v1 }
0x134d   :  { %2947 = vmatprep.subr.bf16.mxu0 %v3402_v1 }
0x134e   :  { %v1173_v8 = vpop.permute.xlu1 %1172 }
0x134f   :  { %2942 = vmatmul.mubr.msk.bf16.vlgmr.msra.gmra.mrb[28].mxu1 %vm85_vm2, %v1173_v8 }
0x1350   :  { %2954 = vmatpush3.bf16.msra.mxu1 %v3757_v9  ;;  %2948 = vmatpush3.bf16.msra.mxu0 %v3763_v10 }
0x1351   :  { %2955 = vmatprep.subr.bf16.mxu1 %v3402_v1  ;;  %2957 = vmatprep.mubr.msk.bf16.mxu1 %vm3403_vm0, %v3402_v1 }
0x1352   :  { %2961 = vmatprep.subr.bf16.mxu0 %v3402_v1 }
0x1354   :  { %2956 = vmatpush3.bf16.msra.mxu1 %v3773_v11 }
0x1355   :  { %2969 = vmatprep.subr.bf16.mxu1 %v3402_v1 }
0x141e   :  { %v1162_v13 = vpop.f32.mrb[28].mxu0 }
0x141f   :  { %v1168_v14 = vadd.f32 %v1162_v13, %v1120_v12  ;;  %v2935_v15 = vpop.f32.mrb[29].mxu0 }
0x1420   :  { %v1165_v16 = vpop.f32.mrb[30].mxu0 }
0x1421   :  { %3230 = vtanh.f32 %v1168_v14  ;;  %v2936_v18 = vpop.f32.mrb[31].mxu0  ;;  %v2674_v26 = vmul.f32 -1.442695, %v1168_v14 }
0x1422   :  { %v1211_v19 = vpop.f32.mrb[28].mxu1 }
0x1423   :  { %v1217_v20 = vadd.f32 %v1211_v19, %v1169_v17  ;;  %v2943_v21 = vpop.f32.mrb[29].mxu1 }
0x1424   :  { %v1214_v22 = vpop.f32.mrb[30].mxu1 }
0x1425   :  { %3232 = vtanh.f32 %v1217_v20  ;;  %v2944_v23 = vpop.f32.mrb[31].mxu1  ;;  %v2675_v27 = vmul.f32 -1.442695, %v1217_v20 }
0x1426   :  { %3234 = vpow2.f32 %v2674_v26 }
0x1427   :  { %3236 = vpow2.f32 %v2675_v27 }
0x142b   :  { %v3231_v24 = vpop.eup %3230 }
0x142c   :  { %1227 = vrot.lane.b32.xlu0 %v3231_v24, %s3405_s14 }
0x142f   :  { %v3233_v25 = vpop.eup %3232 }
0x1430   :  { %1251 = vrot.lane.b32.xlu1 %v3233_v25, %s3405_s14  ;;  %v3235_v28 = vpop.eup %3234 }
0x1431   :  { %v1221_v0 = vadd.f32 1.0, %v3235_v28  ;;  %v3237_v29 = vpop.eup %3236 }
0x1432   :  { %v1245_v30 = vadd.f32 1.0, %v3237_v29 }
0x1433   :  { %3238 = vrcp.f32 %v1221_v0 }
0x1434   :  { %3240 = vrcp.f32 %v1245_v30 }
0x143d   :  { %v3239_v2 = vpop.eup %3238 }
0x143e   :  { %v3241_v32 = vpop.eup %3240  ;;  %v1225_v35 = vmul.f32 %v3239_v2, %v3732_v53 }
0x143f   :  { %v1249_v37 = vmul.f32 %v3241_v32, %v3736_v56 }
0x149e   :  { %v1228_v31 = vpop.permute.xlu0 %1227 }
0x149f   :  { %v1230_v3 = vmul.f32 %v3239_v2, %v1228_v31 }
0x14a1   :  { %1232 = vrot.lane.b32.xlu0 %v1230_v3, %s3404_s9 }
0x14a2   :  { %v1252_v33 = vpop.permute.xlu1 %1251 }
0x14a3   :  { %v1254_v34 = vmul.f32 %v3241_v32, %v1252_v33 }
0x14a5   :  { %1256 = vrot.lane.b32.xlu1 %v1254_v34, %s3404_s9  ;;  %v1412_v34 = vld [vmem:[%s4108_s0 + $0x12] sm:$0x3] }
0x1513   :  { %v1233_v4 = vpop.permute.xlu0 %1232 }
0x1514   :  { %v3788_v36 = vadd.f32 %v1233_v4, %v1225_v35 }
0x1516   :  { %3242 = vtanh.f32 %v3788_v36 }
0x1517   :  { %v1257_v38 = vpop.permute.xlu1 %1256 }
0x1518   :  { %v3792_v39 = vadd.f32 %v1257_v38, %v1249_v37  ;;  %v1461_v38 = vld [vmem:[%s4109_s1 + $0xc] sm:$0x3] }
0x151a   :  { %3244 = vtanh.f32 %v3792_v39 }
0x1520   :  { %v3243_v40 = vpop.eup %3242 }
0x1521   :  { %1238 = vrot.lane.b32.xlu0 %v3243_v40, %s3405_s14 }
0x1524   :  { %v3245_v41 = vpop.eup %3244 }
0x1525   :  { %1262 = vrot.lane.b32.xlu1 %v3245_v41, %s3405_s14 }
0x1593   :  { %v1239_v42 = vpop.permute.xlu0 %1238 }
0x1594   :  { %v1241_v43 = vmul.f32 %v3239_v2, %v1239_v42 }
0x1596   :  { %v1267_v44 = vpack.c.bf16 %v1241_v43, %v1241_v43 }
0x1597   :  { %v1263_v45 = vpop.permute.xlu1 %1262 }
0x1598   :  { %v1265_v46 = vmul.f32 %v3241_v32, %v1263_v45  ;;  %1269 = vrot.lane.b32.xlu0 %v1267_v44, %s3404_s9 }
0x159a   :  { %v1316_v47 = vpack.c.bf16 %v1265_v46, %v1265_v46 }
0x159c   :  { %1318 = vrot.lane.b32.xlu1 %v1316_v47, %s3404_s9 }
0x160a   :  { %v1270_v48 = vpop.permute.xlu0 %1269 }
0x160b   :  { %2950 = vmatmul.mubr.msk.bf16.vlgmr.msra.gmra.mrb[32].mxu0 %vm85_vm2, %v1270_v48 }
0x160c   :  { %2962 = vmatpush3.bf16.msra.mxu0 %v3747_v7  ;;  %2965 = vmatprep.mubr.msk.bf16.mxu0 %vm3403_vm0, %v3402_v1 }
0x160d   :  { %2963 = vmatprep.subr.bf16.mxu0 %v3402_v1 }
0x160e   :  { %v1319_v49 = vpop.permute.xlu1 %1318 }
0x160f   :  { %2958 = vmatmul.mubr.msk.bf16.vlgmr.msra.gmra.mrb[32].mxu1 %vm85_vm2, %v1319_v49 }
0x1610   :  { %2970 = vmatpush3.bf16.msra.mxu1 %v3757_v9  ;;  %2964 = vmatpush3.bf16.msra.mxu0 %v3763_v10 }
0x1611   :  { %2971 = vmatprep.subr.bf16.mxu1 %v3402_v1  ;;  %2973 = vmatprep.mubr.msk.bf16.mxu1 %vm3403_vm0, %v3402_v1 }
0x1612   :  { %2977 = vmatprep.subr.bf16.mxu0 %v3402_v1 }
0x1614   :  { %2972 = vmatpush3.bf16.msra.mxu1 %v3773_v11 }
0x1615   :  { %2985 = vmatprep.subr.bf16.mxu1 %v3402_v1 }
0x16de   :  { %v1308_v51 = vpop.f32.mrb[32].mxu0 }
0x16df   :  { %v1314_v52 = vadd.f32 %v1308_v51, %v1266_v50  ;;  %v2951_v53 = vpop.f32.mrb[33].mxu0 }
0x16e0   :  { %v1311_v54 = vpop.f32.mrb[34].mxu0 }
0x16e1   :  { %3246 = vtanh.f32 %v1314_v52  ;;  %v2952_v56 = vpop.f32.mrb[35].mxu0  ;;  %v2678_v5 = vmul.f32 -1.442695, %v1314_v52 }
0x16e2   :  { %v1357_v57 = vpop.f32.mrb[32].mxu1 }
0x16e3   :  { %v1363_v58 = vadd.f32 %v1357_v57, %v1315_v55  ;;  %v2959_v59 = vpop.f32.mrb[33].mxu1 }
0x16e4   :  { %v1360_v60 = vpop.f32.mrb[34].mxu1 }
0x16e5   :  { %3248 = vtanh.f32 %v1363_v58  ;;  %v2960_v61 = vpop.f32.mrb[35].mxu1  ;;  %v2679_v6 = vmul.f32 -1.442695, %v1363_v58 }
0x16e6   :  { %3250 = vpow2.f32 %v2678_v5 }
0x16e7   :  { %3252 = vpow2.f32 %v2679_v6 }
0x16eb   :  { %v3247_v62 = vpop.eup %3246 }
0x16ec   :  { %1373 = vrot.lane.b32.xlu0 %v3247_v62, %s3405_s14 }
0x16ef   :  { %v3249_v63 = vpop.eup %3248 }
0x16f0   :  { %1397 = vrot.lane.b32.xlu1 %v3249_v63, %s3405_s14  ;;  %v3251_v8 = vpop.eup %3250 }
0x16f1   :  { %v1367_v12 = vadd.f32 1.0, %v3251_v8  ;;  %v3253_v13 = vpop.eup %3252 }
0x16f2   :  { %v1391_v14 = vadd.f32 1.0, %v3253_v13 }
0x16f3   :  { %3254 = vrcp.f32 %v1367_v12 }
0x16f4   :  { %3256 = vrcp.f32 %v1391_v14 }
0x16fd   :  { %v3255_v15 = vpop.eup %3254 }
0x16fe   :  { %v3257_v18 = vpop.eup %3256  ;;  %v1371_v21 = vmul.f32 %v3255_v15, %v3788_v36 }
0x16ff   :  { %v1395_v24 = vmul.f32 %v3257_v18, %v3792_v39 }
0x175e   :  { %v1374_v16 = vpop.permute.xlu0 %1373 }
0x175f   :  { %v1376_v17 = vmul.f32 %v3255_v15, %v1374_v16 }
0x1761   :  { %1378 = vrot.lane.b32.xlu0 %v1376_v17, %s3404_s9 }
0x1762   :  { %v1398_v19 = vpop.permute.xlu1 %1397 }
0x1763   :  { %v1400_v20 = vmul.f32 %v3257_v18, %v1398_v19 }
0x1765   :  { %1402 = vrot.lane.b32.xlu1 %v1400_v20, %s3404_s9  ;;  %v1558_v20 = vld [vmem:[%s4108_s0 + $0x14] sm:$0x3] }
0x17d3   :  { %v1379_v22 = vpop.permute.xlu0 %1378 }
0x17d4   :  { %v3824_v23 = vadd.f32 %v1379_v22, %v1371_v21 }
0x17d6   :  { %3258 = vtanh.f32 %v3824_v23 }
0x17d7   :  { %v1403_v25 = vpop.permute.xlu1 %1402 }
0x17d8   :  { %v3828_v26 = vadd.f32 %v1403_v25, %v1395_v24  ;;  %v1607_v25 = vld [vmem:[%s4109_s1 + $0xa] sm:$0x3] }
0x17da   :  { %3260 = vtanh.f32 %v3828_v26 }
0x17e0   :  { %v3259_v27 = vpop.eup %3258 }
0x17e1   :  { %1384 = vrot.lane.b32.xlu0 %v3259_v27, %s3405_s14 }
0x17e4   :  { %v3261_v28 = vpop.eup %3260 }
0x17e5   :  { %1408 = vrot.lane.b32.xlu1 %v3261_v28, %s3405_s14 }
0x1853   :  { %v1385_v0 = vpop.permute.xlu0 %1384 }
0x1854   :  { %v1387_v29 = vmul.f32 %v3255_v15, %v1385_v0 }
0x1856   :  { %v1413_v30 = vpack.c.bf16 %v1387_v29, %v1387_v29 }
0x1857   :  { %v1409_v2 = vpop.permute.xlu1 %1408 }
0x1858   :  { %v1411_v31 = vmul.f32 %v3257_v18, %v1409_v2  ;;  %1415 = vrot.lane.b32.xlu0 %v1413_v30, %s3404_s9 }
0x185a   :  { %v1462_v3 = vpack.c.bf16 %v1411_v31, %v1411_v31 }
0x185c   :  { %1464 = vrot.lane.b32.xlu1 %v1462_v3, %s3404_s9 }
0x18ca   :  { %v1416_v32 = vpop.permute.xlu0 %1415 }
0x18cb   :  { %2966 = vmatmul.mubr.msk.bf16.vlgmr.msra.gmra.mrb[36].mxu0 %vm85_vm2, %v1416_v32 }
0x18cc   :  { %2978 = vmatpush3.bf16.msra.mxu0 %v3747_v7  ;;  %2981 = vmatprep.mubr.msk.bf16.mxu0 %vm3403_vm0, %v3402_v1 }
0x18cd   :  { %2979 = vmatprep.subr.bf16.mxu0 %v3402_v1 }
0x18ce   :  { %v1465_v33 = vpop.permute.xlu1 %1464 }
0x18cf   :  { %2974 = vmatmul.mubr.msk.bf16.vlgmr.msra.gmra.mrb[36].mxu1 %vm85_vm2, %v1465_v33 }
0x18d0   :  { %2986 = vmatpush3.bf16.msra.mxu1 %v3757_v9  ;;  %2980 = vmatpush3.bf16.msra.mxu0 %v3763_v10 }
0x18d1   :  { %2987 = vmatprep.subr.bf16.mxu1 %v3402_v1  ;;  %2989 = vmatprep.mubr.msk.bf16.mxu1 %vm3403_vm0, %v3402_v1 }
0x18d2   :  { %2993 = vmatprep.subr.bf16.mxu0 %v3402_v1 }
0x18d4   :  { %2988 = vmatpush3.bf16.msra.mxu1 %v3773_v11 }
0x18d5   :  { %3001 = vmatprep.subr.bf16.mxu1 %v3402_v1 }
0x199e   :  { %v1454_v35 = vpop.f32.mrb[36].mxu0 }
0x199f   :  { %v1460_v4 = vadd.f32 %v1454_v35, %v1412_v34  ;;  %v2967_v36 = vpop.f32.mrb[37].mxu0 }
0x19a0   :  { %v1457_v37 = vpop.f32.mrb[38].mxu0 }
0x19a1   :  { %3262 = vtanh.f32 %v1460_v4  ;;  %v2968_v39 = vpop.f32.mrb[39].mxu0  ;;  %v2682_v47 = vmul.f32 -1.442695, %v1460_v4 }
0x19a2   :  { %v1503_v40 = vpop.f32.mrb[36].mxu1 }
0x19a3   :  { %v1509_v41 = vadd.f32 %v1503_v40, %v1461_v38  ;;  %v2975_v42 = vpop.f32.mrb[37].mxu1 }
0x19a4   :  { %v1506_v43 = vpop.f32.mrb[38].mxu1 }
0x19a5   :  { %3264 = vtanh.f32 %v1509_v41  ;;  %v2976_v44 = vpop.f32.mrb[39].mxu1  ;;  %v2683_v48 = vmul.f32 -1.442695, %v1509_v41 }
0x19a6   :  { %3266 = vpow2.f32 %v2682_v47 }
0x19a7   :  { %3268 = vpow2.f32 %v2683_v48 }
0x19ab   :  { %v3263_v45 = vpop.eup %3262 }
0x19ac   :  { %1519 = vrot.lane.b32.xlu0 %v3263_v45, %s3405_s14 }
0x19af   :  { %v3265_v46 = vpop.eup %3264 }
0x19b0   :  { %1543 = vrot.lane.b32.xlu1 %v3265_v46, %s3405_s14  ;;  %v3267_v49 = vpop.eup %3266 }
0x19b1   :  { %v1513_v50 = vadd.f32 1.0, %v3267_v49  ;;  %v3269_v51 = vpop.eup %3268 }
0x19b2   :  { %v1537_v52 = vadd.f32 1.0, %v3269_v51 }
0x19b3   :  { %3270 = vrcp.f32 %v1513_v50 }
0x19b4   :  { %3272 = vrcp.f32 %v1537_v52 }
0x19bd   :  { %v3271_v53 = vpop.eup %3270 }
0x19be   :  { %v3273_v56 = vpop.eup %3272  ;;  %v1517_v59 = vmul.f32 %v3271_v53, %v3824_v23 }
0x19bf   :  { %v1541_v62 = vmul.f32 %v3273_v56, %v3828_v26 }
0x1a1e   :  { %v1520_v54 = vpop.permute.xlu0 %1519 }
0x1a1f   :  { %v1522_v55 = vmul.f32 %v3271_v53, %v1520_v54 }
0x1a21   :  { %1524 = vrot.lane.b32.xlu0 %v1522_v55, %s3404_s9 }
0x1a22   :  { %v1544_v57 = vpop.permute.xlu1 %1543 }
0x1a23   :  { %v1546_v58 = vmul.f32 %v3273_v56, %v1544_v57 }
0x1a25   :  { %1548 = vrot.lane.b32.xlu1 %v1546_v58, %s3404_s9  ;;  %v1704_v58 = vld [vmem:[%s4108_s0 + $0x16] sm:$0x3] }
0x1a93   :  { %v1525_v60 = vpop.permute.xlu0 %1524 }
0x1a94   :  { %v3860_v61 = vadd.f32 %v1525_v60, %v1517_v59 }
0x1a96   :  { %3274 = vtanh.f32 %v3860_v61 }
0x1a97   :  { %v1549_v63 = vpop.permute.xlu1 %1548 }
0x1a98   :  { %v3864_v5 = vadd.f32 %v1549_v63, %v1541_v62  ;;  %v1753_v63 = vld [vmem:[%s4109_s1 + $0x8] sm:$0x3] }
0x1a9a   :  { %3276 = vtanh.f32 %v3864_v5 }
0x1aa0   :  { %v3275_v6 = vpop.eup %3274 }
0x1aa1   :  { %1530 = vrot.lane.b32.xlu0 %v3275_v6, %s3405_s14 }
0x1aa4   :  { %v3277_v8 = vpop.eup %3276 }
0x1aa5   :  { %1554 = vrot.lane.b32.xlu1 %v3277_v8, %s3405_s14 }
0x1b13   :  { %v1531_v12 = vpop.permute.xlu0 %1530 }
0x1b14   :  { %v1533_v13 = vmul.f32 %v3271_v53, %v1531_v12 }
0x1b16   :  { %v1559_v14 = vpack.c.bf16 %v1533_v13, %v1533_v13 }
0x1b17   :  { %v1555_v15 = vpop.permute.xlu1 %1554 }
0x1b18   :  { %v1557_v16 = vmul.f32 %v3273_v56, %v1555_v15  ;;  %1561 = vrot.lane.b32.xlu0 %v1559_v14, %s3404_s9 }
0x1b1a   :  { %v1608_v17 = vpack.c.bf16 %v1557_v16, %v1557_v16 }
0x1b1c   :  { %1610 = vrot.lane.b32.xlu1 %v1608_v17, %s3404_s9 }
0x1b8a   :  { %v1562_v18 = vpop.permute.xlu0 %1561 }
0x1b8b   :  { %2982 = vmatmul.mubr.msk.bf16.vlgmr.msra.gmra.mrb[40].mxu0 %vm85_vm2, %v1562_v18 }
0x1b8c   :  { %2994 = vmatpush3.bf16.msra.mxu0 %v3747_v7  ;;  %2997 = vmatprep.mubr.msk.bf16.mxu0 %vm3403_vm0, %v3402_v1 }
0x1b8d   :  { %2995 = vmatprep.subr.bf16.mxu0 %v3402_v1 }
0x1b8e   :  { %v1611_v19 = vpop.permute.xlu1 %1610 }
0x1b8f   :  { %2990 = vmatmul.mubr.msk.bf16.vlgmr.msra.gmra.mrb[40].mxu1 %vm85_vm2, %v1611_v19 }
0x1b90   :  { %3002 = vmatpush3.bf16.msra.mxu1 %v3757_v9  ;;  %2996 = vmatpush3.bf16.msra.mxu0 %v3763_v10 }
0x1b91   :  { %3003 = vmatprep.subr.bf16.mxu1 %v3402_v1  ;;  %3005 = vmatprep.mubr.msk.bf16.mxu1 %vm3403_vm0, %v3402_v1 }
0x1b92   :  { %3009 = vmatprep.subr.bf16.mxu0 %v3402_v1 }
0x1b94   :  { %3004 = vmatpush3.bf16.msra.mxu1 %v3773_v11 }
0x1b95   :  { %3017 = vmatprep.subr.bf16.mxu1 %v3402_v1 }
0x1c5e   :  { %v1600_v21 = vpop.f32.mrb[40].mxu0 }
0x1c5f   :  { %v1606_v22 = vadd.f32 %v1600_v21, %v1558_v20  ;;  %v2983_v23 = vpop.f32.mrb[41].mxu0 }
0x1c60   :  { %v1603_v24 = vpop.f32.mrb[42].mxu0 }
0x1c61   :  { %3278 = vtanh.f32 %v1606_v22  ;;  %v2984_v26 = vpop.f32.mrb[43].mxu0  ;;  %v2686_v3 = vmul.f32 -1.442695, %v1606_v22 }
0x1c62   :  { %v1649_v27 = vpop.f32.mrb[40].mxu1 }
0x1c63   :  { %v1655_v28 = vadd.f32 %v1649_v27, %v1607_v25  ;;  %v2991_v0 = vpop.f32.mrb[41].mxu1 }
0x1c64   :  { %v1652_v29 = vpop.f32.mrb[42].mxu1 }
0x1c65   :  { %3280 = vtanh.f32 %v1655_v28  ;;  %v2992_v30 = vpop.f32.mrb[43].mxu1  ;;  %v2687_v32 = vmul.f32 -1.442695, %v1655_v28 }
0x1c66   :  { %3282 = vpow2.f32 %v2686_v3 }
0x1c67   :  { %3284 = vpow2.f32 %v2687_v32 }
0x1c6b   :  { %v3279_v2 = vpop.eup %3278 }
0x1c6c   :  { %1665 = vrot.lane.b32.xlu0 %v3279_v2, %s3405_s14 }
0x1c6f   :  { %v3281_v31 = vpop.eup %3280 }
0x1c70   :  { %1689 = vrot.lane.b32.xlu1 %v3281_v31, %s3405_s14  ;;  %v3283_v33 = vpop.eup %3282 }
0x1c71   :  { %v1659_v34 = vadd.f32 1.0, %v3283_v33  ;;  %v3285_v35 = vpop.eup %3284 }
0x1c72   :  { %v1683_v4 = vadd.f32 1.0, %v3285_v35 }
0x1c73   :  { %3286 = vrcp.f32 %v1659_v34 }
0x1c74   :  { %3288 = vrcp.f32 %v1683_v4 }
0x1c7d   :  { %v3287_v36 = vpop.eup %3286 }
0x1c7e   :  { %v3289_v39 = vpop.eup %3288  ;;  %v1663_v42 = vmul.f32 %v3287_v36, %v3860_v61 }
0x1c7f   :  { %v1687_v45 = vmul.f32 %v3289_v39, %v3864_v5 }
0x1cde   :  { %v1666_v37 = vpop.permute.xlu0 %1665 }
0x1cdf   :  { %v1668_v38 = vmul.f32 %v3287_v36, %v1666_v37 }
0x1ce1   :  { %1670 = vrot.lane.b32.xlu0 %v1668_v38, %s3404_s9 }
0x1ce2   :  { %v1690_v40 = vpop.permute.xlu1 %1689 }
0x1ce3   :  { %v1692_v41 = vmul.f32 %v3289_v39, %v1690_v40 }
0x1ce5   :  { %1694 = vrot.lane.b32.xlu1 %v1692_v41, %s3404_s9  ;;  %v1850_v41 = vld [vmem:[%s4108_s0 + $0x18] sm:$0x3] }
0x1d53   :  { %v1671_v43 = vpop.permute.xlu0 %1670 }
0x1d54   :  { %v3896_v44 = vadd.f32 %v1671_v43, %v1663_v42 }
0x1d56   :  { %3290 = vtanh.f32 %v3896_v44 }
0x1d57   :  { %v1695_v46 = vpop.permute.xlu1 %1694 }
0x1d58   :  { %v3900_v47 = vadd.f32 %v1695_v46, %v1687_v45  ;;  %v1899_v46 = vld [vmem:[%s4109_s1 + $0x6] sm:$0x3] }
0x1d5a   :  { %3292 = vtanh.f32 %v3900_v47 }
0x1d60   :  { %v3291_v48 = vpop.eup %3290 }
0x1d61   :  { %1676 = vrot.lane.b32.xlu0 %v3291_v48, %s3405_s14 }
0x1d64   :  { %v3293_v49 = vpop.eup %3292 }
0x1d65   :  { %1700 = vrot.lane.b32.xlu1 %v3293_v49, %s3405_s14 }
0x1dd3   :  { %v1677_v50 = vpop.permute.xlu0 %1676 }
0x1dd4   :  { %v1679_v51 = vmul.f32 %v3287_v36, %v1677_v50 }
0x1dd6   :  { %v1705_v52 = vpack.c.bf16 %v1679_v51, %v1679_v51 }
0x1dd7   :  { %v1701_v53 = vpop.permute.xlu1 %1700 }
0x1dd8   :  { %v1703_v54 = vmul.f32 %v3289_v39, %v1701_v53  ;;  %1707 = vrot.lane.b32.xlu0 %v1705_v52, %s3404_s9 }
0x1dda   :  { %v1754_v55 = vpack.c.bf16 %v1703_v54, %v1703_v54 }
0x1ddc   :  { %1756 = vrot.lane.b32.xlu1 %v1754_v55, %s3404_s9 }
0x1e4a   :  { %v1708_v56 = vpop.permute.xlu0 %1707 }
0x1e4b   :  { %2998 = vmatmul.mubr.msk.bf16.vlgmr.msra.gmra.mrb[44].mxu0 %vm85_vm2, %v1708_v56 }
0x1e4c   :  { %3010 = vmatpush3.bf16.msra.mxu0 %v3747_v7  ;;  %3013 = vmatprep.mubr.msk.bf16.mxu0 %vm3403_vm0, %v3402_v1 }
0x1e4d   :  { %3011 = vmatprep.subr.bf16.mxu0 %v3402_v1 }
0x1e4e   :  { %v1757_v57 = vpop.permute.xlu1 %1756 }
0x1e4f   :  { %3006 = vmatmul.mubr.msk.bf16.vlgmr.msra.gmra.mrb[44].mxu1 %vm85_vm2, %v1757_v57 }
0x1e50   :  { %3018 = vmatpush3.bf16.msra.mxu1 %v3757_v9  ;;  %3012 = vmatpush3.bf16.msra.mxu0 %v3763_v10 }
0x1e51   :  { %3019 = vmatprep.subr.bf16.mxu1 %v3402_v1  ;;  %3021 = vmatprep.mubr.msk.bf16.mxu1 %vm3403_vm0, %v3402_v1 }
0x1e52   :  { %3025 = vmatprep.subr.bf16.mxu0 %v3402_v1 }
0x1e54   :  { %3020 = vmatpush3.bf16.msra.mxu1 %v3773_v11 }
0x1e55   :  { %3033 = vmatprep.subr.bf16.mxu1 %v3402_v1 }
0x1f1e   :  { %v1746_v59 = vpop.f32.mrb[44].mxu0 }
0x1f1f   :  { %v1752_v60 = vadd.f32 %v1746_v59, %v1704_v58  ;;  %v2999_v61 = vpop.f32.mrb[45].mxu0 }
0x1f20   :  { %v1749_v62 = vpop.f32.mrb[46].mxu0 }
0x1f21   :  { %3294 = vtanh.f32 %v1752_v60  ;;  %v3000_v5 = vpop.f32.mrb[47].mxu0  ;;  %v2690_v17 = vmul.f32 -1.442695, %v1752_v60 }
0x1f22   :  { %v1795_v6 = vpop.f32.mrb[44].mxu1 }
0x1f23   :  { %v1801_v8 = vadd.f32 %v1795_v6, %v1753_v63  ;;  %v3007_v12 = vpop.f32.mrb[45].mxu1 }
0x1f24   :  { %v1798_v13 = vpop.f32.mrb[46].mxu1 }
0x1f25   :  { %3296 = vtanh.f32 %v1801_v8  ;;  %v3008_v14 = vpop.f32.mrb[47].mxu1  ;;  %v2691_v18 = vmul.f32 -1.442695, %v1801_v8 }
0x1f26   :  { %3298 = vpow2.f32 %v2690_v17 }
0x1f27   :  { %3300 = vpow2.f32 %v2691_v18 }
0x1f2b   :  { %v3295_v15 = vpop.eup %3294 }
0x1f2c   :  { %1811 = vrot.lane.b32.xlu0 %v3295_v15, %s3405_s14 }
0x1f2f   :  { %v3297_v16 = vpop.eup %3296 }
0x1f30   :  { %1835 = vrot.lane.b32.xlu1 %v3297_v16, %s3405_s14  ;;  %v3299_v19 = vpop.eup %3298 }
0x1f31   :  { %v1805_v20 = vadd.f32 1.0, %v3299_v19  ;;  %v3301_v21 = vpop.eup %3300 }
0x1f32   :  { %v1829_v22 = vadd.f32 1.0, %v3301_v21 }
0x1f33   :  { %3302 = vrcp.f32 %v1805_v20 }
0x1f34   :  { %3304 = vrcp.f32 %v1829_v22 }
0x1f3d   :  { %v3303_v23 = vpop.eup %3302 }
0x1f3e   :  { %v3305_v26 = vpop.eup %3304  ;;  %v1809_v0 = vmul.f32 %v3303_v23, %v3896_v44 }
0x1f3f   :  { %v1833_v2 = vmul.f32 %v3305_v26, %v3900_v47 }
0x1f9e   :  { %v1812_v24 = vpop.permute.xlu0 %1811 }
0x1f9f   :  { %v1814_v25 = vmul.f32 %v3303_v23, %v1812_v24 }
0x1fa1   :  { %1816 = vrot.lane.b32.xlu0 %v1814_v25, %s3404_s9 }
0x1fa2   :  { %v1836_v27 = vpop.permute.xlu1 %1835 }
0x1fa3   :  { %v1838_v28 = vmul.f32 %v3305_v26, %v1836_v27 }
0x1fa5   :  { %1840 = vrot.lane.b32.xlu1 %v1838_v28, %s3404_s9  ;;  %v1996_v28 = vld [vmem:[%s4108_s0 + $0x1a] sm:$0x3] }
0x2013   :  { %v1817_v29 = vpop.permute.xlu0 %1816 }
0x2014   :  { %v3932_v30 = vadd.f32 %v1817_v29, %v1809_v0 }
0x2016   :  { %3306 = vtanh.f32 %v3932_v30 }
0x2017   :  { %v1841_v31 = vpop.permute.xlu1 %1840 }
0x2018   :  { %v3936_v3 = vadd.f32 %v1841_v31, %v1833_v2  ;;  %v2045_v31 = vld [vmem:[%s4109_s1 + $0x4] sm:$0x3] }
0x201a   :  { %3308 = vtanh.f32 %v3936_v3 }
0x2020   :  { %v3307_v32 = vpop.eup %3306 }
0x2021   :  { %1822 = vrot.lane.b32.xlu0 %v3307_v32, %s3405_s14 }
0x2024   :  { %v3309_v33 = vpop.eup %3308 }
0x2025   :  { %1846 = vrot.lane.b32.xlu1 %v3309_v33, %s3405_s14 }
0x2093   :  { %v1823_v34 = vpop.permute.xlu0 %1822 }
0x2094   :  { %v1825_v35 = vmul.f32 %v3303_v23, %v1823_v34 }
0x2096   :  { %v1851_v4 = vpack.c.bf16 %v1825_v35, %v1825_v35 }
0x2097   :  { %v1847_v36 = vpop.permute.xlu1 %1846 }
0x2098   :  { %v1849_v37 = vmul.f32 %v3305_v26, %v1847_v36  ;;  %1853 = vrot.lane.b32.xlu0 %v1851_v4, %s3404_s9 }
0x209a   :  { %v1900_v38 = vpack.c.bf16 %v1849_v37, %v1849_v37 }
0x209c   :  { %1902 = vrot.lane.b32.xlu1 %v1900_v38, %s3404_s9 }
0x210a   :  { %v1854_v39 = vpop.permute.xlu0 %1853 }
0x210b   :  { %3014 = vmatmul.mubr.msk.bf16.vlgmr.msra.gmra.mrb[48].mxu0 %vm85_vm2, %v1854_v39 }
0x210c   :  { %3026 = vmatpush3.bf16.msra.mxu0 %v3747_v7  ;;  %3029 = vmatprep.mubr.msk.bf16.mxu0 %vm3403_vm0, %v3402_v1 }
0x210d   :  { %3027 = vmatprep.subr.bf16.mxu0 %v3402_v1 }
0x210e   :  { %v1903_v40 = vpop.permute.xlu1 %1902 }
0x210f   :  { %3022 = vmatmul.mubr.msk.bf16.vlgmr.msra.gmra.mrb[48].mxu1 %vm85_vm2, %v1903_v40 }
0x2110   :  { %3034 = vmatpush3.bf16.msra.mxu1 %v3757_v9  ;;  %3028 = vmatpush3.bf16.msra.mxu0 %v3763_v10 }
0x2111   :  { %3035 = vmatprep.subr.bf16.mxu1 %v3402_v1  ;;  %3037 = vmatprep.mubr.msk.bf16.mxu1 %vm3403_vm0, %v3402_v1 }
0x2112   :  { %3041 = vmatprep.subr.bf16.mxu0 %v3402_v1 }
0x2114   :  { %3036 = vmatpush3.bf16.msra.mxu1 %v3773_v11 }
0x2115   :  { %3049 = vmatprep.subr.bf16.mxu1 %v3402_v1 }
0x21de   :  { %v1892_v42 = vpop.f32.mrb[48].mxu0 }
0x21df   :  { %v1898_v43 = vadd.f32 %v1892_v42, %v1850_v41  ;;  %v3015_v44 = vpop.f32.mrb[49].mxu0 }
0x21e0   :  { %v1895_v45 = vpop.f32.mrb[50].mxu0 }
0x21e1   :  { %3310 = vtanh.f32 %v1898_v43  ;;  %v3016_v47 = vpop.f32.mrb[51].mxu0  ;;  %v2694_v55 = vmul.f32 -1.442695, %v1898_v43 }
0x21e2   :  { %v1941_v48 = vpop.f32.mrb[48].mxu1 }
0x21e3   :  { %v1947_v49 = vadd.f32 %v1941_v48, %v1899_v46  ;;  %v3023_v50 = vpop.f32.mrb[49].mxu1 }
0x21e4   :  { %v1944_v51 = vpop.f32.mrb[50].mxu1 }
0x21e5   :  { %3312 = vtanh.f32 %v1947_v49  ;;  %v3024_v52 = vpop.f32.mrb[51].mxu1  ;;  %v2695_v56 = vmul.f32 -1.442695, %v1947_v49 }
0x21e6   :  { %3314 = vpow2.f32 %v2694_v55 }
0x21e7   :  { %3316 = vpow2.f32 %v2695_v56 }
0x21eb   :  { %v3311_v53 = vpop.eup %3310 }
0x21ec   :  { %1957 = vrot.lane.b32.xlu0 %v3311_v53, %s3405_s14 }
0x21ef   :  { %v3313_v54 = vpop.eup %3312 }
0x21f0   :  { %1981 = vrot.lane.b32.xlu1 %v3313_v54, %s3405_s14  ;;  %v3315_v57 = vpop.eup %3314 }
0x21f1   :  { %v1951_v58 = vadd.f32 1.0, %v3315_v57  ;;  %v3317_v59 = vpop.eup %3316 }
0x21f2   :  { %v1975_v60 = vadd.f32 1.0, %v3317_v59 }
0x21f3   :  { %3318 = vrcp.f32 %v1951_v58 }
0x21f4   :  { %3320 = vrcp.f32 %v1975_v60 }
0x21fd   :  { %v3319_v61 = vpop.eup %3318 }
0x21fe   :  { %v3321_v5 = vpop.eup %3320  ;;  %v1955_v12 = vmul.f32 %v3319_v61, %v3932_v30 }
0x21ff   :  { %v1979_v15 = vmul.f32 %v3321_v5, %v3936_v3 }
0x225e   :  { %v1958_v62 = vpop.permute.xlu0 %1957 }
0x225f   :  { %v1960_v63 = vmul.f32 %v3319_v61, %v1958_v62 }
0x2261   :  { %1962 = vrot.lane.b32.xlu0 %v1960_v63, %s3404_s9 }
0x2262   :  { %v1982_v6 = vpop.permute.xlu1 %1981 }
0x2263   :  { %v1984_v8 = vmul.f32 %v3321_v5, %v1982_v6 }
0x2265   :  { %1986 = vrot.lane.b32.xlu1 %v1984_v8, %s3404_s9 }
0x22d3   :  { %v1963_v13 = vpop.permute.xlu0 %1962 }
0x22d4   :  { %v3968_v14 = vadd.f32 %v1963_v13, %v1955_v12 }
0x22d6   :  { %3322 = vtanh.f32 %v3968_v14 }
0x22d7   :  { %v1987_v16 = vpop.permute.xlu1 %1986 }
0x22d8   :  { %v3972_v17 = vadd.f32 %v1987_v16, %v1979_v15 }
0x22da   :  { %3324 = vtanh.f32 %v3972_v17 }
0x22e0   :  { %v3323_v18 = vpop.eup %3322 }
0x22e1   :  { %1968 = vrot.lane.b32.xlu0 %v3323_v18, %s3405_s14 }
0x22e4   :  { %v3325_v19 = vpop.eup %3324 }
0x22e5   :  { %1992 = vrot.lane.b32.xlu1 %v3325_v19, %s3405_s14 }
0x2353   :  { %v1969_v20 = vpop.permute.xlu0 %1968 }
0x2354   :  { %v1971_v21 = vmul.f32 %v3319_v61, %v1969_v20 }
0x2356   :  { %v1997_v22 = vpack.c.bf16 %v1971_v21, %v1971_v21 }
0x2357   :  { %v1993_v23 = vpop.permute.xlu1 %1992 }
0x2358   :  { %v1995_v24 = vmul.f32 %v3321_v5, %v1993_v23  ;;  %1999 = vrot.lane.b32.xlu0 %v1997_v22, %s3404_s9 }
0x235a   :  { %v2046_v25 = vpack.c.bf16 %v1995_v24, %v1995_v24 }
0x235c   :  { %2048 = vrot.lane.b32.xlu1 %v2046_v25, %s3404_s9 }
0x23ca   :  { %v2000_v26 = vpop.permute.xlu0 %1999 }
0x23cb   :  { %3030 = vmatmul.mubr.msk.bf16.vlgmr.msra.gmra.mrb[52].mxu0 %vm85_vm2, %v2000_v26 }
0x23cc   :  { %3042 = vmatpush3.bf16.msra.mxu0 %v3747_v7  ;;  %3045 = vmatprep.mubr.msk.bf16.mxu0 %vm3403_vm0, %v3402_v1 }
0x23cd   :  { %3043 = vmatprep.subr.bf16.mxu0 %v3402_v1 }
0x23ce   :  { %v2049_v27 = vpop.permute.xlu1 %2048 }
0x23cf   :  { %3038 = vmatmul.mubr.msk.bf16.vlgmr.msra.gmra.mrb[52].mxu1 %vm85_vm2, %v2049_v27 }
0x23d0   :  { %3050 = vmatpush3.bf16.msra.mxu1 %v3757_v9  ;;  %3044 = vmatpush3.bf16.msra.mxu0 %v3763_v10 }
0x23d1   :  { %3051 = vmatprep.subr.bf16.mxu1 %v3402_v1  ;;  %3053 = vmatprep.mubr.msk.bf16.mxu1 %vm3403_vm0, %v3402_v1 }
0x23d2   :  { %3057 = vmatprep.subr.bf16.mxu0 %v3402_v1 }
0x23d4   :  { %3052 = vmatpush3.bf16.msra.mxu1 %v3773_v11 }
0x23d5   :  { %3065 = vmatprep.subr.bf16.mxu1 %v3402_v1 }
0x249e   :  { %v2038_v0 = vpop.f32.mrb[52].mxu0 }
0x249f   :  { %v2044_v29 = vadd.f32 %v2038_v0, %v1996_v28  ;;  %v3031_v30 = vpop.f32.mrb[53].mxu0 }
0x24a0   :  { %v2041_v2 = vpop.f32.mrb[54].mxu0 }
0x24a1   :  { %3326 = vtanh.f32 %v2044_v29  ;;  %v3032_v3 = vpop.f32.mrb[55].mxu0  ;;  %v2698_v38 = vmul.f32 -1.442695, %v2044_v29 }
0x24a2   :  { %v2087_v32 = vpop.f32.mrb[52].mxu1 }
0x24a3   :  { %v2093_v33 = vadd.f32 %v2087_v32, %v2045_v31  ;;  %v3039_v34 = vpop.f32.mrb[53].mxu1 }
0x24a4   :  { %v2090_v35 = vpop.f32.mrb[54].mxu1 }
0x24a5   :  { %3328 = vtanh.f32 %v2093_v33  ;;  %v3040_v4 = vpop.f32.mrb[55].mxu1  ;;  %v2699_v39 = vmul.f32 -1.442695, %v2093_v33 }
0x24a6   :  { %3330 = vpow2.f32 %v2698_v38 }
0x24a7   :  { %3332 = vpow2.f32 %v2699_v39 }
0x24ab   :  { %v3327_v36 = vpop.eup %3326 }
0x24ac   :  { %2103 = vrot.lane.b32.xlu0 %v3327_v36, %s3405_s14 }
0x24af   :  { %v3329_v37 = vpop.eup %3328 }
0x24b0   :  { %2127 = vrot.lane.b32.xlu1 %v3329_v37, %s3405_s14  ;;  %v3331_v40 = vpop.eup %3330 }
0x24b1   :  { %v2097_v41 = vadd.f32 1.0, %v3331_v40  ;;  %v3333_v42 = vpop.eup %3332 }
0x24b2   :  { %v2121_v43 = vadd.f32 1.0, %v3333_v42 }
0x24b3   :  { %3334 = vrcp.f32 %v2097_v41 }
0x24b4   :  { %3336 = vrcp.f32 %v2121_v43 }
0x24bd   :  { %v3335_v44 = vpop.eup %3334 }
0x24be   :  { %v3337_v47 = vpop.eup %3336  ;;  %v2101_v50 = vmul.f32 %v3335_v44, %v3968_v14 }
0x24bf   :  { %v2125_v53 = vmul.f32 %v3337_v47, %v3972_v17 }
0x251e   :  { %v2104_v45 = vpop.permute.xlu0 %2103 }
0x251f   :  { %v2106_v46 = vmul.f32 %v3335_v44, %v2104_v45  ;;  %v2288_v45 = vld [vmem:[%s4108_s0 + $0x1e] sm:$0x3] }
0x2521   :  { %2108 = vrot.lane.b32.xlu0 %v2106_v46, %s3404_s9 }
0x2522   :  { %v2128_v48 = vpop.permute.xlu1 %2127 }
0x2523   :  { %v2130_v49 = vmul.f32 %v3337_v47, %v2128_v48 }
0x2525   :  { %2132 = vrot.lane.b32.xlu1 %v2130_v49, %s3404_s9 }
0x2593   :  { %v2109_v51 = vpop.permute.xlu0 %2108 }
0x2594   :  { %v4004_v52 = vadd.f32 %v2109_v51, %v2101_v50  ;;  %v2337_v50 = vld [vmem:[%s4109_s1] sm:$0x3] }
0x2596   :  { %3338 = vtanh.f32 %v4004_v52 }
0x2597   :  { %v2133_v54 = vpop.permute.xlu1 %2132 }
0x2598   :  { %v4008_v55 = vadd.f32 %v2133_v54, %v2125_v53 }
0x259a   :  { %3340 = vtanh.f32 %v4008_v55 }
0x25a0   :  { %v3339_v56 = vpop.eup %3338 }
0x25a1   :  { %2114 = vrot.lane.b32.xlu0 %v3339_v56, %s3405_s14 }
0x25a4   :  { %v3341_v57 = vpop.eup %3340 }
0x25a5   :  { %2138 = vrot.lane.b32.xlu1 %v3341_v57, %s3405_s14 }
0x2613   :  { %v2115_v58 = vpop.permute.xlu0 %2114 }
0x2614   :  { %v2117_v59 = vmul.f32 %v3335_v44, %v2115_v58 }
0x2616   :  { %v2143_v60 = vpack.c.bf16 %v2117_v59, %v2117_v59 }
0x2617   :  { %v2139_v61 = vpop.permute.xlu1 %2138 }
0x2618   :  { %v2141_v62 = vmul.f32 %v3337_v47, %v2139_v61  ;;  %2145 = vrot.lane.b32.xlu0 %v2143_v60, %s3404_s9 }
0x261a   :  { %v2192_v63 = vpack.c.bf16 %v2141_v62, %v2141_v62 }
0x261c   :  { %2194 = vrot.lane.b32.xlu1 %v2192_v63, %s3404_s9 }
0x268a   :  { %v2146_v5 = vpop.permute.xlu0 %2145 }
0x268b   :  { %3046 = vmatmul.mubr.msk.bf16.vlgmr.msra.gmra.mrb[56].mxu0 %vm85_vm2, %v2146_v5 }
0x268c   :  { %3058 = vmatpush3.bf16.msra.mxu0 %v3747_v7  ;;  %3061 = vmatprep.mubr.msk.bf16.mxu0 %vm3403_vm0, %v3402_v1  ;;  %v2142_v7 = vld [vmem:[%s4108_s0 + $0x1c] sm:$0x3] }
0x268d   :  { %3059 = vmatprep.subr.bf16.mxu0 %v3402_v1 }
0x268e   :  { %v2195_v6 = vpop.permute.xlu1 %2194 }
0x268f   :  { %3054 = vmatmul.mubr.msk.bf16.vlgmr.msra.gmra.mrb[56].mxu1 %vm85_vm2, %v2195_v6 }
0x2690   :  { %3066 = vmatpush3.bf16.msra.mxu1 %v3757_v9  ;;  %3060 = vmatpush3.bf16.msra.mxu0 %v3763_v10  ;;  %v2191_v9 = vld [vmem:[%s4109_s1 + $0x2] sm:$0x3] }
0x2691   :  { %3067 = vmatprep.subr.bf16.mxu1 %v3402_v1  ;;  %3069 = vmatprep.mubr.msk.bf16.mxu1 %vm3403_vm0, %v3402_v1 }
0x2694   :  { %3068 = vmatpush3.bf16.msra.mxu1 %v3773_v11 }
0x275e   :  { %v2184_v8 = vpop.f32.mrb[56].mxu0 }
0x275f   :  { %v2190_v12 = vadd.f32 %v2184_v8, %v2142_v7  ;;  %v3047_v13 = vpop.f32.mrb[57].mxu0 }
0x2760   :  { %v2187_v14 = vpop.f32.mrb[58].mxu0 }
0x2761   :  { %3342 = vtanh.f32 %v2190_v12  ;;  %v3048_v10 = vpop.f32.mrb[59].mxu0  ;;  %v2702_v21 = vmul.f32 -1.442695, %v2190_v12 }
0x2762   :  { %v2233_v15 = vpop.f32.mrb[56].mxu1 }
0x2763   :  { %v2239_v16 = vadd.f32 %v2233_v15, %v2191_v9  ;;  %v3055_v17 = vpop.f32.mrb[57].mxu1 }
0x2764   :  { %v2236_v18 = vpop.f32.mrb[58].mxu1 }
0x2765   :  { %3344 = vtanh.f32 %v2239_v16  ;;  %v3056_v11 = vpop.f32.mrb[59].mxu1  ;;  %v2703_v22 = vmul.f32 -1.442695, %v2239_v16  ;;  %v2458_v18 = vld [vmem:[%s4112_s4] sm:$0xff] }
0x2766   :  { %3346 = vpow2.f32 %v2702_v21  ;;  %v2459_v11 = vld [vmem:[%s4112_s4 + $0x8] sm:$0xff] }
0x2767   :  { %3348 = vpow2.f32 %v2703_v22  ;;  %v3102_v21 = vpack.c.bf16 %v2459_v11, %v2458_v18  ;;  %v2463_v22 = vld [vmem:[%s4113_s5 + $0x8] sm:$0xff] }
0x276b   :  { %v3343_v19 = vpop.eup %3342 }
0x276c   :  { %2249 = vrot.lane.b32.xlu0 %v3343_v19, %s3405_s14  ;;  %v2462_v19 = vld [vmem:[%s4113_s5] sm:$0xff] }
0x276f   :  { %v3345_v20 = vpop.eup %3344 }
0x2770   :  { %2273 = vrot.lane.b32.xlu1 %v3345_v20, %s3405_s14  ;;  %v3347_v23 = vpop.eup %3346  ;;  %v3406_v20 = vmov 0.0|0.0  }
0x2771   :  { %v2243_v24 = vadd.f32 1.0, %v3347_v23  ;;  %v3349_v25 = vpop.eup %3348  ;;  %3101 = vmatprep.subr.bf16.mxu1 %v3406_v20  ;;  %3095 = vmatprep.subr.bf16.mxu0 %v3406_v20  ;;  %v2460_v23 = vld [vmem:[%s4112_s4 + $0x10] sm:$0xff] }
0x2772   :  { %v2267_v26 = vadd.f32 1.0, %v3349_v25 }
0x2773   :  { %3350 = vrcp.f32 %v2243_v24  ;;  %v2461_v24 = vld [vmem:[%s4112_s4 + $0x18] sm:$0xff]  ;;  %s3407_s4 = smov 96  }
0x2774   :  { %3352 = vrcp.f32 %v2267_v26  ;;  %v3096_v26 = vpack.c.bf16 %v2463_v22, %v2462_v19 }
0x277d   :  { %v3351_v27 = vpop.eup %3350 }
0x277e   :  { %v3353_v29 = vpop.eup %3352  ;;  %v2247_v31 = vmul.f32 %v3351_v27, %v4004_v52 }
0x277f   :  { %v2271_v33 = vmul.f32 %v3353_v29, %v4008_v55 }
0x27de   :  { %v2250_v28 = vpop.permute.xlu0 %2249 }
0x27df   :  { %v2252_v0 = vmul.f32 %v3351_v27, %v2250_v28 }
0x27e1   :  { %2254 = vrot.lane.b32.xlu0 %v2252_v0, %s3404_s9  ;;  %v2464_v0 = vld [vmem:[%s4113_s5 + $0x10] sm:$0xff] }
0x27e2   :  { %v2274_v30 = vpop.permute.xlu1 %2273 }
0x27e3   :  { %v2276_v2 = vmul.f32 %v3353_v29, %v2274_v30 }
0x27e5   :  { %2278 = vrot.lane.b32.xlu1 %v2276_v2, %s3404_s9 }
0x2853   :  { %v2255_v3 = vpop.permute.xlu0 %2254 }
0x2854   :  { %v2257_v32 = vadd.f32 %v2255_v3, %v2247_v31 }
0x2856   :  { %3354 = vtanh.f32 %v2257_v32 }
0x2857   :  { %v2279_v34 = vpop.permute.xlu1 %2278 }
0x2858   :  { %v2281_v35 = vadd.f32 %v2279_v34, %v2271_v33 }
0x285a   :  { %3356 = vtanh.f32 %v2281_v35 }
0x2860   :  { %v3355_v4 = vpop.eup %3354 }
0x2861   :  { %2260 = vrot.lane.b32.xlu0 %v3355_v4, %s3405_s14 }
0x2864   :  { %v3357_v36 = vpop.eup %3356 }
0x2865   :  { %2284 = vrot.lane.b32.xlu1 %v3357_v36, %s3405_s14 }
0x28d3   :  { %v2261_v37 = vpop.permute.xlu0 %2260 }
0x28d4   :  { %v2263_v38 = vmul.f32 %v3351_v27, %v2261_v37  ;;  %v3105_v27 = vpack.c.bf16 %v2461_v24, %v2460_v23 }
0x28d6   :  { %v2289_v39 = vpack.c.bf16 %v2263_v38, %v2263_v38 }
0x28d7   :  { %v2285_v40 = vpop.permute.xlu1 %2284 }
0x28d8   :  { %v2287_v41 = vmul.f32 %v3353_v29, %v2285_v40  ;;  %2291 = vrot.lane.b32.xlu0 %v2289_v39, %s3404_s9  ;;  %v2465_v29 = vld [vmem:[%s4113_s5 + $0x18] sm:$0xff]  ;;  %v2710_v39 = vld [vmem:[%s4114_s6] ss:$0 sm:$0xff] }
0x28d9   :  { %v3099_v30 = vpack.c.bf16 %v2465_v29, %v2464_v0 }
0x28da   :  { %v2338_v42 = vpack.c.bf16 %v2287_v41, %v2287_v41 }
0x28dc   :  { %2340 = vrot.lane.b32.xlu1 %v2338_v42, %s3404_s9 }
0x294a   :  { %v2292_v43 = vpop.permute.xlu0 %2291 }
0x294b   :  { %3062 = vmatmul.mubr.msk.bf16.vlgmr.msra.gmra.mrb[60].mxu0 %vm85_vm2, %v2292_v43 }
0x294c   :  { %3081 = vmatprep.mubr.msk.f32.mxu0 %vm3403_vm0, %v3402_v1  ;;  %3097 = vmatpush3.bf16.msra.mxu0 %v3096_v26 }
0x294d   :  { %3098 = vmatprep.subr.bf16.mxu0 %v3406_v20 }
0x294e   :  { %v2341_v44 = vpop.permute.xlu1 %2340 }
0x294f   :  { %3070 = vmatmul.mubr.msk.bf16.vlgmr.msra.gmra.mrb[60].mxu1 %vm85_vm2, %v2341_v44 }
0x2950   :  { %3092 = vmatprep.mubr.msk.f32.mxu1 %vm3403_vm0, %v3402_v1  ;;  %3103 = vmatpush3.bf16.msra.mxu1 %v3102_v21 }
0x2951   :  { %3104 = vmatprep.subr.bf16.mxu1 %v3406_v20  ;;  %3100 = vmatpush3.bf16.msra.mxu0 %v3099_v30 }
0x2954   :  { %3106 = vmatpush3.bf16.msra.mxu1 %v3105_v27 }
0x2a1e   :  { %v2330_v46 = vpop.f32.mrb[60].mxu0 }
0x2a1f   :  { %v2336_v47 = vadd.f32 %v2330_v46, %v2288_v45  ;;  %v3063_v48 = vpop.f32.mrb[61].mxu0 }
0x2a20   :  { %v2333_v49 = vpop.f32.mrb[62].mxu0 }
0x2a21   :  { %3358 = vtanh.f32 %v2336_v47  ;;  %v3064_v51 = vpop.f32.mrb[63].mxu0  ;;  %v2706_v58 = vmul.f32 -1.442695, %v2336_v47 }
0x2a22   :  { %v2379_v52 = vpop.f32.mrb[60].mxu1 }
0x2a23   :  { %v2385_v53 = vadd.f32 %v2379_v52, %v2337_v50  ;;  %v3071_v54 = vpop.f32.mrb[61].mxu1 }
0x2a24   :  { %v2382_v55 = vpop.f32.mrb[62].mxu1 }
0x2a25   :  { %3360 = vtanh.f32 %v2385_v53  ;;  %v3072_v1 = vpop.f32.mrb[63].mxu1  ;;  %v2707_v59 = vmul.f32 -1.442695, %v2385_v53 }
0x2a26   :  { %3362 = vpow2.f32 %v2706_v58 }
0x2a27   :  { %3364 = vpow2.f32 %v2707_v59 }
0x2a2b   :  { %v3359_v56 = vpop.eup %3358 }
0x2a2c   :  { %2395 = vrot.lane.b32.xlu0 %v3359_v56, %s3405_s14 }
0x2a2f   :  { %v3361_v57 = vpop.eup %3360 }
0x2a30   :  { %2419 = vrot.lane.b32.xlu1 %v3361_v57, %s3405_s14  ;;  %v3363_v60 = vpop.eup %3362 }
0x2a31   :  { %v2389_v61 = vadd.f32 1.0, %v3363_v60  ;;  %v3365_v62 = vpop.eup %3364 }
0x2a32   :  { %v2413_v63 = vadd.f32 1.0, %v3365_v62 }
0x2a33   :  { %3366 = vrcp.f32 %v2389_v61 }
0x2a34   :  { %3368 = vrcp.f32 %v2413_v63 }
0x2a3d   :  { %v3367_v5 = vpop.eup %3366 }
0x2a3e   :  { %v3369_v8 = vpop.eup %3368  ;;  %v2393_v14 = vmul.f32 %v3367_v5, %v2257_v32 }
0x2a3f   :  { %v2417_v15 = vmul.f32 %v3369_v8, %v2281_v35 }
0x2a9e   :  { %v2396_v6 = vpop.permute.xlu0 %2395 }
0x2a9f   :  { %v2398_v7 = vmul.f32 %v3367_v5, %v2396_v6 }
0x2aa1   :  { %2400 = vrot.lane.b32.xlu0 %v2398_v7, %s3404_s9 }
0x2aa2   :  { %v2420_v12 = vpop.permute.xlu1 %2419 }
0x2aa3   :  { %v2422_v13 = vmul.f32 %v3369_v8, %v2420_v12 }
0x2aa5   :  { %2424 = vrot.lane.b32.xlu1 %v2422_v13, %s3404_s9 }
0x2b13   :  { %v2401_v9 = vpop.permute.xlu0 %2400 }
0x2b14   :  { %v2403_v10 = vadd.f32 %v2401_v9, %v2393_v14 }
0x2b16   :  { %3370 = vtanh.f32 %v2403_v10 }
0x2b17   :  { %v2425_v16 = vpop.permute.xlu1 %2424 }
0x2b18   :  { %v2427_v17 = vadd.f32 %v2425_v16, %v2417_v15 }
0x2b1a   :  { %3372 = vtanh.f32 %v2427_v17 }
0x2b20   :  { %v3371_v25 = vpop.eup %3370 }
0x2b21   :  { %2406 = vrot.lane.b32.xlu0 %v3371_v25, %s3405_s14 }
0x2b24   :  { %v3373_v28 = vpop.eup %3372 }
0x2b25   :  { %2430 = vrot.lane.b32.xlu1 %v3373_v28, %s3405_s14  ;;  %s3408_s14 = smov [#allocation6]  }
0x2b26   :  { %s2626_s3 = sshll.u32 %s3408_s14, 4  ;;  %s2627_s3 = int_to_ptr.vmem [resolvable:$true] %s2626_s3 }
0x2b27   :  { %s3378_s29 = scalar_lea.vmem %s2627_s3, 32  ;;  %p3383_p1 = scmp.lt.s32.totalorder %s2627_s3, %s2627_s3 }
0x2b28   :  { %p3379_p0 = scmp.ne.s32.totalorder %s2627_s3, %s3378_s29  ;;  %p3384_p2 = scmp.lt.s32.totalorder %s3378_s29, %s3378_s29 }
0x2b2a   :  { %p3385_p3 = por %p3384_p2, %p3383_p1 }
0x2b2c   :  { %p3386_p4 = pnand %p3385_p3, %p3379_p0 }
0x2b93   :  { %v2407_v2 = vpop.permute.xlu0 %2406 }
0x2b94   :  { %v2409_v31 = vmul.f32 %v3367_v5, %v2407_v2 }
0x2b96   :  { %2435 = vrot.lane.b32.xlu0 %v2409_v31, %s3404_s9 }
0x2b97   :  { %v2431_v3 = vpop.permute.xlu1 %2430 }
0x2b98   :  { %v2433_v32 = vmul.f32 %v3369_v8, %v2431_v3 }
0x2b9a   :  { %2446 = vrot.lane.b32.xlu1 %v2433_v32, %s3404_s9  ;;  %2441 = vrot.lane.b32.xlu0 %v2403_v10, %s3407_s4 }
0x2b9e   :  { %2451 = vrot.lane.b32.xlu1 %v2427_v17, %s3407_s4 }
0x2c08   :  { %v2436_v33 = vpop.permute.xlu0 %2435 }
0x2c09   :  { %2439 = vst.msk [vmem:[#allocation2] sm:$0x3] %vm54_vm1, %v2436_v33  ;;  %3093 = vmatmul.mubr.msk.f32.vlgmr.msra.gmra.mrb[64].mxu1 %vm85_vm2, %v2436_v33 }
0x2c0c   :  { %v2447_v34 = vpop.permute.xlu1 %2446  ;;  %v2442_v35 = vpop.permute.xlu0 %2441 }
0x2c0d   :  { %2449 = vst.msk [vmem:[#allocation4] sm:$0x3] %vm54_vm1, %v2447_v34  ;;  %2444 = vst.msk [vmem:[#allocation3] sm:$0x3] %vm54_vm1, %v2442_v35  ;;  %3082 = vmatmul.mubr.msk.f32.vlgmr.msra.gmra.mrb[64].mxu0 %vm85_vm2, %v2447_v34 }
0x2c10   :  { %v2452_v4 = vpop.permute.xlu1 %2451 }
0x2c11   :  { %2454 = vst.msk [vmem:[#allocation5] sm:$0x3] %vm54_vm1, %v2452_v4 }
0x2cdc   :  { %v2606_v36 = vpop.f32.mrb[64].mxu1 }
0x2cdd   :  { %v3094_v37 = vpop.f32.mrb[65].mxu1 }
0x2ce0   :  { %v2534_v38 = vpop.f32.mrb[64].mxu0 }
0x2ce1   :  { %v2607_v40 = vadd.f32 %v2606_v36, %v2534_v38  ;;  %v3083_v41 = vpop.f32.mrb[65].mxu0 }
0x2ce3   :  { %v2617_v42 = vadd.f32 %v2710_v39, %v2607_v40 }
0x2ce5   :  { %2619 = vst.msk [vmem:[#allocation6] sm:$0x3] %vm2618_vm3, %v2617_v42 }
0x2ce6   :  { %3389 = shalt.err (!%p3386_p4)
}
0x2ce7   :  { %s3390_s10 = scalar_lea.hbm %s4115_s7, 32 }
0x2ce8   :  { %p3391_p5 = scmp.ne.s32.totalorder %s4115_s7, %s3390_s10  ;;  %p3394_p6 = scmp.lt.u32.totalorder %s3390_s10, %s4115_s7 }
0x2cea   :  { %p3396_p7 = pnand %p3394_p6, %p3391_p5 }
0x2cec   :  { %3399 = shalt.err (!%p3396_p7)
}
0x2ced   :  { %2629 = dma.vmem_to_hbm [thread:$0]  %s2627_s3, 32, %s4115_s7, [#allocation7]  }
0x2cee   :  { %3400 = dma.done.wait [#allocation7], 32  }
0x2cef   :  { %3401 = vsyncadd [#allocation7], 4294967264 }
0x2cf0   :  { %2633 = vsyncpa [#allocation7], 1 }

</bundles_post_ra>
